<compile_context>
chip_gen: v7x
topology: tpu7x:2x2x1
jax: 0.10.0
libtpu: 0.0.40
codegen_flags: <defaults>
</compile_context>

<pallas_src>
import jax
import jax.numpy as jnp
import numpy as np
from jax.experimental import pallas as pl
from jax.experimental.pallas import tpu as pltpu

# ----------------------------- problem sizes -----------------------------
B = 2              # batch
D = H = W = 16     # volume dims; each view has 16 input channels
CIN = 16           # per-branch conv input channels
F = 32             # backbone2d output channels per branch
NUM_CLASSES = 8
KTAPS = 9          # 3x3 conv taps
CIN3 = 3 * CIN     # 48  channel-concatenated view (axial|coronal|sagittal)
CTOT = 3 * F       # 96  concatenated branch output channels
CPAD = 128         # 96 -> 128 lane padding (unmasked stores, full MXU N)
SPATIAL = H * W    # 256 output pixels per branch (all views are 16x16)


# ------------- Pallas kernel: in-kernel im2col + conv + fused head ---------
def _fused_conv_head_kernel(xpad_ref, w_ref, b_ref, fcw_ref, fcb_ref,
                            feat_ref, logits_ref):
    # xpad_ref:   (B, 18, 18, 48)  bf16 zero-padded channel-concatenated view
    # w_ref:      (9, 48, 128)     bf16 per-tap block-diagonal conv weights
    # b_ref:      (1, 128)         f32 packed conv bias (pad lanes zero)
    # fcw_ref:    (128, 8)         f32 head weights, pre-scaled by 1/SPATIAL
    # fcb_ref:    (1, 8)           f32 head bias
    # feat_ref:   (B*256, 128)     f32 ReLU features, branches concat on lanes
    # logits_ref: (B, 8)           f32
    bsz, hp, wp, cin3 = xpad_ref.shape
    hh, ww = hp - 2, wp - 2
    rows = bsz * hh * ww

    # In-kernel im2col: 9 statically shifted (bsz,16,16,48) windows of the
    # padded view, each multiplied on the MXU by its per-tap block-diagonal
    # weight (bf16 in, f32 accumulate), summed directly into the feature slab.
    for tap in range(KTAPS):
        di, dj = divmod(tap, 3)
        xt = xpad_ref[:, di:di + hh, dj:dj + ww, :]        # (bsz,16,16,48) bf16
        xt2d = xt.reshape(rows, cin3)                      # lane dim (48) kept
        contrib = jnp.dot(xt2d, w_ref[tap],
                          preferred_element_type=jnp.float32)   # (rows, 128)
        if tap == 0:
            feat_ref[...] = contrib
        else:
            feat_ref[...] += contrib

    feat = jnp.maximum(feat_ref[...] + b_ref[...], 0.0)    # bias + ReLU
    feat_ref[...] = feat                                   # lane-dense 128-wide store

    # Fused head: per-batch sum pool (fc_w pre-scaled by 1/SPATIAL) + linear.
    # NOTE: rows are batch-major; if a row grid is ever added, switch to
    # per-tile partial sums finalized under pl.when.
    pooled = jnp.sum(feat.reshape(bsz, hh * ww, CPAD), axis=1)       # (bsz,128)
    logits_ref[...] = (jnp.dot(pooled, fcw_ref[...],
                               preferred_element_type=jnp.float32)
                       + fcb_ref[...])                               # (bsz, 8)


def fused_conv_head(x_pad, conv_w, conv_b, fc_w, fc_b):
    bsz, hp, wp, _ = x_pad.shape
    rows = bsz * (hp - 2) * (wp - 2)
    vmem = pl.BlockSpec(memory_space=pltpu.MemorySpace.VMEM)
    return pl.pallas_call(
        _fused_conv_head_kernel,
        out_shape=(jax.ShapeDtypeStruct((rows, CPAD), jnp.float32),
                   jax.ShapeDtypeStruct((bsz, NUM_CLASSES), jnp.float32)),
        in_specs=[vmem, vmem, vmem, vmem, vmem],
        out_specs=(vmem, vmem),
    )(x_pad, conv_w, conv_b, fc_w, fc_b)


# ------------------------------ synthetic model ----------------------------
def init_params(key):
    ks = jax.random.split(key, 8)
    scale_conv = 1.0 / jnp.sqrt(CIN * 9)
    scale_fc = 1.0 / jnp.sqrt(3 * F)
    return {
        "axial_w": jax.random.normal(ks[0], (9, CIN, F), jnp.float32) * scale_conv,
        "axial_b": jax.random.normal(ks[1], (F,), jnp.float32) * 0.01,
        "coronal_w": jax.random.normal(ks[2], (9, CIN, F), jnp.float32) * scale_conv,
        "coronal_b": jax.random.normal(ks[3], (F,), jnp.float32) * 0.01,
        "sagittal_w": jax.random.normal(ks[4], (9, CIN, F), jnp.float32) * scale_conv,
        "sagittal_b": jax.random.normal(ks[5], (F,), jnp.float32) * 0.01,
        "fc_w": jax.random.normal(ks[6], (3 * F, NUM_CLASSES), jnp.float32) * scale_fc,
        "fc_b": jax.random.normal(ks[7], (NUM_CLASSES,), jnp.float32) * 0.01,
    }


def pack_params(params):
    """Pack the 3 branch convs into per-tap block-diagonal bf16 weights.

    Done once at wrap time (GradCam freezes the weights), so there is no
    per-call XLA packing glue.  K order per tap = [axial 16ch | coronal 16ch |
    sagittal 16ch], matching the wrapper's channel concatenation; output lanes
    = [axial 32 | coronal 32 | sagittal 32 | 32 zero pad].  fc_w is pre-scaled
    by 1/SPATIAL so the kernel GAP is a plain sum.
    """
    w = np.zeros((KTAPS, CIN3, CPAD), np.float32)
    bias = np.zeros((1, CPAD), np.float32)
    for i, br in enumerate(("axial", "coronal", "sagittal")):
        w[:, i * CIN:(i + 1) * CIN, i * F:(i + 1) * F] = np.asarray(params[f"{br}_w"])
        bias[0, i * F:(i + 1) * F] = np.asarray(params[f"{br}_b"])
    fcw = np.zeros((CPAD, NUM_CLASSES), np.float32)
    fcw[:CTOT, :] = np.asarray(params["fc_w"]) / float(SPATIAL)
    return {
        "conv_w": jnp.asarray(w, dtype=jnp.bfloat16),
        "conv_b": jnp.asarray(bias),
        "fc_w": jnp.asarray(fcw),
        "fc_b": jnp.asarray(np.asarray(params["fc_b"]).reshape(1, NUM_CLASSES)),
    }


@jax.jit
def model_forward(packed, x):
    """x: [B, D, H, W] volume.  Returns (logits, feat_slab[(B*256, 128)])."""
    x_axial = jnp.transpose(x, (0, 2, 3, 1))     # [B, H, W, D]
    x_coronal = jnp.transpose(x, (0, 1, 3, 2))   # [B, D, W, H]
    x_sagittal = x                               # [B, D, H, W] (W = channels)

    # ONE channel-concatenated view; pad once; cast to bf16 (MXU-native).
    x_cat = jnp.concatenate([x_axial, x_coronal, x_sagittal], axis=-1)  # (B,16,16,48)
    x_pad = jnp.pad(x_cat, ((0, 0), (1, 1), (1, 1), (0, 0))).astype(jnp.bfloat16)

    feat_slab, logits = fused_conv_head(
        x_pad, packed["conv_w"], packed["conv_b"], packed["fc_w"], packed["fc_b"])
    return logits, feat_slab


# ------------------------------ GradCam wrapper ----------------------------
class GradCam:
    """JAX analog of the PyTorch GradCam wrapper.

    forward(x) == model(x)[0]; the forward-hook-captured backbone2d outputs
    are cached (as one lane-concatenated feature slab; per-branch split is
    deferred) and exposed via get_intermediate_data().
    """

    def __init__(self, params):
        # frozen weights (requires_grad=False analog): pack once at wrap time.
        self.packed = pack_params(params)
        self.clean()

    def clean(self):
        self.axial_output = None
        self.coronal_output = None
        self.sagittal_output = None
        self.axial_grad = None
        self.coronal_grad = None
        self.sagittal_grad = None
        self.f_output = None
        self._feat_slab = None
        self._batch = None

    def forward(self, x):
        self.clean()
        logits, feat_slab = model_forward(self.packed, x)
        # forward-hook semantics: cache the backbone2d outputs.  Kept as the
        # lane-dense (rows, 128) slab; per-branch slicing is deferred to
        # get_intermediate_data() so forward() does no extra HBM round trip.
        self._feat_slab = feat_slab
        self._batch = x.shape[0]
        return logits

    __call__ = forward

    def _split_feat(self):
        if self._feat_slab is None or self.axial_output is not None:
            return
        b, slab = self._batch, self._feat_slab
        self.axial_output = slab[:, 0 * F:1 * F].reshape(b, H, W, F)
        self.coronal_output = slab[:, 1 * F:2 * F].reshape(b, D, W, F)
        self.sagittal_output = slab[:, 2 * F:3 * F].reshape(b, D, H, F)

    def get_intermediate_data(self):
        self._split_feat()
        # TODO(synk): axial/coronal/sagittal_grad are only populated by a
        # backward pass (jax.vjp) like the PyTorch backward hooks; forward()
        # never runs one, so they stay None.
        return (self.axial_output, self.coronal_output, self.sagittal_output,
                self.axial_grad, self.coronal_grad, self.sagittal_grad)


# ------------------------- pure-XLA reference (for checking) ---------------
def _reference_forward(params, x):
    def conv_branch(xb, w, bias):
        w_hwio = w.reshape(3, 3, CIN, F)
        y = jax.lax.conv_general_dilated(
            xb, w_hwio, window_strides=(1, 1), padding="SAME",
            dimension_numbers=("NHWC", "HWIO", "NHWC"))
        return jnp.maximum(y + bias[None, None, None, :], 0.0)

    xa = jnp.transpose(x, (0, 2, 3, 1))
    xc = jnp.transpose(x, (0, 1, 3, 2))
    xs = x
    fa = conv_branch(xa, params["axial_w"], params["axial_b"])
    fc = conv_branch(xc, params["coronal_w"], params["coronal_b"])
    fs = conv_branch(xs, params["sagittal_w"], params["sagittal_b"])
    feat = jnp.concatenate(
        [fa.mean(axis=(1, 2)), fc.mean(axis=(1, 2)), fs.mean(axis=(1, 2))], axis=-1)
    logits = feat @ params["fc_w"] + params["fc_b"]
    return logits, (fa, fc, fs)


# ----------------------------------- main ----------------------------------
if __name__ == "__main__":
    key = jax.random.PRNGKey(0)
    k_params, k_x = jax.random.split(key)
    params = init_params(k_params)
    x = jax.random.normal(k_x, (B, D, H, W), jnp.float32)

    gradcam = GradCam(params)
    logits = gradcam(x)
    logits = jax.block_until_ready(logits)

    assert logits.shape == (B, NUM_CLASSES)
    fa, fc, fs, ga, gc, gs = gradcam.get_intermediate_data()
    assert fa.shape == (B, H, W, F)
    assert fc.shape == (B, D, W, F)
    assert fs.shape == (B, D, H, F)
    assert ga is None and gc is None and gs is None

    # Numerical check against a pure-XLA f32 implementation of the model.
    # Tolerances sized for bf16 MXU operands (f32 accumulation).
    ref_logits, (rfa, rfc, rfs) = _reference_forward(params, x)
    np.testing.assert_allclose(np.asarray(logits), np.asarray(ref_logits),
                               rtol=2e-2, atol=2e-2)
    np.testing.assert_allclose(np.asarray(fa), np.asarray(rfa), rtol=2e-2, atol=3e-2)
    np.testing.assert_allclose(np.asarray(fc), np.asarray(rfc), rtol=2e-2, atol=3e-2)
    np.testing.assert_allclose(np.asarray(fs), np.asarray(rfs), rtol=2e-2, atol=3e-2)

    print("KERNEL_OK")
</pallas_src>

<mosaic_0001>
module attributes {stable_mosaic.version = 11 : i64} {
  func.func @_fused_conv_head_kernel(%arg0: memref<2x18x18x48xbf16, #tpu.memory_space<vmem>>, %arg1: memref<9x48x128xbf16, #tpu.memory_space<vmem>>, %arg2: memref<1x128xf32, #tpu.memory_space<vmem>>, %arg3: memref<128x8xf32, #tpu.memory_space<vmem>>, %arg4: memref<1x8xf32, #tpu.memory_space<vmem>>, %arg5: memref<512x128xf32, #tpu.memory_space<vmem>>, %arg6: memref<2x8xf32, #tpu.memory_space<vmem>>) attributes {dimension_semantics = [], scalar_prefetch = 0 : i64, scratch_operands = 0 : i64, tpu.core_type = #tpu.core_type<tc>} {
    %c0 = arith.constant 0 : index
    %c0_0 = arith.constant 0 : index
    %c0_1 = arith.constant 0 : index
    %c0_2 = arith.constant 0 : index
    %0 = vector.load %arg0[%c0, %c0_0, %c0_1, %c0_2] : memref<2x18x18x48xbf16, #tpu.memory_space<vmem>>, vector<2x16x16x48xbf16>
    %1 = vector.shape_cast %0 : vector<2x16x16x48xbf16> to vector<512x48xbf16>
    %c0_3 = arith.constant 0 : index
    %c0_4 = arith.constant 0 : index
    %c0_5 = arith.constant 0 : index
    %2 = vector.load %arg1[%c0_3, %c0_4, %c0_5] : memref<9x48x128xbf16, #tpu.memory_space<vmem>>, vector<1x48x128xbf16>
    %3 = vector.shape_cast %2 : vector<1x48x128xbf16> to vector<48x128xbf16>
    %cst = arith.constant dense<0.000000e+00> : vector<512x128xf32>
    %4 = tpu.matmul %1, %3, %cst {dimension_numbers = #tpu.dot_dimension_numbers<[1], [0], [0], [1], [0, 0, 1, 1], [], []>} : vector<512x48xbf16>, vector<48x128xbf16>, vector<512x128xf32> -> vector<512x128xf32>
    %c0_6 = arith.constant 0 : index
    %c0_7 = arith.constant 0 : index
    %5 = vector.load %arg5[%c0_6, %c0_7] : memref<512x128xf32, #tpu.memory_space<vmem>>, vector<512x128xf32>
    tpu.vector_store %arg5[%c0_6, %c0_7], %4 {strides = array<i32>} : memref<512x128xf32, #tpu.memory_space<vmem>>, vector<512x128xf32>,
    %c0_8 = arith.constant 0 : index
    %c0_9 = arith.constant 0 : index
    %c1 = arith.constant 1 : index
    %c0_10 = arith.constant 0 : index
    %6 = vector.load %arg0[%c0_8, %c0_9, %c1, %c0_10] : memref<2x18x18x48xbf16, #tpu.memory_space<vmem>>, vector<2x16x16x48xbf16>
    %7 = vector.shape_cast %6 : vector<2x16x16x48xbf16> to vector<512x48xbf16>
    %c1_11 = arith.constant 1 : index
    %c0_12 = arith.constant 0 : index
    %c0_13 = arith.constant 0 : index
    %8 = vector.load %arg1[%c1_11, %c0_12, %c0_13] : memref<9x48x128xbf16, #tpu.memory_space<vmem>>, vector<1x48x128xbf16>
    %9 = vector.shape_cast %8 : vector<1x48x128xbf16> to vector<48x128xbf16>
    %cst_14 = arith.constant dense<0.000000e+00> : vector<512x128xf32>
    %10 = tpu.matmul %7, %9, %cst_14 {dimension_numbers = #tpu.dot_dimension_numbers<[1], [0], [0], [1], [0, 0, 1, 1], [], []>} : vector<512x48xbf16>, vector<48x128xbf16>, vector<512x128xf32> -> vector<512x128xf32>
    %c0_15 = arith.constant 0 : index
    %c0_16 = arith.constant 0 : index
    %11 = vector.load %arg5[%c0_15, %c0_16] : memref<512x128xf32, #tpu.memory_space<vmem>>, vector<512x128xf32>
    %12 = arith.addf %11, %10 : vector<512x128xf32>
    %c0_17 = arith.constant 0 : index
    %c0_18 = arith.constant 0 : index
    %13 = vector.load %arg5[%c0_17, %c0_18] : memref<512x128xf32, #tpu.memory_space<vmem>>, vector<512x128xf32>
    tpu.vector_store %arg5[%c0_17, %c0_18], %12 {strides = array<i32>} : memref<512x128xf32, #tpu.memory_space<vmem>>, vector<512x128xf32>,
    %c0_19 = arith.constant 0 : index
    %c0_20 = arith.constant 0 : index
    %c2 = arith.constant 2 : index
    %c0_21 = arith.constant 0 : index
    %14 = vector.load %arg0[%c0_19, %c0_20, %c2, %c0_21] : memref<2x18x18x48xbf16, #tpu.memory_space<vmem>>, vector<2x16x16x48xbf16>
    %15 = vector.shape_cast %14 : vector<2x16x16x48xbf16> to vector<512x48xbf16>
    %c2_22 = arith.constant 2 : index
    %c0_23 = arith.constant 0 : index
    %c0_24 = arith.constant 0 : index
    %16 = vector.load %arg1[%c2_22, %c0_23, %c0_24] : memref<9x48x128xbf16, #tpu.memory_space<vmem>>, vector<1x48x128xbf16>
    %17 = vector.shape_cast %16 : vector<1x48x128xbf16> to vector<48x128xbf16>
    %cst_25 = arith.constant dense<0.000000e+00> : vector<512x128xf32>
    %18 = tpu.matmul %15, %17, %cst_25 {dimension_numbers = #tpu.dot_dimension_numbers<[1], [0], [0], [1], [0, 0, 1, 1], [], []>} : vector<512x48xbf16>, vector<48x128xbf16>, vector<512x128xf32> -> vector<512x128xf32>
    %c0_26 = arith.constant 0 : index
    %c0_27 = arith.constant 0 : index
    %19 = vector.load %arg5[%c0_26, %c0_27] : memref<512x128xf32, #tpu.memory_space<vmem>>, vector<512x128xf32>
    %20 = arith.addf %19, %18 : vector<512x128xf32>
    %c0_28 = arith.constant 0 : index
    %c0_29 = arith.constant 0 : index
    %21 = vector.load %arg5[%c0_28, %c0_29] : memref<512x128xf32, #tpu.memory_space<vmem>>, vector<512x128xf32>
    tpu.vector_store %arg5[%c0_28, %c0_29], %20 {strides = array<i32>} : memref<512x128xf32, #tpu.memory_space<vmem>>, vector<512x128xf32>,
    %c0_30 = arith.constant 0 : index
    %c1_31 = arith.constant 1 : index
    %c0_32 = arith.constant 0 : index
    %c0_33 = arith.constant 0 : index
    %22 = vector.load %arg0[%c0_30, %c1_31, %c0_32, %c0_33] : memref<2x18x18x48xbf16, #tpu.memory_space<vmem>>, vector<2x16x16x48xbf16>
    %23 = vector.shape_cast %22 : vector<2x16x16x48xbf16> to vector<512x48xbf16>
    %c3 = arith.constant 3 : index
    %c0_34 = arith.constant 0 : index
    %c0_35 = arith.constant 0 : index
    %24 = vector.load %arg1[%c3, %c0_34, %c0_35] : memref<9x48x128xbf16, #tpu.memory_space<vmem>>, vector<1x48x128xbf16>
    %25 = vector.shape_cast %24 : vector<1x48x128xbf16> to vector<48x128xbf16>
    %cst_36 = arith.constant dense<0.000000e+00> : vector<512x128xf32>
    %26 = tpu.matmul %23, %25, %cst_36 {dimension_numbers = #tpu.dot_dimension_numbers<[1], [0], [0], [1], [0, 0, 1, 1], [], []>} : vector<512x48xbf16>, vector<48x128xbf16>, vector<512x128xf32> -> vector<512x128xf32>
    %c0_37 = arith.constant 0 : index
    %c0_38 = arith.constant 0 : index
    %27 = vector.load %arg5[%c0_37, %c0_38] : memref<512x128xf32, #tpu.memory_space<vmem>>, vector<512x128xf32>
    %28 = arith.addf %27, %26 : vector<512x128xf32>
    %c0_39 = arith.constant 0 : index
    %c0_40 = arith.constant 0 : index
    %29 = vector.load %arg5[%c0_39, %c0_40] : memref<512x128xf32, #tpu.memory_space<vmem>>, vector<512x128xf32>
    tpu.vector_store %arg5[%c0_39, %c0_40], %28 {strides = array<i32>} : memref<512x128xf32, #tpu.memory_space<vmem>>, vector<512x128xf32>,
    %c0_41 = arith.constant 0 : index
    %c1_42 = arith.constant 1 : index
    %c1_43 = arith.constant 1 : index
    %c0_44 = arith.constant 0 : index
    %30 = vector.load %arg0[%c0_41, %c1_42, %c1_43, %c0_44] : memref<2x18x18x48xbf16, #tpu.memory_space<vmem>>, vector<2x16x16x48xbf16>
    %31 = vector.shape_cast %30 : vector<2x16x16x48xbf16> to vector<512x48xbf16>
    %c4 = arith.constant 4 : index
    %c0_45 = arith.constant 0 : index
    %c0_46 = arith.constant 0 : index
    %32 = vector.load %arg1[%c4, %c0_45, %c0_46] : memref<9x48x128xbf16, #tpu.memory_space<vmem>>, vector<1x48x128xbf16>
    %33 = vector.shape_cast %32 : vector<1x48x128xbf16> to vector<48x128xbf16>
    %cst_47 = arith.constant dense<0.000000e+00> : vector<512x128xf32>
    %34 = tpu.matmul %31, %33, %cst_47 {dimension_numbers = #tpu.dot_dimension_numbers<[1], [0], [0], [1], [0, 0, 1, 1], [], []>} : vector<512x48xbf16>, vector<48x128xbf16>, vector<512x128xf32> -> vector<512x128xf32>
    %c0_48 = arith.constant 0 : index
    %c0_49 = arith.constant 0 : index
    %35 = vector.load %arg5[%c0_48, %c0_49] : memref<512x128xf32, #tpu.memory_space<vmem>>, vector<512x128xf32>
    %36 = arith.addf %35, %34 : vector<512x128xf32>
    %c0_50 = arith.constant 0 : index
    %c0_51 = arith.constant 0 : index
    %37 = vector.load %arg5[%c0_50, %c0_51] : memref<512x128xf32, #tpu.memory_space<vmem>>, vector<512x128xf32>
    tpu.vector_store %arg5[%c0_50, %c0_51], %36 {strides = array<i32>} : memref<512x128xf32, #tpu.memory_space<vmem>>, vector<512x128xf32>,
    %c0_52 = arith.constant 0 : index
    %c1_53 = arith.constant 1 : index
    %c2_54 = arith.constant 2 : index
    %c0_55 = arith.constant 0 : index
    %38 = vector.load %arg0[%c0_52, %c1_53, %c2_54, %c0_55] : memref<2x18x18x48xbf16, #tpu.memory_space<vmem>>, vector<2x16x16x48xbf16>
    %39 = vector.shape_cast %38 : vector<2x16x16x48xbf16> to vector<512x48xbf16>
    %c5 = arith.constant 5 : index
    %c0_56 = arith.constant 0 : index
    %c0_57 = arith.constant 0 : index
    %40 = vector.load %arg1[%c5, %c0_56, %c0_57] : memref<9x48x128xbf16, #tpu.memory_space<vmem>>, vector<1x48x128xbf16>
    %41 = vector.shape_cast %40 : vector<1x48x128xbf16> to vector<48x128xbf16>
    %cst_58 = arith.constant dense<0.000000e+00> : vector<512x128xf32>
    %42 = tpu.matmul %39, %41, %cst_58 {dimension_numbers = #tpu.dot_dimension_numbers<[1], [0], [0], [1], [0, 0, 1, 1], [], []>} : vector<512x48xbf16>, vector<48x128xbf16>, vector<512x128xf32> -> vector<512x128xf32>
    %c0_59 = arith.constant 0 : index
    %c0_60 = arith.constant 0 : index
    %43 = vector.load %arg5[%c0_59, %c0_60] : memref<512x128xf32, #tpu.memory_space<vmem>>, vector<512x128xf32>
    %44 = arith.addf %43, %42 : vector<512x128xf32>
    %c0_61 = arith.constant 0 : index
    %c0_62 = arith.constant 0 : index
    %45 = vector.load %arg5[%c0_61, %c0_62] : memref<512x128xf32, #tpu.memory_space<vmem>>, vector<512x128xf32>
    tpu.vector_store %arg5[%c0_61, %c0_62], %44 {strides = array<i32>} : memref<512x128xf32, #tpu.memory_space<vmem>>, vector<512x128xf32>,
    %c0_63 = arith.constant 0 : index
    %c2_64 = arith.constant 2 : index
    %c0_65 = arith.constant 0 : index
    %c0_66 = arith.constant 0 : index
    %46 = vector.load %arg0[%c0_63, %c2_64, %c0_65, %c0_66] : memref<2x18x18x48xbf16, #tpu.memory_space<vmem>>, vector<2x16x16x48xbf16>
    %47 = vector.shape_cast %46 : vector<2x16x16x48xbf16> to vector<512x48xbf16>
    %c6 = arith.constant 6 : index
    %c0_67 = arith.constant 0 : index
    %c0_68 = arith.constant 0 : index
    %48 = vector.load %arg1[%c6, %c0_67, %c0_68] : memref<9x48x128xbf16, #tpu.memory_space<vmem>>, vector<1x48x128xbf16>
    %49 = vector.shape_cast %48 : vector<1x48x128xbf16> to vector<48x128xbf16>
    %cst_69 = arith.constant dense<0.000000e+00> : vector<512x128xf32>
    %50 = tpu.matmul %47, %49, %cst_69 {dimension_numbers = #tpu.dot_dimension_numbers<[1], [0], [0], [1], [0, 0, 1, 1], [], []>} : vector<512x48xbf16>, vector<48x128xbf16>, vector<512x128xf32> -> vector<512x128xf32>
    %c0_70 = arith.constant 0 : index
    %c0_71 = arith.constant 0 : index
    %51 = vector.load %arg5[%c0_70, %c0_71] : memref<512x128xf32, #tpu.memory_space<vmem>>, vector<512x128xf32>
    %52 = arith.addf %51, %50 : vector<512x128xf32>
    %c0_72 = arith.constant 0 : index
    %c0_73 = arith.constant 0 : index
    %53 = vector.load %arg5[%c0_72, %c0_73] : memref<512x128xf32, #tpu.memory_space<vmem>>, vector<512x128xf32>
    tpu.vector_store %arg5[%c0_72, %c0_73], %52 {strides = array<i32>} : memref<512x128xf32, #tpu.memory_space<vmem>>, vector<512x128xf32>,
    %c0_74 = arith.constant 0 : index
    %c2_75 = arith.constant 2 : index
    %c1_76 = arith.constant 1 : index
    %c0_77 = arith.constant 0 : index
    %54 = vector.load %arg0[%c0_74, %c2_75, %c1_76, %c0_77] : memref<2x18x18x48xbf16, #tpu.memory_space<vmem>>, vector<2x16x16x48xbf16>
    %55 = vector.shape_cast %54 : vector<2x16x16x48xbf16> to vector<512x48xbf16>
    %c7 = arith.constant 7 : index
    %c0_78 = arith.constant 0 : index
    %c0_79 = arith.constant 0 : index
    %56 = vector.load %arg1[%c7, %c0_78, %c0_79] : memref<9x48x128xbf16, #tpu.memory_space<vmem>>, vector<1x48x128xbf16>
    %57 = vector.shape_cast %56 : vector<1x48x128xbf16> to vector<48x128xbf16>
    %cst_80 = arith.constant dense<0.000000e+00> : vector<512x128xf32>
    %58 = tpu.matmul %55, %57, %cst_80 {dimension_numbers = #tpu.dot_dimension_numbers<[1], [0], [0], [1], [0, 0, 1, 1], [], []>} : vector<512x48xbf16>, vector<48x128xbf16>, vector<512x128xf32> -> vector<512x128xf32>
    %c0_81 = arith.constant 0 : index
    %c0_82 = arith.constant 0 : index
    %59 = vector.load %arg5[%c0_81, %c0_82] : memref<512x128xf32, #tpu.memory_space<vmem>>, vector<512x128xf32>
    %60 = arith.addf %59, %58 : vector<512x128xf32>
    %c0_83 = arith.constant 0 : index
    %c0_84 = arith.constant 0 : index
    %61 = vector.load %arg5[%c0_83, %c0_84] : memref<512x128xf32, #tpu.memory_space<vmem>>, vector<512x128xf32>
    tpu.vector_store %arg5[%c0_83, %c0_84], %60 {strides = array<i32>} : memref<512x128xf32, #tpu.memory_space<vmem>>, vector<512x128xf32>,
    %c0_85 = arith.constant 0 : index
    %c2_86 = arith.constant 2 : index
    %c2_87 = arith.constant 2 : index
    %c0_88 = arith.constant 0 : index
    %62 = vector.load %arg0[%c0_85, %c2_86, %c2_87, %c0_88] : memref<2x18x18x48xbf16, #tpu.memory_space<vmem>>, vector<2x16x16x48xbf16>
    %63 = vector.shape_cast %62 : vector<2x16x16x48xbf16> to vector<512x48xbf16>
    %c8 = arith.constant 8 : index
    %c0_89 = arith.constant 0 : index
    %c0_90 = arith.constant 0 : index
    %64 = vector.load %arg1[%c8, %c0_89, %c0_90] : memref<9x48x128xbf16, #tpu.memory_space<vmem>>, vector<1x48x128xbf16>
    %65 = vector.shape_cast %64 : vector<1x48x128xbf16> to vector<48x128xbf16>
    %cst_91 = arith.constant dense<0.000000e+00> : vector<512x128xf32>
    %66 = tpu.matmul %63, %65, %cst_91 {dimension_numbers = #tpu.dot_dimension_numbers<[1], [0], [0], [1], [0, 0, 1, 1], [], []>} : vector<512x48xbf16>, vector<48x128xbf16>, vector<512x128xf32> -> vector<512x128xf32>
    %c0_92 = arith.constant 0 : index
    %c0_93 = arith.constant 0 : index
    %67 = vector.load %arg5[%c0_92, %c0_93] : memref<512x128xf32, #tpu.memory_space<vmem>>, vector<512x128xf32>
    %68 = arith.addf %67, %66 : vector<512x128xf32>
    %c0_94 = arith.constant 0 : index
    %c0_95 = arith.constant 0 : index
    %69 = vector.load %arg5[%c0_94, %c0_95] : memref<512x128xf32, #tpu.memory_space<vmem>>, vector<512x128xf32>
    tpu.vector_store %arg5[%c0_94, %c0_95], %68 {strides = array<i32>} : memref<512x128xf32, #tpu.memory_space<vmem>>, vector<512x128xf32>,
    %c0_96 = arith.constant 0 : index
    %c0_97 = arith.constant 0 : index
    %70 = vector.load %arg5[%c0_96, %c0_97] : memref<512x128xf32, #tpu.memory_space<vmem>>, vector<512x128xf32>
    %c0_98 = arith.constant 0 : index
    %c0_99 = arith.constant 0 : index
    %71 = vector.load %arg2[%c0_98, %c0_99] : memref<1x128xf32, #tpu.memory_space<vmem>>, vector<1x128xf32>
    %72 = vector.broadcast %71 : vector<1x128xf32> to vector<512x128xf32>
    %73 = arith.addf %70, %72 : vector<512x128xf32>
    %cst_100 = arith.constant 0.000000e+00 : f32
    %74 = vector.broadcast %cst_100 : f32 to vector<512x128xf32>
    %75 = arith.maximumf %73, %74 : vector<512x128xf32>
    %c0_101 = arith.constant 0 : index
    %c0_102 = arith.constant 0 : index
    %76 = vector.load %arg5[%c0_101, %c0_102] : memref<512x128xf32, #tpu.memory_space<vmem>>, vector<512x128xf32>
    tpu.vector_store %arg5[%c0_101, %c0_102], %75 {strides = array<i32>} : memref<512x128xf32, #tpu.memory_space<vmem>>, vector<512x128xf32>,
    %77 = vector.shape_cast %75 : vector<512x128xf32> to vector<2x256x128xf32>
    %cst_103 = arith.constant dense<0.000000e+00> : vector<2x128xf32>
    %78 = vector.multi_reduction <add>, %77, %cst_103 [1] : vector<2x256x128xf32> to vector<2x128xf32>
    %c0_104 = arith.constant 0 : index
    %c0_105 = arith.constant 0 : index
    %79 = vector.load %arg3[%c0_104, %c0_105] : memref<128x8xf32, #tpu.memory_space<vmem>>, vector<128x8xf32>
    %cst_106 = arith.constant dense<0.000000e+00> : vector<2x8xf32>
    %80 = tpu.matmul %78, %79, %cst_106 {dimension_numbers = #tpu.dot_dimension_numbers<[1], [0], [0], [1], [0, 0, 1, 1], [], []>} : vector<2x128xf32>, vector<128x8xf32>, vector<2x8xf32> -> vector<2x8xf32>
    %c0_107 = arith.constant 0 : index
    %c0_108 = arith.constant 0 : index
    %81 = vector.load %arg4[%c0_107, %c0_108] : memref<1x8xf32, #tpu.memory_space<vmem>>, vector<1x8xf32>
    %82 = vector.broadcast %81 : vector<1x8xf32> to vector<2x8xf32>
    %83 = arith.addf %80, %82 : vector<2x8xf32>
    %c0_109 = arith.constant 0 : index
    %c0_110 = arith.constant 0 : index
    %84 = vector.load %arg6[%c0_109, %c0_110] : memref<2x8xf32, #tpu.memory_space<vmem>>, vector<2x8xf32>
    tpu.vector_store %arg6[%c0_109, %c0_110], %83 {strides = array<i32>} : memref<2x8xf32, #tpu.memory_space<vmem>>, vector<2x8xf32>,
    return
  }
}

</mosaic_0001>

<bundles_post_ra>
// kernel: model_forward.1
= control target key start
LH: loop header
LB: loop body
LE: loop exit
PB: predicated region body
PF: predicated region fallthrough
CT: control target
= control target key end

     0   :  { %12 = vsyncpa [#allocation3], 0  ;;  %vm273_vm0 = vcmask 392192   ;;  %vm819_vm1 = vsmask.f32 3328  ;;  %vm2480_vm4 = vcmask 1042432   ;;  %s18253_s0 = inlined_call_operand.vmem [shape: bf16[2,18,18,48], index: 0, kind: input, shape index: {}]   ;;  %s18254_s1 = inlined_call_operand.vmem [shape: bf16[9,48,128], index: 1, kind: input, shape index: {}]   ;;  %s18255_s2 = inlined_call_operand.vmem [shape: f32[1,128], index: 2, kind: input, shape index: {}]   ;;  %s18256_s3 = inlined_call_operand.vmem [shape: f32[128,8], index: 3, kind: input, shape index: {}]   ;;  %s18257_s4 = inlined_call_operand.vmem [shape: f32[1,8], index: 4, kind: input, shape index: {}]   ;;  %s18258_s5 = inlined_call_operand.hbm [shape: f32[512,128], index: 5, kind: output, shape index: {0}]   ;;  %s18259_s6 = inlined_call_operand.hbm [shape: f32[2,8], index: 6, kind: output, shape index: {1}]  }
   0x1   :  { %v13813_v0 = vld [vmem:[%s18254_s1] sm:$0xff]   ;;  %v13815_v2 = vld [vmem:[%s18254_s1 + $0x8] sm:$0xff]   ;;  %v13817_v4 = vld [vmem:[%s18254_s1 + $0x10] sm:$0xff]   ;;  %vm820_vm2 = vsmask.f32 7440  ;;  %vm2481_vm5 = vcmask 1046532  }
   0x2   :  { %v13814_v1 = vld [vmem:[%s18254_s1 + $0x60] sm:$0xff]   ;;  %12471 = vmatprep.subr.bf16.mxu1 %v13813_v0  ;;  %v13816_v3 = vld [vmem:[%s18254_s1 + $0x68] sm:$0xff]   ;;  %v13818_v5 = vld [vmem:[%s18254_s1 + $0x70] sm:$0xff]  }
   0x3   :  { %12751 = vmatprep.subr.bf16.mxu0 %v13814_v1  ;;  %12472 = vmatpush3.bf16.msra.mxu1 %v13813_v0  ;;  %v13819_v6 = vld [vmem:[%s18253_s0] sm:$0xff]   ;;  %v11260_v7 = vld [vmem:[%s18253_s0 + $0xc] sm:$0xf]  ;;  %v11261_v8 = vld [vmem:[%s18253_s0 + $0x10] sm:$0xf] }
   0x4   :  { %12752 = vmatpush3.bf16.msra.mxu0 %v13814_v1  ;;  %12473 = vmatprep.subr.bf16.mxu1 %v13815_v2  ;;  %v11262_v9 = vld [vmem:[%s18253_s0 + $0x14] sm:$0x1]  ;;  %v4329_v10 = vshrl.u32 %v11260_v7, 16  ;;  %v4332_v11 = vshll.u32 %v11260_v7, 16  ;;  %v4338_v12 = vshll.u32 %v11261_v8, 16  ;;  %v4342_v13 = vshrl.u32 %v11261_v8, 16  ;;  %vm14081_vm3 = vmor %vm819_vm1, %vm820_vm2 }
   0x5   :  { %12753 = vmatprep.subr.bf16.mxu0 %v13816_v3  ;;  %12477 = vmatprep.mubr.msk.bf16.mxu1 %vm273_vm0, %v13819_v6  ;;  %v4348_v14 = vshll.u32 %v11262_v9, 16  ;;  %v13820_v15 = vld [vmem:[%s18253_s0 + $0xc] sm:$0xff]   ;;  %v11263_v18 = vld [vmem:[%s18253_s0 + $0x18] sm:$0xf]  ;;  %v11264_v22 = vld [vmem:[%s18253_s0 + $0x1c] sm:$0xf] }
   0x6   :  { %v4331_v16 = vrot.slane %v4329_v10, 4  ;;  %v4334_v17 = vrot.slane %v4332_v11, 5  ;;  %v4340_v19 = vrot.slane %v4338_v12, 5  ;;  %v4344_v20 = vrot.slane %v4342_v13, 4  ;;  %v11265_v25 = vld [vmem:[%s18253_s0 + $0x20] sm:$0x1]  ;;  %vm14426_vm6 = vmor %vm2480_vm4, %vm2481_vm5 }
   0x7   :  { %12474 = vmatpush3.bf16.msra.mxu1 %v13815_v2  ;;  %v4350_v21 = vrot.slane %v4348_v14, 5  ;;  %v4353_v23 = vshrl.u32 %v11263_v18, 16  ;;  %v4356_v26 = vshll.u32 %v11263_v18, 16  ;;  %v4362_v27 = vshll.u32 %v11264_v22, 16  ;;  %v13821_v29 = vld [vmem:[%s18254_s1 + $0x78] sm:$0xff]   ;;  %v13823_v47 = vld [vmem:[%s18253_s0 + $0x24] sm:$0xff]  }
   0x8   :  { %12754 = vmatpush3.bf16.msra.mxu0 %v13816_v3  ;;  %12475 = vmatprep.subr.bf16.mxu1 %v13817_v4  ;;  %v4335_v24 = vor.u32 %v4334_v17, %v4331_v16  ;;  %v4366_v28 = vshrl.u32 %v11264_v22, 16  ;;  %v4345_v31 = vor.u32 %v4344_v20, %v4340_v19  ;;  %v4372_v33 = vshll.u32 %v11265_v25, 16  ;;  %v13822_v40 = vld [vmem:[%s18253_s0 + $0x18] sm:$0xff]   ;;  %v11266_v44 = vld [vmem:[%s18253_s0 + $0x24] sm:$0xf]  ;;  %v13825_v57 = vld [vmem:[%s18253_s0 + $0x30] sm:$0xff]  }
   0x9   :  { %12755 = vmatprep.subr.bf16.mxu0 %v13818_v5  ;;  %v4355_v32 = vrot.slane %v4353_v23, 4  ;;  %v4358_v35 = vrot.slane %v4356_v26, 5  ;;  %v4364_v36 = vrot.slane %v4362_v27, 5  ;;  %v11267_v45 = vld [vmem:[%s18253_s0 + $0x28] sm:$0xf]  ;;  %v4377_v49 = vshrl.u32 %v11266_v44, 16 }
   0xa   :  { %v4336_v34 = vrot.slane %v4335_v24, 4  ;;  %v4368_v37 = vrot.slane %v4366_v28, 4  ;;  %v4346_v38 = vrot.slane %v4345_v31, 4  ;;  %v4374_v39 = vrot.slane %v4372_v33, 5  ;;  %v11268_v46 = vld [vmem:[%s18253_s0 + $0x2c] sm:$0x1] }
   0xb   :  { %12476 = vmatpush3.bf16.msra.mxu1 %v13817_v4  ;;  %v4359_v42 = vor.u32 %v4358_v35, %v4355_v32  ;;  %v4380_v50 = vshll.u32 %v11266_v44, 16  ;;  %v4386_v51 = vshll.u32 %v11267_v45, 16  ;;  %v13824_v52 = vld [vmem:[%s18254_s1 + $0x18] sm:$0xff]   ;;  %v4390_v56 = vshrl.u32 %v11267_v45, 16  ;;  %v11269_v1 = vld [vmem:[%s18253_s0 + $0x30] sm:$0xf] }
   0xc   :  { %12756 = vmatpush3.bf16.msra.mxu0 %v13818_v5  ;;  %v4341_v41 = vsel %vm14081_vm3, %v4336_v34, %v4340_v19  ;;  %v4369_v43 = vor.u32 %v4368_v37, %v4364_v36  ;;  %v4351_v48 = vsel %vm14081_vm3, %v4346_v38, %v4350_v21  ;;  %v4379_v58 = vrot.slane %v4377_v49, 4  ;;  %12541 = vmatprep.subr.bf16.mxu1 %v13824_v52  ;;  %v11270_v5 = vld [vmem:[%s18253_s0 + $0x34] sm:$0xf]  ;;  %v11271_v6 = vld [vmem:[%s18253_s0 + $0x38] sm:$0x1]  ;;  %v13826_v20 = vld [vmem:[%s18253_s0 + $0x3c] sm:$0xff]  }
   0xd   :  { %12821 = vmatprep.subr.bf16.mxu0 %v13821_v29  ;;  %v11362_v53 = vcombine.low %v4341_v41, %v4351_v48  ;;  %v4360_v54 = vrot.slane %v4359_v42, 4  ;;  %v4382_v59 = vrot.slane %v4380_v50, 5  ;;  %v4388_v60 = vrot.slane %v4386_v51, 5  ;;  %v11272_v19 = vld [vmem:[%s18253_s0 + $0x3c] sm:$0xf]  ;;  %v13829_v31 = vld [vmem:[%s18254_s1 + $0x80] sm:$0xff]  }
   0xe   :  { %12478 = vmatmul.mubr.msk.bf16.vlgmr.msra.gmra.mrb[0].mxu1 %vm273_vm0, %v13820_v15  ;;  %v4370_v55 = vrot.slane %v4369_v43, 4  ;;  %v4396_v61 = vshll.u32 %v11268_v46, 16  ;;  %v4392_v0 = vrot.slane %v4390_v56, 4  ;;  %v4401_v7 = vshrl.u32 %v11269_v1, 16  ;;  %v11273_v23 = vld [vmem:[%s18253_s0 + $0x40] sm:$0xf] }
   0xf   :  { %12481 = vmatprep.mubr.msk.bf16.mxu1 %vm273_vm0, %v13822_v40  ;;  %12757 = vmatprep.mubr.msk.bf16.mxu0 %vm273_vm0, %v11362_v53  ;;  %v4365_v62 = vsel %vm14081_vm3, %v4360_v54, %v4364_v36  ;;  %v4383_v3 = vor.u32 %v4382_v59, %v4379_v58  ;;  %v4404_v9 = vshll.u32 %v11269_v1, 16  ;;  %v4410_v10 = vshll.u32 %v11270_v5, 16  ;;  %v11274_v24 = vld [vmem:[%s18253_s0 + $0x44] sm:$0x1]  ;;  %v11275_v36 = vld [vmem:[%s18253_s0 + $0x48] sm:$0xf] }
  0x10   :  { %v4375_v63 = vsel %vm14081_vm3, %v4370_v55, %v4374_v39  ;;  %12542 = vmatpush3.bf16.msra.mxu1 %v13824_v52  ;;  %v4398_v4 = vrot.slane %v4396_v61, 5  ;;  %v4393_v8 = vor.u32 %v4392_v0, %v4388_v60  ;;  %v4414_v11 = vshrl.u32 %v11270_v5, 16  ;;  %v13827_v37 = vld [vmem:[%s18253_s0 + $0x48] sm:$0xff]   ;;  %v11277_v45 = vld [vmem:[%s18253_s0 + $0x50] sm:$0x1] }
  0x11   :  { %v11363_v2 = vcombine.low %v4365_v62, %v4375_v63  ;;  %v4384_v12 = vrot.slane %v4383_v3, 4  ;;  %v4403_v13 = vrot.slane %v4401_v7, 4  ;;  %v4420_v14 = vshll.u32 %v11271_v6, 16  ;;  %v11276_v42 = vld [vmem:[%s18253_s0 + $0x4c] sm:$0xf]  ;;  %v13828_v7 = vld [vmem:[%s18253_s0 + $0x54] sm:$0xff]  }
  0x12   :  { %v4394_v15 = vrot.slane %v4393_v8, 4  ;;  %v4406_v16 = vrot.slane %v4404_v9, 5  ;;  %v4412_v17 = vrot.slane %v4410_v10, 5  ;;  %v4416_v18 = vrot.slane %v4414_v11, 4  ;;  %v11278_v56 = vld [vmem:[%s18253_s0 + $0x54] sm:$0xf] }
  0x13   :  { %12758 = vmatmul.mubr.msk.bf16.vlgmr.msra.gmra.mrb[0].mxu0 %vm273_vm0, %v11363_v2  ;;  %v4389_v21 = vsel %vm14081_vm3, %v4384_v12, %v4388_v60  ;;  %v4422_v22 = vrot.slane %v4420_v14, 5  ;;  %v4425_v25 = vshrl.u32 %v11272_v19, 16  ;;  %v4434_v34 = vshll.u32 %v11273_v23, 16  ;;  %v11280_v62 = vld [vmem:[%s18253_s0 + $0x5c] sm:$0x1] }
  0x14   :  { %12822 = vmatpush3.bf16.msra.mxu0 %v13821_v29  ;;  %v4399_v26 = vsel %vm14081_vm3, %v4394_v15, %v4398_v4  ;;  %v4407_v27 = vor.u32 %v4406_v16, %v4403_v13  ;;  %v4417_v28 = vor.u32 %v4416_v18, %v4412_v17  ;;  %v4428_v29 = vshll.u32 %v11272_v19, 16  ;;  %v11281_v12 = vld [vmem:[%s18253_s0 + $0x60] sm:$0xf]  ;;  %v11282_v18 = vld [vmem:[%s18253_s0 + $0x64] sm:$0xf] }
  0x15   :  { %v11364_v32 = vcombine.low %v4389_v21, %v4399_v26  ;;  %v4427_v33 = vrot.slane %v4425_v25, 4  ;;  %v4438_v35 = vshrl.u32 %v11273_v23, 16  ;;  %v4444_v41 = vshll.u32 %v11274_v24, 16  ;;  %12823 = vmatprep.subr.bf16.mxu0 %v13829_v31  ;;  %v13830_v13 = vld [vmem:[%s18253_s0 + $0x60] sm:$0xff]   ;;  %v11283_v19 = vld [vmem:[%s18253_s0 + $0x68] sm:$0x1] }
  0x16   :  { %12482 = vmatmul.mubr.msk.bf16.gmra.mrb[4].mxu1 %vm273_vm0, %v13823_v47  ;;  %v4408_v38 = vrot.slane %v4407_v27, 4  ;;  %v4418_v39 = vrot.slane %v4417_v28, 4  ;;  %v4430_v40 = vrot.slane %v4428_v29, 5  ;;  %v4436_v43 = vrot.slane %v4434_v34, 5 }
  0x17   :  { %12485 = vmatprep.mubr.msk.bf16.mxu1 %vm273_vm0, %v13825_v57  ;;  %12761 = vmatprep.mubr.msk.bf16.mxu0 %vm273_vm0, %v11364_v32  ;;  %v4440_v44 = vrot.slane %v4438_v35, 4  ;;  %v4449_v46 = vshrl.u32 %v11275_v36, 16  ;;  %v4452_v47 = vshll.u32 %v11275_v36, 16  ;;  %v4446_v51 = vrot.slane %v4444_v41, 5  ;;  %v11279_v57 = vld [vmem:[%s18253_s0 + $0x58] sm:$0xf] }
  0x18   :  { %12824 = vmatpush3.bf16.msra.mxu0 %v13829_v31  ;;  %v4413_v48 = vsel %vm14081_vm3, %v4408_v38, %v4412_v17  ;;  %v4423_v49 = vsel %vm14081_vm3, %v4418_v39, %v4422_v22  ;;  %v4431_v50 = vor.u32 %v4430_v40, %v4427_v33  ;;  %v4458_v59 = vshll.u32 %v11276_v42, 16  ;;  %v11285_v38 = vld [vmem:[%s18253_s0 + $0x70] sm:$0xf] }
  0x19   :  { %v11365_v52 = vcombine.low %v4413_v48, %v4423_v49  ;;  %v4441_v53 = vor.u32 %v4440_v44, %v4436_v43  ;;  %v4451_v54 = vrot.slane %v4449_v46, 4  ;;  %v4454_v55 = vrot.slane %v4452_v47, 5  ;;  %v13831_v39 = vld [vmem:[%s18253_s0 + $0x6c] sm:$0xff]   ;;  %v11286_v44 = vld [vmem:[%s18253_s0 + $0x74] sm:$0x1]  ;;  %v13832_v49 = vld [vmem:[%s18253_s0 + $0x78] sm:$0xff]  }
  0x1a   :  { %v4432_v58 = vrot.slane %v4431_v50, 4  ;;  %v4462_v60 = vshrl.u32 %v11276_v42, 16  ;;  %v4468_v61 = vshll.u32 %v11277_v45, 16  ;;  %v4473_v1 = vshrl.u32 %v11278_v56, 16 }
  0x1b   :  { %12762 = vmatmul.mubr.msk.bf16.gmra.mrb[4].mxu0 %vm273_vm0, %v11365_v52  ;;  %v4442_v63 = vrot.slane %v4441_v53, 4  ;;  %v4455_v0 = vor.u32 %v4454_v55, %v4451_v54  ;;  %v4476_v2 = vshll.u32 %v11278_v56, 16  ;;  %v4460_v4 = vrot.slane %v4458_v59, 5  ;;  %v11287_v54 = vld [vmem:[%s18253_s0 + $0x78] sm:$0xf] }
  0x1c   :  { %v4437_v3 = vsel %vm14081_vm3, %v4432_v58, %v4436_v43  ;;  %v4464_v5 = vrot.slane %v4462_v60, 4  ;;  %v4470_v6 = vrot.slane %v4468_v61, 5  ;;  %v4475_v10 = vrot.slane %v4473_v1, 4  ;;  %v11288_v59 = vld [vmem:[%s18253_s0 + $0x7c] sm:$0xf] }
  0x1d   :  { %v4447_v8 = vsel %vm14081_vm3, %v4442_v63, %v4446_v51  ;;  %v4456_v9 = vrot.slane %v4455_v0, 4  ;;  %v4478_v11 = vrot.slane %v4476_v2, 5  ;;  %v4482_v16 = vshll.u32 %v11279_v57, 16  ;;  %v13836_v0 = vld [vmem:[%s18254_s1 + $0x88] sm:$0xff]  }
  0x1e   :  { %12486 = vmatmul.mubr.msk.bf16.gmra.mrb[8].mxu1 %vm273_vm0, %v13826_v20  ;;  %v11366_v14 = vcombine.low %v4437_v3, %v4447_v8  ;;  %v4465_v15 = vor.u32 %v4464_v5, %v4460_v4  ;;  %v4486_v17 = vshrl.u32 %v11279_v57, 16  ;;  %v4492_v22 = vshll.u32 %v11280_v62, 16  ;;  %v13837_v5 = vld [vmem:[%s18254_s1 + $0x20] sm:$0xff]   ;;  %12825 = vmatprep.subr.bf16.mxu0 %v13836_v0 }
  0x1f   :  { %12489 = vmatprep.mubr.msk.bf16.mxu1 %vm273_vm0, %v13827_v37  ;;  %v4461_v20 = vsel %vm14081_vm3, %v4456_v9, %v4460_v4  ;;  %v4479_v21 = vor.u32 %v4478_v11, %v4475_v10  ;;  %v4497_v23 = vshrl.u32 %v11281_v12, 16  ;;  %v4484_v25 = vrot.slane %v4482_v16, 5  ;;  %v11284_v37 = vld [vmem:[%s18253_s0 + $0x6c] sm:$0xf]  ;;  %v11289_v8 = vld [vmem:[%s18253_s0 + $0x80] sm:$0x1]  ;;  %12543 = vmatprep.subr.bf16.mxu1 %v13837_v5 }
  0x20   :  { %12765 = vmatprep.mubr.msk.bf16.mxu0 %vm273_vm0, %v11366_v14  ;;  %v4466_v24 = vrot.slane %v4465_v15, 4  ;;  %v4488_v26 = vrot.slane %v4486_v17, 4  ;;  %v4500_v27 = vshll.u32 %v11281_v12, 16  ;;  %v4494_v29 = vrot.slane %v4492_v22, 5  ;;  %v11290_v11 = vld [vmem:[%s18253_s0 + $0x84] sm:$0xf]  ;;  %12826 = vmatpush3.bf16.msra.mxu0 %v13836_v0 }
  0x21   :  { %v4480_v28 = vrot.slane %v4479_v21, 4  ;;  %v4499_v31 = vrot.slane %v4497_v23, 4  ;;  %v4506_v32 = vshll.u32 %v11282_v18, 16  ;;  %v4510_v36 = vshrl.u32 %v11282_v18, 16  ;;  %v11291_v16 = vld [vmem:[%s18253_s0 + $0x88] sm:$0xf]  ;;  %12544 = vmatpush3.bf16.msra.mxu1 %v13837_v5 }
  0x22   :  { %v4471_v33 = vsel %vm14081_vm3, %v4466_v24, %v4470_v6  ;;  %v4489_v34 = vor.u32 %v4488_v26, %v4484_v25  ;;  %v4502_v35 = vrot.slane %v4500_v27, 5  ;;  %v4516_v43 = vshll.u32 %v11283_v19, 16  ;;  %v13833_v21 = vld [vmem:[%s18253_s0 + $0x84] sm:$0xff]  }
  0x23   :  { %v11367_v40 = vcombine.low %v4461_v20, %v4471_v33  ;;  %v4485_v41 = vsel %vm14081_vm3, %v4480_v28, %v4484_v25  ;;  %v4508_v42 = vrot.slane %v4506_v32, 5  ;;  %v4512_v47 = vrot.slane %v4510_v36, 4  ;;  %v11293_v32 = vld [vmem:[%s18253_s0 + $0x90] sm:$0xf] }
  0x24   :  { %v4490_v45 = vrot.slane %v4489_v34, 4  ;;  %v4503_v46 = vor.u32 %v4502_v35, %v4499_v31  ;;  %v4521_v48 = vshrl.u32 %v11284_v37, 16  ;;  %v4518_v50 = vrot.slane %v4516_v43, 5  ;;  %v13834_v33 = vld [vmem:[%s18253_s0 + $0x90] sm:$0xff]  }
  0x25   :  { %12766 = vmatmul.mubr.msk.bf16.gmra.mrb[8].mxu0 %vm273_vm0, %v11367_v40  ;;  %v4524_v51 = vshll.u32 %v11284_v37, 16  ;;  %v4530_v52 = vshll.u32 %v11285_v38, 16  ;;  %v4534_v53 = vshrl.u32 %v11285_v38, 16  ;;  %v4513_v57 = vor.u32 %v4512_v47, %v4508_v42 }
  0x26   :  { %12490 = vmatmul.mubr.msk.bf16.gmra.mrb[12].mxu1 %vm273_vm0, %v13828_v7  ;;  %v4495_v55 = vsel %vm14081_vm3, %v4490_v45, %v4494_v29  ;;  %v4504_v56 = vrot.slane %v4503_v46, 4  ;;  %v4523_v58 = vrot.slane %v4521_v48, 4  ;;  %v4540_v3 = vshll.u32 %v11286_v44, 16  ;;  %v11292_v29 = vld [vmem:[%s18253_s0 + $0x8c] sm:$0x1] }
  0x27   :  { %12493 = vmatprep.mubr.msk.bf16.mxu1 %vm273_vm0, %v13830_v13  ;;  %v11368_v60 = vcombine.low %v4485_v41, %v4495_v55  ;;  %v4526_v61 = vrot.slane %v4524_v51, 5  ;;  %v4532_v62 = vrot.slane %v4530_v52, 5  ;;  %v4536_v63 = vrot.slane %v4534_v53, 4  ;;  %v11294_v44 = vld [vmem:[%s18253_s0 + $0x94] sm:$0xf] }
  0x28   :  { %v4509_v1 = vsel %vm14081_vm3, %v4504_v56, %v4508_v42  ;;  %v4514_v2 = vrot.slane %v4513_v57, 4  ;;  %v4545_v4 = vshrl.u32 %v11287_v54, 16  ;;  %v4548_v9 = vshll.u32 %v11287_v54, 16  ;;  %v11295_v51 = vld [vmem:[%s18253_s0 + $0x98] sm:$0x1] }
  0x29   :  { %12769 = vmatprep.mubr.msk.bf16.mxu0 %vm273_vm0, %v11368_v60  ;;  %v4527_v6 = vor.u32 %v4526_v61, %v4523_v58  ;;  %v4537_v7 = vor.u32 %v4536_v63, %v4532_v62  ;;  %v4554_v10 = vshll.u32 %v11288_v59, 16  ;;  %v4542_v13 = vrot.slane %v4540_v3, 5  ;;  %v11296_v52 = vld [vmem:[%s18253_s0 + $0x9c] sm:$0xf]  ;;  %v11297_v57 = vld [vmem:[%s18253_s0 + $0xa0] sm:$0xf] }
  0x2a   :  { %v4519_v12 = vsel %vm14081_vm3, %v4514_v2, %v4518_v50  ;;  %v4547_v14 = vrot.slane %v4545_v4, 4  ;;  %v4558_v15 = vshrl.u32 %v11288_v59, 16  ;;  %v4550_v20 = vrot.slane %v4548_v9, 5  ;;  %v13835_v3 = vld [vmem:[%s18253_s0 + $0x9c] sm:$0xff]   ;;  %v11299_v4 = vld [vmem:[%s18253_s0 + $0xa8] sm:$0xf] }
  0x2b   :  { %v11369_v17 = vcombine.low %v4509_v1, %v4519_v12  ;;  %v4528_v18 = vrot.slane %v4527_v6, 4  ;;  %v4538_v19 = vrot.slane %v4537_v7, 4  ;;  %v4556_v22 = vrot.slane %v4554_v10, 5  ;;  %v11300_v9 = vld [vmem:[%s18253_s0 + $0xac] sm:$0xf] }
  0x2c   :  { %v4560_v23 = vrot.slane %v4558_v15, 4  ;;  %v4564_v24 = vshll.u32 %v11289_v8, 16  ;;  %v4569_v25 = vshrl.u32 %v11290_v11, 16  ;;  %v4551_v28 = vor.u32 %v4550_v20, %v4547_v14  ;;  %v13838_v10 = vld [vmem:[%s18253_s0 + $0xa8] sm:$0xff]   ;;  %v14313_v20 = vld [vmem:[%s18254_s1 + $0x90] sm:$0xff]  }
  0x2d   :  { %12770 = vmatmul.mubr.msk.bf16.gmra.mrb[12].mxu0 %vm273_vm0, %v11369_v17  ;;  %v4533_v26 = vsel %vm14081_vm3, %v4528_v18, %v4532_v62  ;;  %v4543_v27 = vsel %vm14081_vm3, %v4538_v19, %v4542_v13  ;;  %v4572_v31 = vshll.u32 %v11290_v11, 16  ;;  %v4578_v40 = vshll.u32 %v11291_v16, 16  ;;  %v11298_v62 = vld [vmem:[%s18253_s0 + $0xa4] sm:$0x1]  ;;  %v11301_v19 = vld [vmem:[%s18253_s0 + $0xb0] sm:$0x1]  ;;  %12891 = vmatprep.subr.bf16.mxu0 %v14313_v20 }
  0x2e   :  { %12494 = vmatmul.mubr.msk.bf16.gmra.mrb[16].mxu1 %vm273_vm0, %v13831_v39  ;;  %v11370_v34 = vcombine.low %v4533_v26, %v4543_v27  ;;  %v4561_v35 = vor.u32 %v4560_v23, %v4556_v22  ;;  %v4566_v36 = vrot.slane %v4564_v24, 5  ;;  %v4571_v37 = vrot.slane %v4569_v25, 4 }
  0x2f   :  { %12497 = vmatprep.mubr.msk.bf16.mxu1 %vm273_vm0, %v13832_v49  ;;  %v4552_v38 = vrot.slane %v4551_v28, 4  ;;  %v4574_v39 = vrot.slane %v4572_v31, 5  ;;  %v4582_v41 = vshrl.u32 %v11291_v16, 16  ;;  %v4588_v43 = vshll.u32 %v11292_v29, 16 }
  0x30   :  { %12773 = vmatprep.mubr.msk.bf16.mxu0 %vm273_vm0, %v11370_v34  ;;  %v4562_v42 = vrot.slane %v4561_v35, 4  ;;  %v4593_v45 = vshrl.u32 %v11293_v32, 16  ;;  %v4596_v46 = vshll.u32 %v11293_v32, 16  ;;  %v4580_v49 = vrot.slane %v4578_v40, 5 }
  0x31   :  { %v4557_v47 = vsel %vm14081_vm3, %v4552_v38, %v4556_v22  ;;  %v4575_v48 = vor.u32 %v4574_v39, %v4571_v37  ;;  %v4584_v50 = vrot.slane %v4582_v41, 4  ;;  %v4590_v54 = vrot.slane %v4588_v43, 5  ;;  %v11302_v38 = vld [vmem:[%s18253_s0 + $0xb4] sm:$0xf] }
  0x32   :  { %v4567_v53 = vsel %vm14081_vm3, %v4562_v42, %v4566_v36  ;;  %v4595_v55 = vrot.slane %v4593_v45, 4  ;;  %v4598_v56 = vrot.slane %v4596_v46, 5  ;;  %v4602_v61 = vshll.u32 %v11294_v44, 16  ;;  %v13839_v39 = vld [vmem:[%s18253_s0 + $0xb4] sm:$0xff]  }
  0x33   :  { %v11371_v58 = vcombine.low %v4557_v47, %v4567_v53  ;;  %v4576_v59 = vrot.slane %v4575_v48, 4  ;;  %v4585_v60 = vor.u32 %v4584_v50, %v4580_v49  ;;  %v4606_v0 = vshrl.u32 %v11294_v44, 16  ;;  %v11303_v44 = vld [vmem:[%s18253_s0 + $0xb8] sm:$0xf]  ;;  %v11304_v50 = vld [vmem:[%s18253_s0 + $0xbc] sm:$0x1] }
  0x34   :  { %v4599_v63 = vor.u32 %v4598_v56, %v4595_v55  ;;  %v4612_v1 = vshll.u32 %v11295_v51, 16  ;;  %v4617_v2 = vshrl.u32 %v11296_v52, 16  ;;  %v4604_v7 = vrot.slane %v4602_v61, 5  ;;  %v13840_v45 = vld [vmem:[%s18253_s0 + $0xd8] sm:$0xff]   ;;  %v13849_v55 = vld [vmem:[%s18254_s1 + $0x28] sm:$0xff]  }
  0x35   :  { %12774 = vmatmul.mubr.msk.bf16.gmra.mrb[16].mxu0 %vm273_vm0, %v11371_v58  ;;  %v4581_v5 = vsel %vm14081_vm3, %v4576_v59, %v4580_v49  ;;  %v4586_v6 = vrot.slane %v4585_v60, 4  ;;  %v4620_v8 = vshll.u32 %v11296_v52, 16  ;;  %v4608_v12 = vrot.slane %v4606_v0, 4  ;;  %v11305_v60 = vld [vmem:[%s18253_s0 + $0xc0] sm:$0xf]  ;;  %12545 = vmatprep.subr.bf16.mxu1 %v13849_v55 }
  0x36   :  { %12498 = vmatmul.mubr.msk.bf16.gmra.mrb[20].mxu1 %vm273_vm0, %v13833_v21  ;;  %v4600_v11 = vrot.slane %v4599_v63, 4  ;;  %v4614_v13 = vrot.slane %v4612_v1, 5  ;;  %v4619_v14 = vrot.slane %v4617_v2, 4  ;;  %v4626_v17 = vshll.u32 %v11297_v57, 16  ;;  %v11306_v1 = vld [vmem:[%s18253_s0 + $0xc4] sm:$0xf] }
  0x37   :  { %12501 = vmatprep.mubr.msk.bf16.mxu1 %vm273_vm0, %v13834_v33  ;;  %v4591_v15 = vsel %vm14081_vm3, %v4586_v6, %v4590_v54  ;;  %v4622_v16 = vrot.slane %v4620_v8, 5  ;;  %v4630_v18 = vshrl.u32 %v11297_v57, 16  ;;  %v4609_v23 = vor.u32 %v4608_v12, %v4604_v7  ;;  %12546 = vmatpush3.bf16.msra.mxu1 %v13849_v55  ;;  %v11307_v8 = vld [vmem:[%s18253_s0 + $0xc8] sm:$0x1] }
  0x38   :  { %v11372_v21 = vcombine.low %v4581_v5, %v4591_v15  ;;  %v4605_v22 = vsel %vm14081_vm3, %v4600_v11, %v4604_v7  ;;  %v4636_v24 = vshll.u32 %v11298_v62, 16  ;;  %v4628_v26 = vrot.slane %v4626_v17, 5  ;;  %v13841_v11 = vld [vmem:[%s18253_s0 + $0xe4] sm:$0xff]  }
  0x39   :  { %v4623_v25 = vor.u32 %v4622_v16, %v4619_v14  ;;  %v4632_v27 = vrot.slane %v4630_v18, 4  ;;  %v4641_v28 = vshrl.u32 %v11299_v4, 16  ;;  %v4610_v29 = vrot.slane %v4609_v23, 4  ;;  %v11308_v16 = vld [vmem:[%s18253_s0 + $0xe4] sm:$0xf]  ;;  %v13842_v23 = vld [vmem:[%s18253_s0 + $0xf0] sm:$0xff]  }
  0x3a   :  { %12777 = vmatprep.mubr.msk.bf16.mxu0 %vm273_vm0, %v11372_v21  ;;  %v4638_v31 = vrot.slane %v4636_v24, 5  ;;  %v4644_v32 = vshll.u32 %v11299_v4, 16  ;;  %v4650_v33 = vshll.u32 %v11300_v9, 16  ;;  %v4654_v37 = vshrl.u32 %v11300_v9, 16  ;;  %v11309_v17 = vld [vmem:[%s18253_s0 + $0xe8] sm:$0xf] }
  0x3b   :  { %v4624_v34 = vrot.slane %v4623_v25, 4  ;;  %v4633_v35 = vor.u32 %v4632_v27, %v4628_v26  ;;  %v4643_v36 = vrot.slane %v4641_v28, 4  ;;  %v4615_v40 = vsel %vm14081_vm3, %v4610_v29, %v4614_v13 }
  0x3c   :  { %v4646_v41 = vrot.slane %v4644_v32, 5  ;;  %v4652_v42 = vrot.slane %v4650_v33, 5  ;;  %v4660_v43 = vshll.u32 %v11301_v19, 16  ;;  %v11373_v46 = vcombine.low %v4605_v22, %v4615_v40 }
  0x3d   :  { %v4629_v47 = vsel %vm14081_vm3, %v4624_v34, %v4628_v26  ;;  %v4634_v48 = vrot.slane %v4633_v35, 4  ;;  %v4656_v49 = vrot.slane %v4654_v37, 4  ;;  %v4665_v53 = vshrl.u32 %v11302_v38, 16  ;;  %v11311_v34 = vld [vmem:[%s18253_s0 + $0xf0] sm:$0xf] }
  0x3e   :  { %12502 = vmatmul.mubr.msk.bf16.gmra.mrb[24].mxu1 %vm273_vm0, %v13835_v3  ;;  %v4647_v51 = vor.u32 %v4646_v41, %v4643_v36  ;;  %v4662_v52 = vrot.slane %v4660_v43, 5  ;;  %v4668_v54 = vshll.u32 %v11302_v38, 16  ;;  %12778 = vmatmul.mubr.msk.bf16.gmra.mrb[20].mxu0 %vm273_vm0, %v11373_v46  ;;  %v4674_v58 = vshll.u32 %v11303_v44, 16 }
  0x3f   :  { %12505 = vmatprep.mubr.msk.bf16.mxu1 %vm273_vm0, %v13838_v10  ;;  %v4639_v56 = vsel %vm14081_vm3, %v4634_v48, %v4638_v31  ;;  %v4657_v57 = vor.u32 %v4656_v49, %v4652_v42  ;;  %v4678_v59 = vshrl.u32 %v11303_v44, 16  ;;  %v4667_v63 = vrot.slane %v4665_v53, 4  ;;  %v11310_v31 = vld [vmem:[%s18253_s0 + $0xec] sm:$0x1]  ;;  %v11429_v53 = vld [vmem:[%s18253_s0 + $0xc] sm:$0xe] }
  0x40   :  { %v11374_v61 = vcombine.low %v4629_v47, %v4639_v56  ;;  %v4648_v62 = vrot.slane %v4647_v51, 4  ;;  %v4670_v0 = vrot.slane %v4668_v54, 5  ;;  %v4676_v3 = vrot.slane %v4674_v58, 5  ;;  %v13843_v54 = vld [vmem:[%s18253_s0 + $0xfc] sm:$0xff]  }
  0x41   :  { %v4658_v2 = vrot.slane %v4657_v57, 4  ;;  %v4680_v4 = vrot.slane %v4678_v59, 4  ;;  %v4684_v5 = vshll.u32 %v11304_v50, 16  ;;  %v4689_v9 = vshrl.u32 %v11305_v60, 16  ;;  %v11313_v50 = vld [vmem:[%s18253_s0 + $0xf8] sm:$0x1] }
  0x42   :  { %12781 = vmatprep.mubr.msk.bf16.mxu0 %vm273_vm0, %v11374_v61  ;;  %v4653_v6 = vsel %vm14081_vm3, %v4648_v62, %v4652_v42  ;;  %v4671_v7 = vor.u32 %v4670_v0, %v4667_v63  ;;  %v4692_v10 = vshll.u32 %v11305_v60, 16  ;;  %v4698_v15 = vshll.u32 %v11306_v1, 16  ;;  %v11430_v59 = vld [vmem:[%s18253_s0 + $0x10] sm:$0xf]  ;;  %v13845_v60 = vld [vmem:[%s18253_s0 + $0x108] sm:$0xff]  }
  0x43   :  { %v4663_v12 = vsel %vm14081_vm3, %v4658_v2, %v4662_v52  ;;  %v4681_v13 = vor.u32 %v4680_v4, %v4676_v3  ;;  %v4686_v14 = vrot.slane %v4684_v5, 5  ;;  %v4691_v21 = vrot.slane %v4689_v9, 4  ;;  %v11431_v5 = vld [vmem:[%s18253_s0 + $0x14] sm:$0x1]  ;;  %v11432_v9 = vld [vmem:[%s18253_s0 + $0x18] sm:$0xe] }
  0x44   :  { %v11375_v18 = vcombine.low %v4653_v6, %v4663_v12  ;;  %v4672_v19 = vrot.slane %v4671_v7, 4  ;;  %v4694_v22 = vrot.slane %v4692_v10, 5  ;;  %v4700_v25 = vrot.slane %v4698_v15, 5  ;;  %v11433_v10 = vld [vmem:[%s18253_s0 + $0x1c] sm:$0xf] }
  0x45   :  { %v4682_v24 = vrot.slane %v4681_v13, 4  ;;  %v4702_v26 = vshrl.u32 %v11306_v1, 16  ;;  %v4708_v27 = vshll.u32 %v11307_v8, 16  ;;  %v4713_v32 = vshrl.u32 %v11308_v16, 16 }
  0x46   :  { %12506 = vmatmul.mubr.msk.bf16.gmra.mrb[28].mxu1 %vm273_vm0, %v13839_v39  ;;  %v4677_v28 = vsel %vm14081_vm3, %v4672_v19, %v4676_v3  ;;  %v4695_v29 = vor.u32 %v4694_v22, %v4691_v21  ;;  %v4716_v33 = vshll.u32 %v11308_v16, 16  ;;  %12782 = vmatmul.mubr.msk.bf16.gmra.mrb[24].mxu0 %vm273_vm0, %v11375_v18  ;;  %v4722_v38 = vshll.u32 %v11309_v17, 16  ;;  %v11312_v39 = vld [vmem:[%s18253_s0 + $0xf4] sm:$0xf] }
  0x47   :  { %12509 = vmatprep.mubr.msk.bf16.mxu1 %vm273_vm0, %v13840_v45  ;;  %v4687_v35 = vsel %vm14081_vm3, %v4682_v24, %v4686_v14  ;;  %v4704_v36 = vrot.slane %v4702_v26, 4  ;;  %v4710_v37 = vrot.slane %v4708_v27, 5  ;;  %v4715_v42 = vrot.slane %v4713_v32, 4  ;;  %v13846_v32 = vld [vmem:[%s18253_s0 + $0x114] sm:$0xff]  }
  0x48   :  { %v11376_v40 = vcombine.low %v4677_v28, %v4687_v35  ;;  %v4696_v41 = vrot.slane %v4695_v29, 4  ;;  %v4718_v43 = vrot.slane %v4716_v33, 5  ;;  %v4724_v45 = vrot.slane %v4722_v38, 5  ;;  %v11435_v29 = vld [vmem:[%s18253_s0 + $0x24] sm:$0xe] }
  0x49   :  { %v4705_v44 = vor.u32 %v4704_v36, %v4700_v25  ;;  %v4726_v46 = vshrl.u32 %v11309_v17, 16  ;;  %v4732_v47 = vshll.u32 %v11310_v31, 16  ;;  %v4737_v51 = vshrl.u32 %v11311_v34, 16  ;;  %v11436_v31 = vld [vmem:[%s18253_s0 + $0x28] sm:$0xf] }
  0x4a   :  { %12785 = vmatprep.mubr.msk.bf16.mxu0 %vm273_vm0, %v11376_v40  ;;  %v4701_v48 = vsel %vm14081_vm3, %v4696_v41, %v4700_v25  ;;  %v4719_v49 = vor.u32 %v4718_v43, %v4715_v42  ;;  %v4740_v52 = vshll.u32 %v11311_v34, 16  ;;  %v4746_v58 = vshll.u32 %v11312_v39, 16  ;;  %v11437_v36 = vld [vmem:[%s18253_s0 + $0x2c] sm:$0x1]  ;;  %v11438_v41 = vld [vmem:[%s18253_s0 + $0x30] sm:$0xe] }
  0x4b   :  { %v4706_v55 = vrot.slane %v4705_v44, 4  ;;  %v4728_v56 = vrot.slane %v4726_v46, 4  ;;  %v4734_v57 = vrot.slane %v4732_v47, 5  ;;  %v4739_v62 = vrot.slane %v4737_v51, 4  ;;  %v11439_v46 = vld [vmem:[%s18253_s0 + $0x34] sm:$0xf] }
  0x4c   :  { %v4720_v61 = vrot.slane %v4719_v49, 4  ;;  %v4742_v63 = vrot.slane %v4740_v52, 5  ;;  %v4750_v0 = vshrl.u32 %v11312_v39, 16  ;;  %v4748_v3 = vrot.slane %v4746_v58, 5  ;;  %v11440_v47 = vld [vmem:[%s18253_s0 + $0x38] sm:$0x1] }
  0x4d   :  { %v4711_v1 = vsel %vm14081_vm3, %v4706_v55, %v4710_v37  ;;  %v4729_v2 = vor.u32 %v4728_v56, %v4724_v45  ;;  %v4756_v4 = vshll.u32 %v11313_v50, 16  ;;  %v11525_v15 = vrot.slane %v11429_v53, 9  ;;  %v13847_v37 = vld [vmem:[%s18253_s0 + $0x120] sm:$0xff]   ;;  %v11441_v52 = vld [vmem:[%s18253_s0 + $0x3c] sm:$0xe] }
  0x4e   :  { %12510 = vmatmul.mubr.msk.bf16.gmra.mrb[32].mxu1 %vm273_vm0, %v13841_v11  ;;  %v11377_v6 = vcombine.low %v4701_v48, %v4711_v1  ;;  %v4743_v7 = vor.u32 %v4742_v63, %v4739_v62  ;;  %v4752_v8 = vrot.slane %v4750_v0, 4  ;;  %v11434_v11 = vld [vmem:[%s18253_s0 + $0x20] sm:$0x1]  ;;  %v4725_v12 = vsel %vm14081_vm3, %v4720_v61, %v4724_v45  ;;  %v11443_v53 = vld [vmem:[%s18253_s0 + $0x44] sm:$0x1]  ;;  %v13848_v62 = vld [vmem:[%s18253_s0 + $0x12c] sm:$0xff]  }
  0x4f   :  { %12513 = vmatprep.mubr.msk.bf16.mxu1 %vm273_vm0, %v13842_v23  ;;  %v4730_v13 = vrot.slane %v4729_v2, 4  ;;  %v5988_v16 = vrot.slane %v11430_v59, 5  ;;  %v4758_v19 = vrot.slane %v4756_v4, 5  ;;  %v5991_v21 = vrot.slane %v11431_v5, 5  ;;  %v11442_v51 = vld [vmem:[%s18253_s0 + $0x40] sm:$0xf] }
  0x50   :  { %12786 = vmatmul.mubr.msk.bf16.gmra.mrb[28].mxu0 %vm273_vm0, %v11377_v6  ;;  %v4744_v17 = vrot.slane %v4743_v7, 4  ;;  %v4753_v18 = vor.u32 %v4752_v8, %v4748_v3  ;;  %v5995_v24 = vrot.slane %v11433_v10, 5  ;;  %v11526_v34 = vrot.slane %v11432_v9, 9  ;;  %v14488_v58 = vld [vmem:[%s18253_s0 + $0x48] sm:$0xe]  ;;  %v14508_v1 = vld [vmem:[%s18254_s1 + $0x30] sm:$0xff]  }
  0x51   :  { %v4735_v22 = vsel %vm14081_vm3, %v4730_v13, %v4734_v57  ;;  %v5990_v23 = vrot.slane %v5988_v16, 4  ;;  %v5989_v28 = vsel %vm14426_vm6, %v11525_v15, %v5988_v16  ;;  %v5998_v35 = vrot.slane %v11434_v11, 5  ;;  %v11445_v63 = vld [vmem:[%s18253_s0 + $0x4c] sm:$0xf]  ;;  %v14503_v0 = vld [vmem:[%s18253_s0 + $0x50] sm:$0x1]  ;;  %12611 = vmatprep.subr.bf16.mxu1 %v14508_v1 }
  0x52   :  { %v11378_v25 = vcombine.low %v4725_v12, %v4735_v22  ;;  %v4749_v26 = vsel %vm14081_vm3, %v4744_v17, %v4748_v3  ;;  %v4754_v27 = vrot.slane %v4753_v18, 4  ;;  %v5997_v39 = vrot.slane %v5995_v24, 4  ;;  %v13850_v7 = vld [vmem:[%s18253_s0 + $0x138] sm:$0xff]   ;;  %v11447_v12 = vld [vmem:[%s18253_s0 + $0x54] sm:$0xe] }
  0x53   :  { %v5992_v33 = vsel %vm14426_vm6, %v5990_v23, %v5991_v21  ;;  %v6002_v40 = vrot.slane %v11436_v31, 5  ;;  %v11527_v44 = vrot.slane %v11435_v29, 9  ;;  %v6005_v45 = vrot.slane %v11437_v36, 5  ;;  %v13856_v8 = vld [vmem:[%s18254_s1 + $0x98] sm:$0xff]   ;;  %v11450_v21 = vld [vmem:[%s18253_s0 + $0x60] sm:$0xe] }
  0x54   :  { %12789 = vmatprep.mubr.msk.bf16.mxu0 %vm273_vm0, %v11378_v25  ;;  %v4759_v38 = vsel %vm14081_vm3, %v4754_v27, %v4758_v19  ;;  %v11563_v43 = vcombine.low %v5989_v28, %v5992_v33  ;;  %v6009_v49 = vrot.slane %v11439_v46, 5  ;;  %v11528_v50 = vrot.slane %v11438_v41, 9  ;;  %v11448_v13 = vld [vmem:[%s18253_s0 + $0x58] sm:$0xf]  ;;  %v11449_v16 = vld [vmem:[%s18253_s0 + $0x5c] sm:$0x1] }
  0x55   :  { %v11379_v42 = vcombine.low %v4749_v26, %v4759_v38  ;;  %v6004_v48 = vrot.slane %v6002_v40, 4  ;;  %v5999_v55 = vsel %vm14426_vm6, %v5997_v39, %v5998_v35  ;;  %v6012_v56 = vrot.slane %v11440_v47, 5  ;;  %v11451_v23 = vld [vmem:[%s18253_s0 + $0x64] sm:$0xf]  ;;  %v11454_v35 = vld [vmem:[%s18253_s0 + $0x70] sm:$0xf] }
  0x56   :  { %12514 = vmatmul.mubr.msk.bf16.gmra.mrb[36].mxu1 %vm273_vm0, %v13843_v54  ;;  %v5996_v54 = vsel %vm14426_vm6, %v11526_v34, %v5995_v24  ;;  %v6016_v57 = vrot.slane %v11442_v51, 5  ;;  %v6003_v59 = vsel %vm14426_vm6, %v11527_v44, %v6002_v40  ;;  %v6011_v61 = vrot.slane %v6009_v49, 4  ;;  %v11452_v24 = vld [vmem:[%s18253_s0 + $0x68] sm:$0x1]  ;;  %v13860_v26 = vld [vmem:[%s18254_s1 + $0xa0] sm:$0xff]   ;;  %v13852_v38 = vld [vmem:[%s18253_s0 + $0x150] sm:$0xff]  }
  0x57   :  { %12517 = vmatprep.mubr.msk.bf16.mxu1 %vm273_vm0, %v13845_v60  ;;  %v6006_v60 = vsel %vm14426_vm6, %v6004_v48, %v6005_v45  ;;  %v11529_v2 = vrot.slane %v11441_v52, 9  ;;  %v6023_v3 = vrot.slane %v11445_v63, 5  ;;  %v11564_v4 = vcombine.low %v5996_v54, %v5999_v55  ;;  %v11453_v34 = vld [vmem:[%s18253_s0 + $0x6c] sm:$0xe]  ;;  %v11455_v36 = vld [vmem:[%s18253_s0 + $0x74] sm:$0x1] }
  0x58   :  { %12790 = vmatmul.mubr.msk.bf16.gmra.mrb[32].mxu0 %vm273_vm0, %v11379_v42  ;;  %v6019_v5 = vrot.slane %v11443_v53, 5  ;;  %v11530_v6 = vrot.slane %v14488_v58, 9  ;;  %v11565_v9 = vcombine.low %v6003_v59, %v6006_v60  ;;  %v6018_v10 = vrot.slane %v6016_v57, 4  ;;  %v11457_v44 = vld [vmem:[%s18253_s0 + $0x7c] sm:$0xf] }
  0x59   :  { %12827 = vmatprep.mubr.msk.bf16.mxu0 %vm273_vm0, %v11563_v43  ;;  %v6026_v11 = vrot.slane %v14503_v0, 5  ;;  %v6025_v15 = vrot.slane %v6023_v3, 4  ;;  %v6030_v17 = vrot.slane %v11448_v13, 5  ;;  %v11531_v18 = vrot.slane %v11447_v12, 9  ;;  %v11456_v43 = vld [vmem:[%s18253_s0 + $0x78] sm:$0xe] }
  0x5a   :  { %v6033_v19 = vrot.slane %v11449_v16, 5  ;;  %v11532_v25 = vrot.slane %v11450_v21, 9  ;;  %v6010_v27 = vsel %vm14426_vm6, %v11528_v50, %v6009_v49  ;;  %v6013_v28 = vsel %vm14426_vm6, %v6011_v61, %v6012_v56  ;;  %v11458_v46 = vld [vmem:[%s18253_s0 + $0x80] sm:$0x1]  ;;  %v11459_v51 = vld [vmem:[%s18253_s0 + $0x84] sm:$0xe] }
  0x5b   :  { %v6032_v22 = vrot.slane %v6030_v17, 4  ;;  %v6037_v29 = vrot.slane %v11451_v23, 5  ;;  %v6040_v31 = vrot.slane %v11452_v24, 5  ;;  %v6020_v33 = vsel %vm14426_vm6, %v6018_v10, %v6019_v5  ;;  %v11460_v54 = vld [vmem:[%s18253_s0 + $0x88] sm:$0xf]  ;;  %v13853_v5 = vld [vmem:[%s18253_s0 + $0x15c] sm:$0xff]  }
  0x5c   :  { %v11533_v39 = vrot.slane %v11453_v34, 9  ;;  %v11566_v40 = vcombine.low %v6010_v27, %v6013_v28  ;;  %v6044_v41 = vrot.slane %v11454_v35, 5  ;;  %v6047_v42 = vrot.slane %v11455_v36, 5  ;;  %v11461_v55 = vld [vmem:[%s18253_s0 + $0x8c] sm:$0x1] }
  0x5d   :  { %v11534_v47 = vrot.slane %v11456_v43, 9  ;;  %v6051_v48 = vrot.slane %v11457_v44, 5  ;;  %v6054_v50 = vrot.slane %v11458_v46, 5  ;;  %v6024_v52 = vsel %vm14426_vm6, %v11530_v6, %v6023_v3  ;;  %v11462_v0 = vld [vmem:[%s18253_s0 + $0x90] sm:$0xe] }
  0x5e   :  { %12518 = vmatmul.mubr.msk.bf16.gmra.mrb[40].mxu1 %vm273_vm0, %v13846_v32  ;;  %v6017_v32 = vsel %vm14426_vm6, %v11529_v2, %v6016_v57  ;;  %v6046_v49 = vrot.slane %v6044_v41, 4  ;;  %v11535_v56 = vrot.slane %v11459_v51, 9  ;;  %v6027_v57 = vsel %vm14426_vm6, %v6025_v15, %v6026_v11  ;;  %v11463_v2 = vld [vmem:[%s18253_s0 + $0x94] sm:$0xf]  ;;  %v11464_v3 = vld [vmem:[%s18253_s0 + $0x98] sm:$0x1] }
  0x5f   :  { %12521 = vmatprep.mubr.msk.bf16.mxu1 %vm273_vm0, %v13847_v37  ;;  %v6039_v37 = vrot.slane %v6037_v29, 4  ;;  %v11567_v45 = vcombine.low %v6017_v32, %v6020_v33  ;;  %v6053_v53 = vrot.slane %v6051_v48, 4  ;;  %v6031_v58 = vsel %vm14426_vm6, %v11531_v18, %v6030_v17  ;;  %v13854_v11 = vld [vmem:[%s18253_s0 + $0x168] sm:$0xff]   ;;  %v11466_v21 = vld [vmem:[%s18253_s0 + $0xa0] sm:$0xf] }
  0x60   :  { %12828 = vmatmul.mubr.msk.bf16.vlgmr.msra.gmra.mrb[0].mxu0 %vm273_vm0, %v11564_v4  ;;  %v6058_v59 = vrot.slane %v11460_v54, 5  ;;  %v6061_v60 = vrot.slane %v11461_v55, 5  ;;  %v6034_v61 = vsel %vm14426_vm6, %v6032_v22, %v6033_v19  ;;  %v14617_v4 = vsel %vm14426_vm6, %v11533_v39, %v6044_v41  ;;  %v11465_v19 = vld [vmem:[%s18253_s0 + $0x9c] sm:$0xe]  ;;  %v11467_v22 = vld [vmem:[%s18253_s0 + $0xa4] sm:$0x1] }
  0x61   :  { %12892 = vmatpush3.bf16.msra.mxu0 %v14313_v20  ;;  %12831 = vmatprep.mubr.msk.bf16.mxu0 %vm273_vm0, %v11565_v9  ;;  %v13851_v20 = vld [vmem:[%s18253_s0 + $0x144] sm:$0xff]   ;;  %v14603_v63 = vsel %vm14426_vm6, %v6039_v37, %v6040_v31  ;;  %v14624_v6 = vsel %vm14426_vm6, %v11534_v47, %v6051_v48  ;;  %v14628_v9 = vsel %vm14426_vm6, %v6046_v49, %v6047_v42  ;;  %v6065_v12 = vrot.slane %v11463_v2, 5  ;;  %v11469_v33 = vld [vmem:[%s18253_s0 + $0xac] sm:$0xf]  ;;  %v11470_v35 = vld [vmem:[%s18253_s0 + $0xb0] sm:$0x1] }
  0x62   :  { %12893 = vmatprep.subr.bf16.mxu0 %v13856_v8  ;;  %v14632_v10 = vsel %vm14426_vm6, %v6053_v53, %v6054_v50  ;;  %v6068_v13 = vrot.slane %v11464_v3, 5  ;;  %v11568_v15 = vcombine.low %v6024_v52, %v6027_v57  ;;  %v11569_v16 = vcombine.low %v6031_v58, %v6034_v61  ;;  %v11468_v32 = vld [vmem:[%s18253_s0 + $0xa8] sm:$0xe]  ;;  %v724_v43 = vld [vmem:[%s18253_s0 + $0x4] sm:$0xf]  ;;  %v13855_v50 = vld [vmem:[%s18253_s0 + $0x174] sm:$0xff]  }
  0x63   :  { %v14639_v17 = vsel %vm14426_vm6, %v11535_v56, %v6058_v59  ;;  %v11571_v27 = vcombine.low %v14617_v4, %v14628_v9  ;;  %v11572_v28 = vcombine.low %v14624_v6, %v14632_v10  ;;  %v6075_v31 = vrot.slane %v11467_v22, 5  ;;  %v725_v44 = vld [vmem:[%s18253_s0 + $0x8] sm:$0x1]  ;;  %v11471_v49 = vld [vmem:[%s18253_s0 + $0xb4] sm:$0xe] }
  0x64   :  { %v11538_v36 = vrot.slane %v11468_v32, 9  ;;  %v6079_v37 = vrot.slane %v11469_v33, 5  ;;  %v6082_v42 = vrot.slane %v11470_v35, 5  ;;  %v832_v52 = vshll.u32 %v724_v43, 16  ;;  %v11472_v55 = vld [vmem:[%s18253_s0 + $0xb8] sm:$0xf] }
  0x65   :  { %12894 = vmatpush3.bf16.msra.mxu0 %v13856_v8  ;;  %v11536_v8 = vrot.slane %v11462_v0, 9  ;;  %v836_v53 = vshrl.u32 %v724_v43, 16  ;;  %v842_v54 = vshll.u32 %v725_v44, 16  ;;  %v726_v61 = vld [vmem:[%s18253_s0 + $0xc] sm:$0xf] }
  0x66   :  { %12522 = vmatmul.mubr.msk.bf16.gmra.mrb[44].mxu1 %vm273_vm0, %v13848_v62  ;;  %12895 = vmatprep.subr.bf16.mxu0 %v13860_v26  ;;  %v14599_v62 = vsel %vm14426_vm6, %v11532_v25, %v6037_v29  ;;  %v6067_v25 = vrot.slane %v6065_v12, 4  ;;  %v6072_v29 = vrot.slane %v11466_v21, 5  ;;  %v6081_v46 = vrot.slane %v6079_v37, 4  ;;  %v728_v21 = vld [vmem:[%s18253_s0 + $0x14] sm:$0x1] }
  0x67   :  { %12525 = vmatprep.mubr.msk.bf16.mxu1 %vm273_vm0, %v13850_v7  ;;  %v6060_v7 = vrot.slane %v6058_v59, 4  ;;  %v11570_v23 = vcombine.low %v14599_v62, %v14603_v63  ;;  %v14658_v24 = vsel %vm14426_vm6, %v11536_v8, %v6065_v12  ;;  %v834_v2 = vrot.slane %v832_v52, 5  ;;  %v13864_v8 = vld [vmem:[%s18254_s1 + $0xa8] sm:$0xff]   ;;  %v11474_v35 = vld [vmem:[%s18253_s0 + $0xc0] sm:$0xe] }
  0x68   :  { %12832 = vmatmul.mubr.msk.bf16.gmra.mrb[4].mxu0 %vm273_vm0, %v11566_v40  ;;  %v14674_v34 = vsel %vm14426_vm6, %v6067_v25, %v6068_v13  ;;  %v6074_v41 = vrot.slane %v6072_v29, 4  ;;  %v14719_v57 = vsel %vm14426_vm6, %v6081_v46, %v6082_v42  ;;  %v838_v3 = vrot.slane %v836_v53, 4  ;;  %v11475_v42 = vld [vmem:[%s18253_s0 + $0xc4] sm:$0xf]  ;;  %v11476_v44 = vld [vmem:[%s18253_s0 + $0xc8] sm:$0x1] }
  0x69   :  { %12835 = vmatprep.mubr.msk.bf16.mxu0 %vm273_vm0, %v11567_v45  ;;  %12896 = vmatpush3.bf16.msra.mxu0 %v13860_v26  ;;  %v14643_v18 = vsel %vm14426_vm6, %v6060_v7, %v6061_v60  ;;  %v11537_v26 = vrot.slane %v11465_v19, 9  ;;  %v11574_v39 = vcombine.low %v14658_v24, %v14674_v34  ;;  %v14700_v45 = vsel %vm14426_vm6, %v11538_v36, %v6079_v37  ;;  %v11473_v60 = vld [vmem:[%s18253_s0 + $0xbc] sm:$0x1]  ;;  %v727_v7 = vld [vmem:[%s18253_s0 + $0x10] sm:$0xf] }
  0x6a   :  { %v14710_v51 = vsel %vm14426_vm6, %v6074_v41, %v6075_v31  ;;  %v11576_v0 = vcombine.low %v14700_v45, %v14719_v57  ;;  %v11539_v13 = vrot.slane %v11471_v49, 9  ;;  %v839_v19 = vor.u32 %v838_v3, %v834_v2  ;;  %12961 = vmatprep.subr.bf16.mxu0 %v13864_v8  ;;  %v729_v4 = vld [vmem:[%s18253_s0 + $0x18] sm:$0xf]  ;;  %v13858_v49 = vld [vmem:[%s18253_s0 + $0x18c] sm:$0xff]   ;;  %v11478_v3 = vld [vmem:[%s18253_s0 + $0xe8] sm:$0xf] }
  0x6b   :  { %v14688_v40 = vsel %vm14426_vm6, %v11537_v26, %v6072_v29  ;;  %v847_v22 = vshrl.u32 %v726_v61, 16  ;;  %v850_v25 = vshll.u32 %v726_v61, 16  ;;  %v856_v26 = vshll.u32 %v727_v7, 16 }
  0x6c   :  { %v11575_v56 = vcombine.low %v14688_v40, %v14710_v51  ;;  %v860_v33 = vshrl.u32 %v727_v7, 16  ;;  %v840_v36 = vrot.slane %v839_v19, 4  ;;  %v866_v43 = vshll.u32 %v728_v21, 16  ;;  %v732_v21 = vld [vmem:[%s18253_s0 + $0x24] sm:$0xf] }
  0x6d   :  { %v849_v37 = vrot.slane %v847_v22, 4  ;;  %v858_v41 = vrot.slane %v856_v26, 5  ;;  %v874_v61 = vshll.u32 %v729_v4, 16 }
  0x6e   :  { %12526 = vmatmul.mubr.msk.bf16.gmra.mrb[48].mxu1 %vm273_vm0, %v13851_v20  ;;  %v11573_v20 = vcombine.low %v14639_v17, %v14643_v18  ;;  %v868_v53 = vrot.slane %v866_v43, 5  ;;  %v898_v43 = vshll.u32 %v732_v21, 16  ;;  %v11480_v17 = vld [vmem:[%s18253_s0 + $0xf0] sm:$0xe] }
  0x6f   :  { %12529 = vmatprep.mubr.msk.bf16.mxu1 %vm273_vm0, %v13852_v38  ;;  %v723_v38 = vld [vmem:[%s18253_s0] sm:$0xf] }
  0x70   :  { %12836 = vmatmul.mubr.msk.bf16.gmra.mrb[8].mxu0 %vm273_vm0, %v11568_v15  ;;  %v823_v47 = vshrl.u32 %v723_v38, 16  ;;  %v826_v48 = vshll.u32 %v723_v38, 16  ;;  %v6086_v15 = vrot.slane %v11472_v55, 5  ;;  %v852_v38 = vrot.slane %v850_v25, 5  ;;  %v731_v55 = vld [vmem:[%s18253_s0 + $0x20] sm:$0x1] }
  0x71   :  { %12839 = vmatprep.mubr.msk.bf16.mxu0 %vm273_vm0, %v11569_v16  ;;  %v6089_v16 = vrot.slane %v11473_v60, 5  ;;  %v871_v60 = vshrl.u32 %v729_v4, 16 }
  0x72   :  { %v825_v58 = vrot.slane %v823_v47, 4  ;;  %v828_v59 = vrot.slane %v826_v48, 5  ;;  %v14743_v31 = vsel %vm14426_vm6, %v11539_v13, %v6086_v15  ;;  %v6088_v32 = vrot.slane %v6086_v15, 4  ;;  %v730_v48 = vld [vmem:[%s18253_s0 + $0x1c] sm:$0xf] }
  0x73   :  { %v853_v46 = vor.u32 %v852_v38, %v849_v37  ;;  %v11540_v47 = vrot.slane %v11474_v35, 9  ;;  %v873_v15 = vrot.slane %v871_v60, 4  ;;  %v884_v19 = vshrl.u32 %v730_v48, 16  ;;  %v733_v37 = vld [vmem:[%s18253_s0 + $0x28] sm:$0xf] }
  0x74   :  { %v829_v12 = vor.u32 %v828_v59, %v825_v58  ;;  %v14765_v63 = vsel %vm14426_vm6, %v6088_v32, %v6089_v16  ;;  %v6096_v59 = vrot.slane %v11476_v44, 5  ;;  %v876_v16 = vrot.slane %v874_v61, 5 }
  0x75   :  { %v854_v58 = vrot.slane %v853_v46, 4  ;;  %v904_v44 = vshll.u32 %v733_v37, 16  ;;  %v908_v4 = vshrl.u32 %v733_v37, 16 }
  0x76   :  { %12530 = vmatmul.mubr.msk.bf16.gmra.mrb[52].mxu1 %vm273_vm0, %v13853_v5  ;;  %v844_v5 = vrot.slane %v842_v54, 5  ;;  %v830_v29 = vrot.slane %v829_v12, 4  ;;  %v6093_v54 = vrot.slane %v11475_v42, 5  ;;  %v11479_v12 = vld [vmem:[%s18253_s0 + $0xec] sm:$0x1]  ;;  %v877_v35 = vor.u32 %v876_v16, %v873_v15  ;;  %v13861_v15 = vld [vmem:[%s18254_s1 + $0x38] sm:$0xff]  }
  0x77   :  { %12533 = vmatprep.mubr.msk.bf16.mxu1 %vm273_vm0, %v13854_v11  ;;  %v13857_v11 = vld [vmem:[%s18253_s0 + $0x180] sm:$0xff]   ;;  %v859_v13 = vsel %vm14081_vm3, %v854_v58, %v858_v41  ;;  %v6103_v38 = vrot.slane %v11479_v12, 5  ;;  %v735_v58 = vld [vmem:[%s18253_s0 + $0x30] sm:$0xf] }
  0x78   :  { %12840 = vmatmul.mubr.msk.bf16.gmra.mrb[12].mxu0 %vm273_vm0, %v11570_v23  ;;  %v835_v62 = vsel %vm14081_vm3, %v830_v29, %v834_v2  ;;  %v862_v23 = vrot.slane %v860_v33, 4  ;;  %v845_v9 = vsel %vm14081_vm3, %v840_v36, %v844_v5  ;;  %v11477_v2 = vld [vmem:[%s18253_s0 + $0xe4] sm:$0xe]  ;;  %v14794_v7 = vsel %vm14426_vm6, %v11540_v47, %v6093_v54 }
  0x79   :  { %12843 = vmatprep.mubr.msk.bf16.mxu0 %vm273_vm0, %v11571_v27  ;;  %v11577_v27 = vcombine.low %v14743_v31, %v14765_v63  ;;  %v6095_v8 = vrot.slane %v6093_v54, 4  ;;  %v890_v29 = vshll.u32 %v731_v55, 16  ;;  %v886_v36 = vrot.slane %v884_v19, 4 }
  0x7a   :  { %v863_v52 = vor.u32 %v862_v23, %v858_v41  ;;  %v11541_v10 = vrot.slane %v11477_v2, 9  ;;  %v734_v41 = vld [vmem:[%s18253_s0 + $0x2c] sm:$0x1]  ;;  %v878_v42 = vrot.slane %v877_v35, 4  ;;  %v895_v23 = vshrl.u32 %v732_v21, 16 }
  0x7b   :  { %v14808_v25 = vsel %vm14426_vm6, %v6095_v8, %v6096_v59  ;;  %v892_v6 = vrot.slane %v890_v29, 5  ;;  %v910_v54 = vrot.slane %v908_v4, 4  ;;  %v914_v55 = vshll.u32 %v734_v41, 16 }
  0x7c   :  { %v864_v5 = vrot.slane %v863_v52, 4  ;;  %v11578_v33 = vcombine.low %v14794_v7, %v14808_v25  ;;  %v11542_v2 = vrot.slane %v11480_v17, 9  ;;  %v919_v21 = vshrl.u32 %v735_v58, 16 }
  0x7e   :  { %12534 = vmatmul.mubr.msk.bf16.gmra.mrb[56].mxu1 %vm273_vm0, %v13855_v50  ;;  %v10951_v50 = vcombine.low %v835_v62, %v845_v9  ;;  %v869_v22 = vsel %vm14081_vm3, %v864_v5, %v868_v53  ;;  %v11481_v9 = vld [vmem:[%s18253_s0 + $0xf4] sm:$0xf]  ;;  %v906_v53 = vrot.slane %v904_v44, 5  ;;  %v921_v40 = vrot.slane %v919_v21, 4 }
  0x7f   :  { %12537 = vmatprep.mubr.msk.bf16.mxu1 %vm273_vm0, %v13857_v11  ;;  %v880_v11 = vshll.u32 %v730_v48, 16  ;;  %v10952_v32 = vcombine.low %v859_v13, %v869_v22  ;;  %v897_v48 = vrot.slane %v895_v23, 4  ;;  %v6107_v12 = vrot.slane %v11481_v9, 5  ;;  %v737_v13 = vld [vmem:[%s18253_s0 + $0x38] sm:$0x1] }
  0x80   :  { %12844 = vmatmul.mubr.msk.bf16.gmra.mrb[16].mxu0 %vm273_vm0, %v11572_v28  ;;  %v6100_v28 = vrot.slane %v11478_v3, 5  ;;  %v736_v3 = vld [vmem:[%s18253_s0 + $0x34] sm:$0xf]  ;;  %v911_v8 = vor.u32 %v910_v54, %v906_v53  ;;  %v922_v22 = vshll.u32 %v735_v58, 16  ;;  %v740_v9 = vld [vmem:[%s18253_s0 + $0x44] sm:$0x1] }
  0x81   :  { %v882_v26 = vrot.slane %v880_v11, 5  ;;  %12847 = vmatprep.mubr.msk.bf16.mxu0 %vm273_vm0, %v11573_v20  ;;  %v916_v11 = vrot.slane %v914_v55, 5  ;;  %v14878_v34 = vsel %vm14426_vm6, %v11542_v2, %v6107_v12  ;;  %v928_v29 = vshll.u32 %v736_v3, 16 }
  0x82   :  { %v14833_v18 = vsel %vm14426_vm6, %v11541_v10, %v6100_v28  ;;  %v6102_v20 = vrot.slane %v6100_v28, 4  ;;  %v912_v24 = vrot.slane %v911_v8, 4  ;;  %v924_v51 = vrot.slane %v922_v22, 5  ;;  %v11488_v8 = vld [vmem:[%s18253_s0 + $0x110] sm:$0x1] }
  0x83   :  { %v887_v62 = vor.u32 %v886_v36, %v882_v26  ;;  %v883_v46 = vsel %vm14081_vm3, %v878_v42, %v882_v26  ;;  %v11483_v26 = vld [vmem:[%s18253_s0 + $0xfc] sm:$0xe]  ;;  %v11485_v36 = vld [vmem:[%s18253_s0 + $0x104] sm:$0x1]  ;;  %v930_v10 = vrot.slane %v928_v29, 5  ;;  %v938_v28 = vshll.u32 %v737_v13, 16 }
  0x84   :  { %v14845_v52 = vsel %vm14426_vm6, %v6102_v20, %v6103_v38  ;;  %v917_v37 = vsel %vm14081_vm3, %v912_v24, %v916_v11  ;;  %v13869_v38 = vld [vmem:[%s18254_s1 + $0x40] sm:$0xff]   ;;  %v11543_v20 = vrot.slane %v11483_v26, 9  ;;  %v6117_v4 = vrot.slane %v11485_v36, 5  ;;  %v743_v26 = vld [vmem:[%s18253_s0 + $0x50] sm:$0x1] }
  0x85   :  { %v888_v47 = vrot.slane %v887_v62, 4  ;;  %v11579_v60 = vcombine.low %v14833_v18, %v14845_v52  ;;  %v925_v62 = vor.u32 %v924_v51, %v921_v40  ;;  %v940_v17 = vrot.slane %v938_v28, 5  ;;  %v11490_v40 = vld [vmem:[%s18253_s0 + $0x118] sm:$0xf]  ;;  %v11492_v18 = vld [vmem:[%s18253_s0 + $0x120] sm:$0xe] }
  0x86   :  { %12538 = vmatmul.mubr.msk.bf16.gmra.mrb[60].mxu1 %vm273_vm0, %v13858_v49  ;;  %v900_v49 = vrot.slane %v898_v43, 5  ;;  %v739_v43 = vld [vmem:[%s18253_s0 + $0x40] sm:$0xf]  ;;  %v962_v11 = vshll.u32 %v740_v9, 16  ;;  %v6128_v7 = vrot.slane %v11490_v40, 5 }
  0x87   :  { %12547 = vmatprep.mubr.msk.bf16.mxu1 %vm273_vm0, %v10951_v50  ;;  %v11482_v50 = vld [vmem:[%s18253_s0 + $0xf8] sm:$0x1]  ;;  %v893_v59 = vsel %vm14081_vm3, %v888_v47, %v892_v6  ;;  %v952_v55 = vshll.u32 %v739_v43, 16  ;;  %v956_v58 = vshrl.u32 %v739_v43, 16 }
  0x88   :  { %v901_v61 = vor.u32 %v900_v49, %v897_v48  ;;  %v10953_v5 = vcombine.low %v883_v46, %v893_v59  ;;  %12848 = vmatmul.mubr.msk.bf16.gmra.mrb[20].mxu0 %vm273_vm0, %v11574_v39  ;;  %v6110_v19 = vrot.slane %v11482_v50, 5  ;;  %v6109_v39 = vrot.slane %v6107_v12, 4  ;;  %v11486_v50 = vld [vmem:[%s18253_s0 + $0x108] sm:$0xe]  ;;  %v11487_v59 = vld [vmem:[%s18253_s0 + $0x10c] sm:$0xf] }
  0x89   :  { %12851 = vmatprep.mubr.msk.bf16.mxu0 %vm273_vm0, %v11575_v56  ;;  %v932_v56 = vshrl.u32 %v736_v3, 16  ;;  %v926_v46 = vrot.slane %v925_v62, 4  ;;  %v954_v57 = vrot.slane %v952_v55, 5  ;;  %v741_v12 = vld [vmem:[%s18253_s0 + $0x48] sm:$0xf]  ;;  %v11544_v63 = vrot.slane %v11486_v50, 9 }
  0x8a   :  { %v902_v16 = vrot.slane %v901_v61, 4  ;;  %v14893_v6 = vsel %vm14426_vm6, %v6109_v39, %v6110_v19  ;;  %v964_v21 = vrot.slane %v962_v11, 5  ;;  %v6121_v22 = vrot.slane %v11487_v59, 5 }
  0x8b   :  { %v11580_v42 = vcombine.low %v14878_v34, %v14893_v6  ;;  %v934_v23 = vrot.slane %v932_v56, 4  ;;  %v931_v61 = vsel %vm14081_vm3, %v926_v46, %v930_v10  ;;  %v6124_v39 = vrot.slane %v11488_v8, 5 }
  0x8c   :  { %v907_v35 = vsel %vm14081_vm3, %v902_v16, %v906_v53  ;;  %v967_v29 = vshrl.u32 %v741_v12, 16  ;;  %v14959_v56 = vsel %vm14426_vm6, %v11544_v63, %v6121_v22  ;;  %v6123_v36 = vrot.slane %v6121_v22, 4  ;;  %v747_v63 = vld [vmem:[%s18253_s0 + $0x60] sm:$0xf]  ;;  %v748_v22 = vld [vmem:[%s18253_s0 + $0x64] sm:$0xf] }
  0x8d   :  { %v10954_v41 = vcombine.low %v907_v35, %v917_v37  ;;  %v935_v47 = vor.u32 %v934_v23, %v930_v10  ;;  %v11489_v35 = vld [vmem:[%s18253_s0 + $0x114] sm:$0xe] }
  0x8e   :  { %12548 = vmatmul.mubr.msk.bf16.vlgmr.msra.gmra.mrb[0].mxu1 %vm273_vm0, %v10952_v32  ;;  %v11484_v32 = vld [vmem:[%s18253_s0 + $0x100] sm:$0xf]  ;;  %v969_v28 = vrot.slane %v967_v29, 4  ;;  %v14970_v23 = vsel %vm14426_vm6, %v6123_v36, %v6124_v39  ;;  %v1018_v36 = vshll.u32 %v747_v63, 16 }
  0x8f   :  { %12551 = vmatprep.mubr.msk.bf16.mxu1 %vm273_vm0, %v10953_v5  ;;  %12612 = vmatpush3.bf16.msra.mxu1 %v14508_v1  ;;  %v738_v1 = vld [vmem:[%s18253_s0 + $0x3c] sm:$0xf]  ;;  %v6114_v44 = vrot.slane %v11484_v32, 5  ;;  %v936_v2 = vrot.slane %v935_v47, 4  ;;  %v970_v32 = vshll.u32 %v741_v12, 16 }
  0x90   :  { %12613 = vmatprep.subr.bf16.mxu1 %v13861_v15  ;;  %v943_v48 = vshrl.u32 %v738_v1, 16  ;;  %v946_v49 = vshll.u32 %v738_v1, 16  ;;  %12852 = vmatmul.mubr.msk.bf16.gmra.mrb[24].mxu0 %vm273_vm0, %v11576_v0  ;;  %v958_v0 = vrot.slane %v956_v58, 4  ;;  %v745_v47 = vld [vmem:[%s18253_s0 + $0x58] sm:$0xf] }
  0x91   :  { %v14914_v53 = vsel %vm14426_vm6, %v11543_v20, %v6114_v44  ;;  %v6116_v54 = vrot.slane %v6114_v44, 4  ;;  %12855 = vmatprep.mubr.msk.bf16.mxu0 %vm273_vm0, %v11577_v27  ;;  %v941_v13 = vsel %vm14081_vm3, %v936_v2, %v940_v17  ;;  %v742_v27 = vld [vmem:[%s18253_s0 + $0x4c] sm:$0xf]  ;;  %v972_v1 = vrot.slane %v970_v32, 5  ;;  %v744_v20 = vld [vmem:[%s18253_s0 + $0x54] sm:$0xf] }
  0x92   :  { %v945_v3 = vrot.slane %v943_v48, 4  ;;  %v948_v5 = vrot.slane %v946_v49, 5  ;;  %v10955_v16 = vcombine.low %v931_v61, %v941_v13  ;;  %v959_v19 = vor.u32 %v958_v0, %v954_v57  ;;  %v11493_v2 = vld [vmem:[%s18253_s0 + $0x124] sm:$0xf]  ;;  %v11494_v0 = vld [vmem:[%s18253_s0 + $0x128] sm:$0x1] }
  0x93   :  { %12614 = vmatpush3.bf16.msra.mxu1 %v13861_v15  ;;  %v14935_v45 = vsel %vm14426_vm6, %v6116_v54, %v6117_v4  ;;  %v976_v37 = vshll.u32 %v742_v27, 16  ;;  %v986_v17 = vshll.u32 %v743_v26, 16  ;;  %v11582_v4 = vcombine.low %v14959_v56, %v14970_v23  ;;  %v749_v32 = vld [vmem:[%s18253_s0 + $0x68] sm:$0x1]  ;;  %v753_v23 = vld [vmem:[%s18253_s0 + $0x78] sm:$0xf] }
  0x94   :  { %12615 = vmatprep.subr.bf16.mxu1 %v13869_v38  ;;  %v11581_v15 = vcombine.low %v14914_v53, %v14935_v45  ;;  %v949_v31 = vor.u32 %v948_v5, %v945_v3  ;;  %v960_v51 = vrot.slane %v959_v19, 4  ;;  %v973_v9 = vor.u32 %v972_v1, %v969_v28  ;;  %v11496_v28 = vld [vmem:[%s18253_s0 + $0x130] sm:$0xf] }
  0x95   :  { %v978_v43 = vrot.slane %v976_v37, 5  ;;  %v988_v48 = vrot.slane %v986_v17, 5  ;;  %v11545_v49 = vrot.slane %v11489_v35, 9  ;;  %v991_v55 = vshrl.u32 %v744_v20, 16  ;;  %v11495_v37 = vld [vmem:[%s18253_s0 + $0x12c] sm:$0xe] }
  0x96   :  { %12552 = vmatmul.mubr.msk.bf16.gmra.mrb[4].mxu1 %vm273_vm0, %v10954_v41  ;;  %v950_v24 = vrot.slane %v949_v31, 4  ;;  %v11491_v41 = vld [vmem:[%s18253_s0 + $0x11c] sm:$0x1]  ;;  %v965_v62 = vsel %vm14081_vm3, %v960_v51, %v964_v21  ;;  %v974_v50 = vrot.slane %v973_v9, 4  ;;  %v994_v58 = vshll.u32 %v744_v20, 16 }
  0x97   :  { %12616 = vmatpush3.bf16.msra.mxu1 %v13869_v38  ;;  %12555 = vmatprep.mubr.msk.bf16.mxu1 %vm273_vm0, %v10955_v16  ;;  %v980_v38 = vshrl.u32 %v742_v27, 16  ;;  %v6131_v25 = vrot.slane %v11491_v41, 5  ;;  %v14997_v52 = vsel %vm14426_vm6, %v11545_v49, %v6128_v7  ;;  %v1000_v59 = vshll.u32 %v745_v47, 16  ;;  %v750_v20 = vld [vmem:[%s18253_s0 + $0x6c] sm:$0xf] }
  0x98   :  { %v955_v10 = vsel %vm14081_vm3, %v950_v24, %v954_v57  ;;  %12856 = vmatmul.mubr.msk.bf16.gmra.mrb[28].mxu0 %vm273_vm0, %v11578_v33  ;;  %v746_v33 = vld [vmem:[%s18253_s0 + $0x5c] sm:$0x1]  ;;  %v1004_v61 = vshrl.u32 %v745_v47, 16  ;;  %v979_v3 = vsel %vm14081_vm3, %v974_v50, %v978_v43  ;;  %v993_v8 = vrot.slane %v991_v55, 4  ;;  %v752_v50 = vld [vmem:[%s18253_s0 + $0x74] sm:$0x1] }
  0x99   :  { %v10956_v44 = vcombine.low %v955_v10, %v965_v62  ;;  %v982_v46 = vrot.slane %v980_v38, 4  ;;  %12859 = vmatprep.mubr.msk.bf16.mxu0 %vm273_vm0, %v11579_v60  ;;  %v6130_v60 = vrot.slane %v6128_v7, 4  ;;  %v996_v57 = vrot.slane %v994_v58, 5 }
  0x9a   :  { %v1002_v12 = vrot.slane %v1000_v59, 5  ;;  %v1006_v13 = vrot.slane %v1004_v61, 4  ;;  %v1010_v31 = vshll.u32 %v746_v33, 16  ;;  %v11546_v21 = vrot.slane %v11492_v18, 9 }
  0x9b   :  { %v983_v54 = vor.u32 %v982_v46, %v978_v43  ;;  %v15009_v11 = vsel %vm14426_vm6, %v6130_v60, %v6131_v25  ;;  %v997_v19 = vor.u32 %v996_v57, %v993_v8  ;;  %v6135_v29 = vrot.slane %v11493_v2, 5 }
  0x9c   :  { %v11583_v16 = vcombine.low %v14997_v52, %v15009_v11  ;;  %v1007_v24 = vor.u32 %v1006_v13, %v1002_v12  ;;  %v1012_v39 = vrot.slane %v1010_v31, 5  ;;  %v6138_v40 = vrot.slane %v11494_v0, 5  ;;  %v11498_v52 = vld [vmem:[%s18253_s0 + $0x138] sm:$0xe]  ;;  %v11500_v11 = vld [vmem:[%s18253_s0 + $0x140] sm:$0x1] }
  0x9d   :  { %v984_v5 = vrot.slane %v983_v54, 4  ;;  %v998_v35 = vrot.slane %v997_v19, 4  ;;  %v1015_v51 = vshrl.u32 %v747_v63, 16  ;;  %v15038_v34 = vsel %vm14426_vm6, %v11546_v21, %v6135_v29 }
  0x9e   :  { %12556 = vmatmul.mubr.msk.bf16.gmra.mrb[8].mxu1 %vm273_vm0, %v10956_v44  ;;  %v1008_v10 = vrot.slane %v1007_v24, 4  ;;  %v6137_v6 = vrot.slane %v6135_v29, 4  ;;  %v1020_v53 = vrot.slane %v1018_v36, 5  ;;  %v1028_v45 = vshrl.u32 %v748_v22, 16 }
  0x9f   :  { %v989_v27 = vsel %vm14081_vm3, %v984_v5, %v988_v48  ;;  %v1003_v1 = vsel %vm14081_vm3, %v998_v35, %v1002_v12  ;;  %v1017_v38 = vrot.slane %v1015_v51, 4  ;;  %v1034_v17 = vshll.u32 %v749_v32, 16  ;;  %v751_v48 = vld [vmem:[%s18253_s0 + $0x70] sm:$0xf]  ;;  %v11501_v51 = vld [vmem:[%s18253_s0 + $0x144] sm:$0xe] }
  0xa0   :  { %v10957_v26 = vcombine.low %v979_v3, %v989_v27  ;;  %12860 = vmatmul.mubr.msk.bf16.gmra.mrb[32].mxu0 %vm273_vm0, %v11580_v42  ;;  %v1024_v42 = vshll.u32 %v748_v22, 16  ;;  %v1013_v41 = vsel %vm14081_vm3, %v1008_v10, %v1012_v39  ;;  %v15052_v62 = vsel %vm14426_vm6, %v6137_v6, %v6138_v40  ;;  %v11499_v3 = vld [vmem:[%s18253_s0 + $0x13c] sm:$0xf]  ;;  %v755_v39 = vld [vmem:[%s18253_s0 + $0x80] sm:$0x1] }
  0xa1   :  { %12863 = vmatprep.mubr.msk.bf16.mxu0 %vm273_vm0, %v11581_v15  ;;  %v11497_v15 = vld [vmem:[%s18253_s0 + $0x134] sm:$0x1]  ;;  %v10958_v44 = vcombine.low %v1003_v1, %v1013_v41  ;;  %v11584_v9 = vcombine.low %v15038_v34, %v15052_v62  ;;  %v1021_v46 = vor.u32 %v1020_v53, %v1017_v38  ;;  %v1030_v47 = vrot.slane %v1028_v45, 4  ;;  %v11503_v45 = vld [vmem:[%s18253_s0 + $0x14c] sm:$0x1] }
  0xa2   :  { %12559 = vmatprep.mubr.msk.bf16.mxu1 %vm273_vm0, %v10957_v26  ;;  %v1026_v43 = vrot.slane %v1024_v42, 5  ;;  %v1036_v49 = vrot.slane %v1034_v17, 5  ;;  %v11547_v7 = vrot.slane %v11495_v37, 9  ;;  %v6142_v25 = vrot.slane %v11496_v28, 5  ;;  %v11502_v42 = vld [vmem:[%s18253_s0 + $0x148] sm:$0xf] }
  0xa3   :  { %v6145_v33 = vrot.slane %v11497_v15, 5  ;;  %v1022_v54 = vrot.slane %v1021_v46, 4  ;;  %v1039_v58 = vshrl.u32 %v750_v20, 16  ;;  %v1042_v18 = vshll.u32 %v750_v20, 16  ;;  %v756_v20 = vld [vmem:[%s18253_s0 + $0x84] sm:$0xf] }
  0xa4   :  { %v1031_v55 = vor.u32 %v1030_v47, %v1026_v43  ;;  %v6143_v60 = vsel %vm14426_vm6, %v11547_v7, %v6142_v25  ;;  %v6144_v59 = vrot.slane %v6142_v25, 4  ;;  %v1048_v61 = vshll.u32 %v751_v48, 16  ;;  %v758_v7 = vld [vmem:[%s18253_s0 + $0x8c] sm:$0x1] }
  0xa5   :  { %v1052_v2 = vshrl.u32 %v751_v48, 16  ;;  %v1027_v5 = vsel %vm14081_vm3, %v1022_v54, %v1026_v43  ;;  %v1041_v57 = vrot.slane %v1039_v58, 4  ;;  %v1044_v0 = vrot.slane %v1042_v18, 5  ;;  %v13882_v25 = vld [vmem:[%s18254_s1 + $0x48] sm:$0xff]   ;;  %v11504_v18 = vld [vmem:[%s18253_s0 + $0x150] sm:$0xe] }
  0xa6   :  { %12560 = vmatmul.mubr.msk.bf16.gmra.mrb[12].mxu1 %vm273_vm0, %v10958_v44  ;;  %v1032_v8 = vrot.slane %v1031_v55, 4  ;;  %v6146_v12 = vsel %vm14426_vm6, %v6144_v59, %v6145_v33  ;;  %v1050_v13 = vrot.slane %v1048_v61, 5  ;;  %v1058_v56 = vshll.u32 %v752_v50, 16  ;;  %v757_v44 = vld [vmem:[%s18253_s0 + $0x88] sm:$0xf]  ;;  %12681 = vmatprep.subr.bf16.mxu1 %v13882_v25 }
  0xa7   :  { %v1054_v31 = vrot.slane %v1052_v2, 4  ;;  %v11585_v63 = vcombine.low %v6143_v60, %v6146_v12  ;;  %v1045_v27 = vor.u32 %v1044_v0, %v1041_v57  ;;  %v11548_v19 = vrot.slane %v11498_v52, 9  ;;  %v11505_v2 = vld [vmem:[%s18253_s0 + $0x154] sm:$0xf]  ;;  %v11506_v0 = vld [vmem:[%s18253_s0 + $0x158] sm:$0x1] }
  0xa8   :  { %12864 = vmatmul.mubr.msk.bf16.gmra.mrb[36].mxu0 %vm273_vm0, %v11582_v4  ;;  %v1037_v4 = vsel %vm14081_vm3, %v1032_v8, %v1036_v49  ;;  %v1060_v26 = vrot.slane %v1058_v56, 5  ;;  %v6149_v24 = vrot.slane %v11499_v3, 5  ;;  %v6152_v32 = vrot.slane %v11500_v11, 5  ;;  %v759_v56 = vld [vmem:[%s18253_s0 + $0x90] sm:$0xf] }
  0xa9   :  { %12867 = vmatprep.mubr.msk.bf16.mxu0 %vm273_vm0, %v11583_v16  ;;  %v754_v16 = vld [vmem:[%s18253_s0 + $0x7c] sm:$0xf]  ;;  %v10959_v21 = vcombine.low %v1027_v5, %v1037_v4  ;;  %v1055_v22 = vor.u32 %v1054_v31, %v1050_v13  ;;  %v1046_v29 = vrot.slane %v1045_v27, 4  ;;  %v1063_v35 = vshrl.u32 %v753_v23, 16 }
  0xaa   :  { %v1066_v40 = vshll.u32 %v753_v23, 16  ;;  %v6150_v37 = vsel %vm14426_vm6, %v11548_v19, %v6149_v24  ;;  %v6151_v10 = vrot.slane %v6149_v24, 4  ;;  %v1072_v6 = vshll.u32 %v754_v16, 16  ;;  %v760_v19 = vld [vmem:[%s18253_s0 + $0x94] sm:$0xf] }
  0xab   :  { %12563 = vmatprep.mubr.msk.bf16.mxu1 %vm273_vm0, %v10959_v21  ;;  %v1056_v36 = vrot.slane %v1055_v22, 4  ;;  %v1051_v28 = vsel %vm14081_vm3, %v1046_v29, %v1050_v13  ;;  %v1065_v1 = vrot.slane %v1063_v35, 4  ;;  %v1076_v53 = vshrl.u32 %v754_v16, 16  ;;  %v761_v24 = vld [vmem:[%s18253_s0 + $0x98] sm:$0x1] }
  0xac   :  { %v1068_v38 = vrot.slane %v1066_v40, 5  ;;  %v6153_v41 = vsel %vm14426_vm6, %v6151_v10, %v6152_v32  ;;  %v1074_v43 = vrot.slane %v1072_v6, 5  ;;  %v1082_v17 = vshll.u32 %v755_v39, 16  ;;  %v11507_v40 = vld [vmem:[%s18253_s0 + $0x15c] sm:$0xe] }
  0xad   :  { %v1061_v15 = vsel %vm14081_vm3, %v1056_v36, %v1060_v26  ;;  %v11586_v47 = vcombine.low %v6150_v37, %v6153_v41  ;;  %v1078_v49 = vrot.slane %v1076_v53, 4  ;;  %v11549_v50 = vrot.slane %v11501_v51, 9  ;;  %v11508_v6 = vld [vmem:[%s18253_s0 + $0x160] sm:$0xf]  ;;  %v11509_v53 = vld [vmem:[%s18253_s0 + $0x164] sm:$0x1] }
  0xae   :  { %v10960_v46 = vcombine.low %v1051_v28, %v1061_v15  ;;  %v1069_v48 = vor.u32 %v1068_v38, %v1065_v1  ;;  %v1084_v33 = vrot.slane %v1082_v17, 5  ;;  %v6156_v54 = vrot.slane %v11502_v42, 5  ;;  %v762_v17 = vld [vmem:[%s18253_s0 + $0x9c] sm:$0xf] }
  0xaf   :  { %v6159_v34 = vrot.slane %v11503_v45, 5  ;;  %v1087_v55 = vshrl.u32 %v756_v20, 16  ;;  %v1090_v58 = vshll.u32 %v756_v20, 16  ;;  %v1096_v59 = vshll.u32 %v757_v44, 16 }
  0xb0   :  { %12868 = vmatmul.mubr.msk.bf16.gmra.mrb[40].mxu0 %vm273_vm0, %v11584_v9  ;;  %12564 = vmatmul.mubr.msk.bf16.gmra.mrb[16].mxu1 %vm273_vm0, %v10960_v46  ;;  %v1070_v62 = vrot.slane %v1069_v48, 4  ;;  %v1079_v9 = vor.u32 %v1078_v49, %v1074_v43  ;;  %v6157_v52 = vsel %vm14426_vm6, %v11549_v50, %v6156_v54  ;;  %v6158_v60 = vrot.slane %v6156_v54, 4  ;;  %v763_v48 = vld [vmem:[%s18253_s0 + $0xa0] sm:$0xf]  ;;  %v764_v50 = vld [vmem:[%s18253_s0 + $0xa4] sm:$0x1] }
  0xb1   :  { %12871 = vmatprep.mubr.msk.bf16.mxu0 %vm273_vm0, %v11585_v63  ;;  %v1100_v61 = vshrl.u32 %v757_v44, 16  ;;  %v1089_v8 = vrot.slane %v1087_v55, 4  ;;  %v1092_v57 = vrot.slane %v1090_v58, 5  ;;  %v1098_v12 = vrot.slane %v1096_v59, 5  ;;  %v11510_v55 = vld [vmem:[%s18253_s0 + $0x168] sm:$0xe] }
  0xb2   :  { %v1075_v3 = vsel %vm14081_vm3, %v1070_v62, %v1074_v43  ;;  %v1080_v5 = vrot.slane %v1079_v9, 4  ;;  %v6160_v11 = vsel %vm14426_vm6, %v6158_v60, %v6159_v34  ;;  %v1106_v31 = vshll.u32 %v758_v7, 16  ;;  %v11511_v59 = vld [vmem:[%s18253_s0 + $0x16c] sm:$0xf] }
  0xb3   :  { %v1102_v13 = vrot.slane %v1100_v61, 4  ;;  %v11587_v4 = vcombine.low %v6157_v52, %v6160_v11  ;;  %v1093_v63 = vor.u32 %v1092_v57, %v1089_v8  ;;  %v11550_v27 = vrot.slane %v11504_v18, 9  ;;  %v11512_v8 = vld [vmem:[%s18253_s0 + $0x170] sm:$0x1] }
  0xb4   :  { %v1085_v23 = vsel %vm14081_vm3, %v1080_v5, %v1084_v33  ;;  %v1108_v22 = vrot.slane %v1106_v31, 5  ;;  %v6163_v26 = vrot.slane %v11505_v2, 5  ;;  %v6166_v29 = vrot.slane %v11506_v0, 5 }
  0xb5   :  { %v10961_v16 = vcombine.low %v1075_v3, %v1085_v23  ;;  %v1103_v21 = vor.u32 %v1102_v13, %v1098_v12  ;;  %v1094_v39 = vrot.slane %v1093_v63, 4  ;;  %v1111_v32 = vshrl.u32 %v759_v56, 16  ;;  %v765_v13 = vld [vmem:[%s18253_s0 + $0xa8] sm:$0xf]  ;;  %v766_v63 = vld [vmem:[%s18253_s0 + $0xac] sm:$0xf] }
  0xb6   :  { %v1114_v35 = vshll.u32 %v759_v56, 16  ;;  %v6164_v36 = vsel %vm14426_vm6, %v11550_v27, %v6163_v26  ;;  %v6165_v37 = vrot.slane %v6163_v26, 4  ;;  %v1120_v10 = vshll.u32 %v760_v19, 16 }
  0xb7   :  { %12567 = vmatprep.mubr.msk.bf16.mxu1 %vm273_vm0, %v10961_v16  ;;  %v1104_v51 = vrot.slane %v1103_v21, 4  ;;  %v1099_v42 = vsel %vm14081_vm3, %v1094_v39, %v1098_v12  ;;  %v1113_v28 = vrot.slane %v1111_v32, 4  ;;  %v1124_v38 = vshrl.u32 %v760_v19, 16  ;;  %v11513_v32 = vld [vmem:[%s18253_s0 + $0x174] sm:$0xe] }
  0xb8   :  { %12872 = vmatmul.mubr.msk.bf16.gmra.mrb[44].mxu0 %vm273_vm0, %v11586_v47  ;;  %v1116_v1 = vrot.slane %v1114_v35, 5  ;;  %v6167_v15 = vsel %vm14426_vm6, %v6165_v37, %v6166_v29  ;;  %v1122_v41 = vrot.slane %v1120_v10, 5  ;;  %v1130_v43 = vshll.u32 %v761_v24, 16  ;;  %v11514_v35 = vld [vmem:[%s18253_s0 + $0x178] sm:$0xf] }
  0xb9   :  { %12875 = vmatprep.mubr.msk.bf16.mxu0 %vm273_vm0, %v11587_v4  ;;  %v1109_v45 = vsel %vm14081_vm3, %v1104_v51, %v1108_v22  ;;  %v11588_v44 = vcombine.low %v6164_v36, %v6167_v15  ;;  %v1126_v47 = vrot.slane %v1124_v38, 4  ;;  %v11551_v7 = vrot.slane %v11507_v40, 9  ;;  %v767_v22 = vld [vmem:[%s18253_s0 + $0xb0] sm:$0x1]  ;;  %v11515_v10 = vld [vmem:[%s18253_s0 + $0x17c] sm:$0x1] }
  0xba   :  { %v10962_v20 = vcombine.low %v1099_v42, %v1109_v45  ;;  %v1117_v46 = vor.u32 %v1116_v1, %v1113_v28  ;;  %v1132_v49 = vrot.slane %v1130_v43, 5  ;;  %v6170_v25 = vrot.slane %v11508_v6, 5  ;;  %v768_v38 = vld [vmem:[%s18253_s0 + $0xb4] sm:$0xf] }
  0xbb   :  { %v6173_v33 = vrot.slane %v11509_v53, 5  ;;  %v1127_v34 = vor.u32 %v1126_v47, %v1122_v41  ;;  %v1135_v62 = vshrl.u32 %v762_v17, 16  ;;  %v1138_v9 = vshll.u32 %v762_v17, 16  ;;  %v770_v47 = vld [vmem:[%s18253_s0 + $0xbc] sm:$0x1] }
  0xbc   :  { %12568 = vmatmul.mubr.msk.bf16.gmra.mrb[20].mxu1 %vm273_vm0, %v10962_v20  ;;  %v1118_v54 = vrot.slane %v1117_v46, 4  ;;  %v6171_v58 = vsel %vm14426_vm6, %v11551_v7, %v6170_v25  ;;  %v6172_v18 = vrot.slane %v6170_v25, 4  ;;  %v1144_v52 = vshll.u32 %v763_v48, 16  ;;  %v769_v46 = vld [vmem:[%s18253_s0 + $0xb8] sm:$0xf] }
  0xbd   :  { %v1148_v60 = vshrl.u32 %v763_v48, 16  ;;  %v1128_v2 = vrot.slane %v1127_v34, 4  ;;  %v1137_v3 = vrot.slane %v1135_v62, 4  ;;  %v1140_v5 = vrot.slane %v1138_v9, 5  ;;  %v11517_v9 = vld [vmem:[%s18253_s0 + $0x184] sm:$0xf] }
  0xbe   :  { %v1123_v61 = vsel %vm14081_vm3, %v1118_v54, %v1122_v41  ;;  %v6174_v57 = vsel %vm14426_vm6, %v6172_v18, %v6173_v33  ;;  %v1146_v0 = vrot.slane %v1144_v52, 5  ;;  %v1154_v12 = vshll.u32 %v764_v50, 16  ;;  %v11516_v33 = vld [vmem:[%s18253_s0 + $0x180] sm:$0xe] }
  0xbf   :  { %v1150_v11 = vrot.slane %v1148_v60, 4  ;;  %v1133_v31 = vsel %vm14081_vm3, %v1128_v2, %v1132_v49  ;;  %v11589_v56 = vcombine.low %v6171_v58, %v6174_v57  ;;  %v1141_v23 = vor.u32 %v1140_v5, %v1137_v3  ;;  %v11518_v60 = vld [vmem:[%s18253_s0 + $0x188] sm:$0x1] }
  0xc0   :  { %12876 = vmatmul.mubr.msk.bf16.gmra.mrb[48].mxu0 %vm273_vm0, %v11588_v44  ;;  %v11552_v4 = vrot.slane %v11510_v55, 9  ;;  %v10963_v27 = vcombine.low %v1123_v61, %v1133_v31  ;;  %v1156_v16 = vrot.slane %v1154_v12, 5  ;;  %v6177_v21 = vrot.slane %v11511_v59, 5  ;;  %v771_v59 = vld [vmem:[%s18253_s0 + $0xd8] sm:$0xf] }
  0xc1   :  { %v1151_v19 = vor.u32 %v1150_v11, %v1146_v0  ;;  %12879 = vmatprep.mubr.msk.bf16.mxu0 %vm273_vm0, %v11589_v56  ;;  %v1142_v26 = vrot.slane %v1141_v23, 4  ;;  %v6180_v24 = vrot.slane %v11512_v8, 5  ;;  %v1159_v39 = vshrl.u32 %v765_v13, 16  ;;  %v772_v23 = vld [vmem:[%s18253_s0 + $0xdc] sm:$0xf] }
  0xc2   :  { %v1162_v29 = vshll.u32 %v765_v13, 16  ;;  %12571 = vmatprep.mubr.msk.bf16.mxu1 %vm273_vm0, %v10963_v27  ;;  %v6178_v51 = vsel %vm14426_vm6, %v11552_v4, %v6177_v21  ;;  %v6179_v36 = vrot.slane %v6177_v21, 4  ;;  %v1168_v37 = vshll.u32 %v766_v63, 16 }
  0xc3   :  { %v1152_v40 = vrot.slane %v1151_v19, 4  ;;  %v1147_v6 = vsel %vm14081_vm3, %v1142_v26, %v1146_v0  ;;  %v1161_v42 = vrot.slane %v1159_v39, 4  ;;  %v1172_v1 = vshrl.u32 %v766_v63, 16  ;;  %v11519_v39 = vld [vmem:[%s18253_s0 + $0x18c] sm:$0xe] }
  0xc4   :  { %v1164_v28 = vrot.slane %v1162_v29, 5  ;;  %v6181_v45 = vsel %vm14426_vm6, %v6179_v36, %v6180_v24  ;;  %v1170_v15 = vrot.slane %v1168_v37, 5  ;;  %v1178_v41 = vshll.u32 %v767_v22, 16  ;;  %v11520_v29 = vld [vmem:[%s18253_s0 + $0x190] sm:$0xf] }
  0xc5   :  { %v1157_v53 = vsel %vm14081_vm3, %v1152_v40, %v1156_v16  ;;  %v11590_v17 = vcombine.low %v6178_v51, %v6181_v45  ;;  %v1174_v44 = vrot.slane %v1172_v1, 4  ;;  %v11553_v49 = vrot.slane %v11513_v32, 9  ;;  %v773_v16 = vld [vmem:[%s18253_s0 + $0xe0] sm:$0x1]  ;;  %v11521_v36 = vld [vmem:[%s18253_s0 + $0x194] sm:$0x1] }
  0xc6   :  { %v10964_v43 = vcombine.low %v1147_v6, %v1157_v53  ;;  %v1165_v20 = vor.u32 %v1164_v28, %v1161_v42  ;;  %v1180_v48 = vrot.slane %v1178_v41, 5  ;;  %v6184_v7 = vrot.slane %v11514_v35, 5  ;;  %v774_v28 = vld [vmem:[%s18253_s0 + $0xe4] sm:$0xf] }
  0xc7   :  { %v6187_v25 = vrot.slane %v11515_v10, 5  ;;  %v1175_v54 = vor.u32 %v1174_v44, %v1170_v15  ;;  %v1183_v34 = vshrl.u32 %v768_v38, 16  ;;  %v1186_v62 = vshll.u32 %v768_v38, 16  ;;  %v776_v44 = vld [vmem:[%s18253_s0 + $0xec] sm:$0x1] }
  0xc8   :  { %12572 = vmatmul.mubr.msk.bf16.gmra.mrb[24].mxu1 %vm273_vm0, %v10964_v43  ;;  %12880 = vmatmul.mubr.msk.bf16.gmra.mrb[52].mxu0 %vm273_vm0, %v11590_v17  ;;  %v1166_v50 = vrot.slane %v1165_v20, 4  ;;  %v6185_v55 = vsel %vm14426_vm6, %v11553_v49, %v6184_v7  ;;  %v6186_v58 = vrot.slane %v6184_v7, 4  ;;  %v1192_v18 = vshll.u32 %v769_v46, 16  ;;  %v11522_v7 = vld [vmem:[%s18253_s0 + $0x198] sm:$0xe] }
  0xc9   :  { %v1196_v52 = vshrl.u32 %v769_v46, 16  ;;  %v1176_v2 = vrot.slane %v1175_v54, 4  ;;  %v1185_v3 = vrot.slane %v1183_v34, 4  ;;  %v1188_v5 = vrot.slane %v1186_v62, 5  ;;  %v11523_v34 = vld [vmem:[%s18253_s0 + $0x19c] sm:$0xf] }
  0xca   :  { %v1171_v61 = vsel %vm14081_vm3, %v1166_v50, %v1170_v15  ;;  %v6188_v8 = vsel %vm14426_vm6, %v6186_v58, %v6187_v25  ;;  %v1194_v57 = vrot.slane %v1192_v18, 5  ;;  %v1202_v11 = vshll.u32 %v770_v47, 16  ;;  %v775_v15 = vld [vmem:[%s18253_s0 + $0xe8] sm:$0xf]  ;;  %v11524_v18 = vld [vmem:[%s18253_s0 + $0x1a0] sm:$0x1] }
  0xcb   :  { %v1198_v0 = vrot.slane %v1196_v52, 4  ;;  %v1181_v12 = vsel %vm14081_vm3, %v1176_v2, %v1180_v48  ;;  %v11591_v13 = vcombine.low %v6185_v55, %v6188_v8  ;;  %v1189_v31 = vor.u32 %v1188_v5, %v1185_v3 }
  0xcc   :  { %v11554_v56 = vrot.slane %v11516_v33, 9  ;;  %v10965_v4 = vcombine.low %v1171_v61, %v1181_v12  ;;  %v1204_v27 = vrot.slane %v1202_v11, 5  ;;  %v6191_v19 = vrot.slane %v11517_v9, 5 }
  0xcd   :  { %v1199_v63 = vor.u32 %v1198_v0, %v1194_v57  ;;  %12883 = vmatprep.mubr.msk.bf16.mxu0 %vm273_vm0, %v11591_v13  ;;  %v1190_v21 = vrot.slane %v1189_v31, 4  ;;  %v6194_v22 = vrot.slane %v11518_v60, 5  ;;  %v1207_v26 = vshrl.u32 %v771_v59, 16  ;;  %v778_v31 = vld [vmem:[%s18253_s0 + $0xf4] sm:$0xf] }
  0xce   :  { %v1210_v24 = vshll.u32 %v771_v59, 16  ;;  %12575 = vmatprep.mubr.msk.bf16.mxu1 %vm273_vm0, %v10965_v4  ;;  %v6192_v35 = vsel %vm14426_vm6, %v11554_v56, %v6191_v19  ;;  %v6193_v40 = vrot.slane %v6191_v19, 4  ;;  %v1216_v51 = vshll.u32 %v772_v23, 16  ;;  %v779_v56 = vld [vmem:[%s18253_s0 + $0xf8] sm:$0x1] }
  0xcf   :  { %v1200_v32 = vrot.slane %v1199_v63, 4  ;;  %v1195_v37 = vsel %vm14081_vm3, %v1190_v21, %v1194_v57  ;;  %v1209_v10 = vrot.slane %v1207_v26, 4  ;;  %v1220_v42 = vshrl.u32 %v772_v23, 16  ;;  %v777_v57 = vld [vmem:[%s18253_s0 + $0xf0] sm:$0xf] }
  0xd0   :  { %v1212_v6 = vrot.slane %v1210_v24, 5  ;;  %v6195_v38 = vsel %vm14426_vm6, %v6193_v40, %v6194_v22  ;;  %v1218_v53 = vrot.slane %v1216_v51, 5  ;;  %v1226_v45 = vshll.u32 %v773_v16, 16  ;;  %v780_v26 = vld [vmem:[%s18253_s0 + $0xfc] sm:$0xf] }
  0xd1   :  { %v1205_v1 = vsel %vm14081_vm3, %v1200_v32, %v1204_v27  ;;  %v11592_v43 = vcombine.low %v6192_v35, %v6195_v38  ;;  %v1222_v20 = vrot.slane %v1220_v42, 4  ;;  %v11555_v47 = vrot.slane %v11519_v39, 9  ;;  %v782_v38 = vld [vmem:[%s18253_s0 + $0x104] sm:$0x1] }
  0xd2   :  { %v10966_v41 = vcombine.low %v1195_v37, %v1205_v1  ;;  %v1213_v17 = vor.u32 %v1212_v6, %v1209_v10  ;;  %v1228_v46 = vrot.slane %v1226_v45, 5  ;;  %v6198_v48 = vrot.slane %v11520_v29, 5  ;;  %v13862_v37 = vld [vmem:[%s18253_s0 + $0x18] sm:$0xff]   ;;  %v781_v10 = vld [vmem:[%s18253_s0 + $0x100] sm:$0xf] }
  0xd3   :  { %v6201_v49 = vrot.slane %v11521_v36, 5  ;;  %12884 = vmatmul.mubr.msk.bf16.gmra.mrb[56].mxu0 %vm273_vm0, %v11592_v43  ;;  %v1223_v33 = vor.u32 %v1222_v20, %v1218_v53  ;;  %v1231_v50 = vshrl.u32 %v774_v28, 16  ;;  %v1234_v54 = vshll.u32 %v774_v28, 16 }
  0xd4   :  { %12576 = vmatmul.mubr.msk.bf16.gmra.mrb[28].mxu1 %vm273_vm0, %v10966_v41  ;;  %v1214_v25 = vrot.slane %v1213_v17, 4  ;;  %v6199_v62 = vsel %vm14426_vm6, %v11555_v47, %v6198_v48  ;;  %v6200_v9 = vrot.slane %v6198_v48, 4  ;;  %v1240_v55 = vshll.u32 %v775_v15, 16  ;;  %v784_v47 = vld [vmem:[%s18253_s0 + $0x10c] sm:$0xf] }
  0xd5   :  { %v1244_v58 = vshrl.u32 %v775_v15, 16  ;;  %v1224_v60 = vrot.slane %v1223_v33, 4  ;;  %v1233_v59 = vrot.slane %v1231_v50, 4  ;;  %v1236_v61 = vrot.slane %v1234_v54, 5  ;;  %v785_v33 = vld [vmem:[%s18253_s0 + $0x110] sm:$0x1] }
  0xd6   :  { %v1219_v52 = vsel %vm14081_vm3, %v1214_v25, %v1218_v53  ;;  %v6202_v2 = vsel %vm14426_vm6, %v6200_v9, %v6201_v49  ;;  %v1242_v3 = vrot.slane %v1240_v55, 5  ;;  %v1250_v8 = vshll.u32 %v776_v44, 16  ;;  %v783_v53 = vld [vmem:[%s18253_s0 + $0x108] sm:$0xf]  ;;  %v786_v9 = vld [vmem:[%s18253_s0 + $0x114] sm:$0xf] }
  0xd7   :  { %v1246_v5 = vrot.slane %v1244_v58, 4  ;;  %v1229_v0 = vsel %vm14081_vm3, %v1224_v60, %v1228_v46  ;;  %v11593_v11 = vcombine.low %v6199_v62, %v6202_v2  ;;  %v1237_v12 = vor.u32 %v1236_v61, %v1233_v59 }
  0xd8   :  { %v11556_v13 = vrot.slane %v11522_v7, 9  ;;  %v10967_v23 = vcombine.low %v1219_v52, %v1229_v0  ;;  %v1252_v63 = vrot.slane %v1250_v8, 5  ;;  %v6205_v27 = vrot.slane %v11523_v34, 5  ;;  %v13863_v8 = vld [vmem:[%s18253_s0 + $0x24] sm:$0xff]  }
  0xd9   :  { %v1247_v4 = vor.u32 %v1246_v5, %v1242_v3  ;;  %12887 = vmatprep.mubr.msk.bf16.mxu0 %vm273_vm0, %v11593_v11  ;;  %v1238_v19 = vrot.slane %v1237_v12, 4  ;;  %v6208_v16 = vrot.slane %v11524_v18, 5  ;;  %v1255_v21 = vshrl.u32 %v777_v57, 16  ;;  %v13865_v11 = vld [vmem:[%s18253_s0 + $0x30] sm:$0xff]   ;;  %v787_v12 = vld [vmem:[%s18253_s0 + $0x118] sm:$0xf] }
  0xda   :  { %v1258_v22 = vshll.u32 %v777_v57, 16  ;;  %12579 = vmatprep.mubr.msk.bf16.mxu1 %vm273_vm0, %v10967_v23  ;;  %v6206_v39 = vsel %vm14426_vm6, %v11556_v13, %v6205_v27  ;;  %v6207_v29 = vrot.slane %v6205_v27, 4  ;;  %v1264_v32 = vshll.u32 %v778_v31, 16 }
  0xdb   :  { %v1248_v24 = vrot.slane %v1247_v4, 4  ;;  %v1243_v35 = vsel %vm14081_vm3, %v1238_v19, %v1242_v3  ;;  %v1257_v40 = vrot.slane %v1255_v21, 4  ;;  %v1268_v36 = vshrl.u32 %v778_v31, 16  ;;  %v788_v4 = vld [vmem:[%s18253_s0 + $0x11c] sm:$0x1] }
  0xdc   :  { %v1260_v51 = vrot.slane %v1258_v22, 5  ;;  %v6209_v42 = vsel %vm14426_vm6, %v6207_v29, %v6208_v16  ;;  %v1266_v28 = vrot.slane %v1264_v32, 5  ;;  %v1274_v1 = vshll.u32 %v779_v56, 16  ;;  %v789_v29 = vld [vmem:[%s18253_s0 + $0x120] sm:$0xf] }
  0xdd   :  { %v1253_v6 = vsel %vm14081_vm3, %v1248_v24, %v1252_v63  ;;  %v11594_v15 = vcombine.low %v6206_v39, %v6209_v42  ;;  %v1270_v43 = vrot.slane %v1268_v36, 4  ;;  %v1279_v20 = vshrl.u32 %v780_v26, 16  ;;  %v13876_v63 = vld [vmem:[%s18254_s1 + $0xb0] sm:$0xff]   ;;  %v790_v36 = vld [vmem:[%s18253_s0 + $0x124] sm:$0xf] }
  0xde   :  { %v10968_v45 = vcombine.low %v1243_v35, %v1253_v6  ;;  %v1261_v41 = vor.u32 %v1260_v51, %v1257_v40  ;;  %v1276_v17 = vrot.slane %v1274_v1, 5  ;;  %v1282_v44 = vshll.u32 %v780_v26, 16  ;;  %v13888_v1 = vld [vmem:[%s18254_s1 + $0xb8] sm:$0xff]  }
  0xdf   :  { %v1288_v46 = vshll.u32 %v781_v10, 16  ;;  %12888 = vmatmul.mubr.msk.bf16.gmra.mrb[60].mxu0 %vm273_vm0, %v11594_v15  ;;  %v1271_v49 = vor.u32 %v1270_v43, %v1266_v28  ;;  %v1292_v7 = vshrl.u32 %v781_v10, 16  ;;  %v1298_v25 = vshll.u32 %v782_v38, 16  ;;  %v13936_v10 = vld [vmem:[%s18254_s1 + $0xa8] sm:$0xff]   ;;  %v13866_v15 = vld [vmem:[%s18253_s0 + $0x3c] sm:$0xff]  }
  0xe0   :  { %12580 = vmatmul.mubr.msk.bf16.gmra.mrb[32].mxu1 %vm273_vm0, %v10968_v45  ;;  %v1262_v48 = vrot.slane %v1261_v41, 4  ;;  %12897 = vmatprep.mubr.msk.bf16.mxu0 %vm273_vm0, %v13862_v37  ;;  %v1281_v50 = vrot.slane %v1279_v20, 4  ;;  %v1284_v54 = vrot.slane %v1282_v44, 5  ;;  %v1303_v62 = vshrl.u32 %v783_v53, 16  ;;  %v791_v20 = vld [vmem:[%s18253_s0 + $0x128] sm:$0x1] }
  0xe1   :  { %v1290_v34 = vrot.slane %v1288_v46, 5  ;;  %v1272_v58 = vrot.slane %v1271_v49, 4  ;;  %v1294_v18 = vrot.slane %v1292_v7, 4  ;;  %v1300_v52 = vrot.slane %v1298_v25, 5 }
  0xe2   :  { %v1267_v55 = vsel %vm14081_vm3, %v1262_v48, %v1266_v28  ;;  %v1285_v60 = vor.u32 %v1284_v54, %v1281_v50  ;;  %v1305_v59 = vrot.slane %v1303_v62, 4  ;;  %v1306_v61 = vshll.u32 %v783_v53, 16 }
  0xe3   :  { %v1312_v2 = vshll.u32 %v784_v47, 16  ;;  %v1277_v3 = vsel %vm14081_vm3, %v1272_v58, %v1276_v17  ;;  %v1295_v5 = vor.u32 %v1294_v18, %v1290_v34  ;;  %v1316_v57 = vshrl.u32 %v784_v47, 16  ;;  %v792_v47 = vld [vmem:[%s18253_s0 + $0x12c] sm:$0xf] }
  0xe4   :  { %v1322_v0 = vshll.u32 %v785_v33, 16  ;;  %v10969_v13 = vcombine.low %v1267_v55, %v1277_v3  ;;  %v1286_v31 = vrot.slane %v1285_v60, 4  ;;  %v1308_v56 = vrot.slane %v1306_v61, 5  ;;  %v793_v33 = vld [vmem:[%s18253_s0 + $0x130] sm:$0xf] }
  0xe5   :  { %v1314_v23 = vrot.slane %v1312_v2, 5  ;;  %v1296_v27 = vrot.slane %v1295_v5, 4  ;;  %v1318_v19 = vrot.slane %v1316_v57, 4  ;;  %v1327_v21 = vshrl.u32 %v786_v9, 16  ;;  %v794_v55 = vld [vmem:[%s18253_s0 + $0x134] sm:$0x1] }
  0xe6   :  { %v1324_v16 = vrot.slane %v1322_v0, 5  ;;  %12583 = vmatprep.mubr.msk.bf16.mxu1 %vm273_vm0, %v10969_v13  ;;  %v1291_v22 = vsel %vm14081_vm3, %v1286_v31, %v1290_v34  ;;  %v1309_v26 = vor.u32 %v1308_v56, %v1305_v59  ;;  %v1330_v24 = vshll.u32 %v786_v9, 16  ;;  %v13867_v9 = vld [vmem:[%s18253_s0 + $0x48] sm:$0xff]   ;;  %v13900_v59 = vld [vmem:[%s18254_s1 + $0xc0] sm:$0xff]   ;;  %v796_v57 = vld [vmem:[%s18253_s0 + $0x13c] sm:$0xf] }
  0xe7   :  { %v1336_v39 = vshll.u32 %v787_v12, 16  ;;  %v1301_v32 = vsel %vm14081_vm3, %v1296_v27, %v1300_v52  ;;  %12898 = vmatmul.mubr.msk.bf16.vlgmr.msra.gmra.mrb[0].mxu0 %vm273_vm0, %v13863_v8  ;;  %v1319_v35 = vor.u32 %v1318_v19, %v1314_v23  ;;  %v1329_v40 = vrot.slane %v1327_v21, 4  ;;  %v795_v8 = vld [vmem:[%s18253_s0 + $0x138] sm:$0xf] }
  0xe8   :  { %v1340_v51 = vshrl.u32 %v787_v12, 16  ;;  %v10970_v37 = vcombine.low %v1291_v22, %v1301_v32  ;;  %12962 = vmatpush3.bf16.msra.mxu0 %v13936_v10  ;;  %v1310_v6 = vrot.slane %v1309_v26, 4  ;;  %12901 = vmatprep.mubr.msk.bf16.mxu0 %vm273_vm0, %v13865_v11  ;;  %v1332_v42 = vrot.slane %v1330_v24, 5 }
  0xe9   :  { %v1338_v28 = vrot.slane %v1336_v39, 5  ;;  %v1320_v38 = vrot.slane %v1319_v35, 4  ;;  %v1346_v45 = vshll.u32 %v788_v4, 16  ;;  %v1351_v41 = vshrl.u32 %v789_v29, 16  ;;  %12963 = vmatprep.subr.bf16.mxu0 %v13876_v63 }
  0xea   :  { %v1342_v53 = vrot.slane %v1340_v51, 4  ;;  %12584 = vmatmul.mubr.msk.bf16.gmra.mrb[36].mxu1 %vm273_vm0, %v10970_v37  ;;  %v1315_v43 = vsel %vm14081_vm3, %v1310_v6, %v1314_v23  ;;  %v1333_v17 = vor.u32 %v1332_v42, %v1329_v40  ;;  %v1354_v44 = vshll.u32 %v789_v29, 16  ;;  %v798_v29 = vld [vmem:[%s18253_s0 + $0x144] sm:$0xf]  ;;  %v13868_v51 = vld [vmem:[%s18253_s0 + $0x54] sm:$0xff]  }
  0xeb   :  { %v1360_v46 = vshll.u32 %v790_v36, 16  ;;  %v1325_v48 = vsel %vm14081_vm3, %v1320_v38, %v1324_v16  ;;  %v1348_v7 = vrot.slane %v1346_v45, 5  ;;  %v1353_v25 = vrot.slane %v1351_v41, 4  ;;  %v13870_v37 = vld [vmem:[%s18253_s0 + $0x60] sm:$0xff]  }
  0xec   :  { %v1343_v49 = vor.u32 %v1342_v53, %v1338_v28  ;;  %v10971_v50 = vcombine.low %v1315_v43, %v1325_v48  ;;  %v1334_v54 = vrot.slane %v1333_v17, 4  ;;  %v1356_v34 = vrot.slane %v1354_v44, 5  ;;  %12964 = vmatpush3.bf16.msra.mxu0 %v13876_v63  ;;  %v797_v63 = vld [vmem:[%s18253_s0 + $0x140] sm:$0x1]  ;;  %v800_v44 = vld [vmem:[%s18253_s0 + $0x14c] sm:$0x1] }
  0xed   :  { %v1362_v62 = vrot.slane %v1360_v46, 5  ;;  %v1364_v18 = vshrl.u32 %v790_v36, 16  ;;  %v1370_v52 = vshll.u32 %v791_v20, 16  ;;  %v1375_v60 = vshrl.u32 %v792_v47, 16  ;;  %12965 = vmatprep.subr.bf16.mxu0 %v13888_v1  ;;  %v801_v46 = vld [vmem:[%s18253_s0 + $0x150] sm:$0xf] }
  0xee   :  { %v1344_v58 = vrot.slane %v1343_v49, 4  ;;  %12587 = vmatprep.mubr.msk.bf16.mxu1 %vm273_vm0, %v10971_v50  ;;  %v1339_v61 = vsel %vm14081_vm3, %v1334_v54, %v1338_v28  ;;  %v1357_v2 = vor.u32 %v1356_v34, %v1353_v25  ;;  %v1378_v3 = vshll.u32 %v792_v47, 16  ;;  %v802_v25 = vld [vmem:[%s18253_s0 + $0x154] sm:$0xf] }
  0xef   :  { %v1384_v5 = vshll.u32 %v793_v33, 16  ;;  %12902 = vmatmul.mubr.msk.bf16.gmra.mrb[4].mxu0 %vm273_vm0, %v13866_v15  ;;  %v1366_v11 = vrot.slane %v1364_v18, 4  ;;  %v1372_v12 = vrot.slane %v1370_v52, 5  ;;  %v1377_v13 = vrot.slane %v1375_v60, 4 }
  0xf0   :  { %v1349_v0 = vsel %vm14081_vm3, %v1344_v58, %v1348_v7  ;;  %v1358_v56 = vrot.slane %v1357_v2, 4  ;;  %12905 = vmatprep.mubr.msk.bf16.mxu0 %vm273_vm0, %v13867_v9  ;;  %v1380_v23 = vrot.slane %v1378_v3, 5  ;;  %12966 = vmatpush3.bf16.msra.mxu0 %v13888_v1  ;;  %v1388_v19 = vshrl.u32 %v793_v33, 16  ;;  %v799_v1 = vld [vmem:[%s18253_s0 + $0x148] sm:$0xf] }
  0xf1   :  { %v10972_v31 = vcombine.low %v1339_v61, %v1349_v0  ;;  %v1386_v4 = vrot.slane %v1384_v5, 5  ;;  %v1367_v27 = vor.u32 %v1366_v11, %v1362_v62  ;;  %v1394_v16 = vshll.u32 %v794_v55, 16  ;;  %13031 = vmatprep.subr.bf16.mxu0 %v13900_v59  ;;  %v803_v61 = vld [vmem:[%s18253_s0 + $0x158] sm:$0x1]  ;;  %v804_v0 = vld [vmem:[%s18253_s0 + $0x15c] sm:$0xf] }
  0xf2   :  { %v1399_v21 = vshrl.u32 %v795_v8, 16  ;;  %v1363_v22 = vsel %vm14081_vm3, %v1358_v56, %v1362_v62  ;;  %v1381_v26 = vor.u32 %v1380_v23, %v1377_v13  ;;  %v1402_v24 = vshll.u32 %v795_v8, 16  ;;  %v13871_v8 = vld [vmem:[%s18253_s0 + $0x6c] sm:$0xff]   ;;  %v13872_v56 = vld [vmem:[%s18253_s0 + $0x78] sm:$0xff]  }
  0xf3   :  { %12588 = vmatmul.mubr.msk.bf16.gmra.mrb[40].mxu1 %vm273_vm0, %v10972_v31  ;;  %v1408_v39 = vshll.u32 %v796_v57, 16  ;;  %v1368_v32 = vrot.slane %v1367_v27, 4  ;;  %v1390_v35 = vrot.slane %v1388_v19, 4  ;;  %v1396_v40 = vrot.slane %v1394_v16, 5  ;;  %v805_v19 = vld [vmem:[%s18253_s0 + $0x160] sm:$0xf] }
  0xf4   :  { %v1401_v36 = vrot.slane %v1399_v21, 4  ;;  %v1382_v10 = vrot.slane %v1381_v26, 4  ;;  %v1404_v6 = vrot.slane %v1402_v24, 5  ;;  %v1412_v28 = vshrl.u32 %v796_v57, 16  ;;  %v806_v26 = vld [vmem:[%s18253_s0 + $0x164] sm:$0x1] }
  0xf5   :  { %v1410_v42 = vrot.slane %v1408_v39, 5  ;;  %v1373_v38 = vsel %vm14081_vm3, %v1368_v32, %v1372_v12  ;;  %v1391_v53 = vor.u32 %v1390_v35, %v1386_v4  ;;  %v1418_v45 = vshll.u32 %v797_v63, 16 }
  0xf6   :  { %v1423_v15 = vshrl.u32 %v798_v29, 16  ;;  %v10973_v41 = vcombine.low %v1363_v22, %v1373_v38  ;;  %v1387_v43 = vsel %vm14081_vm3, %v1382_v10, %v1386_v4  ;;  %v1405_v17 = vor.u32 %v1404_v6, %v1401_v36  ;;  %v808_v38 = vld [vmem:[%s18253_s0 + $0x16c] sm:$0xf] }
  0xf7   :  { %v1414_v20 = vrot.slane %v1412_v28, 4  ;;  %v1392_v47 = vrot.slane %v1391_v53, 4  ;;  %12906 = vmatmul.mubr.msk.bf16.gmra.mrb[8].mxu0 %vm273_vm0, %v13868_v51  ;;  %v1420_v48 = vrot.slane %v1418_v45, 5  ;;  %v1426_v7 = vshll.u32 %v798_v29, 16 }
  0xf8   :  { %v1425_v49 = vrot.slane %v1423_v15, 4  ;;  %12591 = vmatprep.mubr.msk.bf16.mxu1 %vm273_vm0, %v10973_v41  ;;  %v1406_v33 = vrot.slane %v1405_v17, 4  ;;  %12909 = vmatprep.mubr.msk.bf16.mxu0 %vm273_vm0, %v13870_v37  ;;  %v1432_v54 = vshll.u32 %v799_v1, 16  ;;  %v1436_v34 = vshrl.u32 %v799_v1, 16  ;;  %v809_v17 = vld [vmem:[%s18253_s0 + $0x170] sm:$0x1] }
  0xf9   :  { %v1415_v50 = vor.u32 %v1414_v20, %v1410_v42  ;;  %v1397_v62 = vsel %vm14081_vm3, %v1392_v47, %v1396_v40  ;;  %v1428_v9 = vrot.slane %v1426_v7, 5  ;;  %v1442_v55 = vshll.u32 %v800_v44, 16  ;;  %v807_v40 = vld [vmem:[%s18253_s0 + $0x168] sm:$0xf] }
  0xfa   :  { %v1447_v58 = vshrl.u32 %v801_v46, 16  ;;  %v10974_v18 = vcombine.low %v1387_v43, %v1397_v62  ;;  %v1411_v52 = vsel %vm14081_vm3, %v1406_v33, %v1410_v42  ;;  %v1434_v59 = vrot.slane %v1432_v54, 5  ;;  %v13873_v43 = vld [vmem:[%s18253_s0 + $0x84] sm:$0xff]  }
  0xfb   :  { %v1416_v60 = vrot.slane %v1415_v50, 4  ;;  %v1429_v2 = vor.u32 %v1428_v9, %v1425_v49  ;;  %v1438_v3 = vrot.slane %v1436_v34, 4  ;;  %v1444_v5 = vrot.slane %v1442_v55, 5  ;;  %v810_v49 = vld [vmem:[%s18253_s0 + $0x174] sm:$0xf] }
  0xfc   :  { %v1449_v57 = vrot.slane %v1447_v58, 4  ;;  %12592 = vmatmul.mubr.msk.bf16.gmra.mrb[44].mxu1 %vm273_vm0, %v10974_v18  ;;  %v1450_v12 = vshll.u32 %v801_v46, 16  ;;  %v1456_v13 = vshll.u32 %v802_v25, 16  ;;  %v1460_v31 = vshrl.u32 %v802_v25, 16  ;;  %v811_v55 = vld [vmem:[%s18253_s0 + $0x178] sm:$0xf] }
  0xfd   :  { %v1421_v11 = vsel %vm14081_vm3, %v1416_v60, %v1420_v48  ;;  %v1430_v4 = vrot.slane %v1429_v2, 4  ;;  %v1439_v63 = vor.u32 %v1438_v3, %v1434_v59  ;;  %v1466_v27 = vshll.u32 %v803_v61, 16  ;;  %v13874_v48 = vld [vmem:[%s18253_s0 + $0x90] sm:$0xff]   ;;  %v813_v61 = vld [vmem:[%s18253_s0 + $0x180] sm:$0xf] }
  0xfe   :  { %v10975_v23 = vcombine.low %v1411_v52, %v1421_v11  ;;  %v1452_v16 = vrot.slane %v1450_v12, 5  ;;  %v1458_v21 = vrot.slane %v1456_v13, 5  ;;  %v1462_v22 = vrot.slane %v1460_v31, 4 }
  0xff   :  { %v1471_v24 = vshrl.u32 %v804_v0, 16  ;;  %v1435_v39 = vsel %vm14081_vm3, %v1430_v4, %v1434_v59  ;;  %v1440_v29 = vrot.slane %v1439_v63, 4  ;;  %12910 = vmatmul.mubr.msk.bf16.gmra.mrb[12].mxu0 %vm273_vm0, %v13871_v8  ;;  %v1468_v32 = vrot.slane %v1466_v27, 5  ;;  %v812_v59 = vld [vmem:[%s18253_s0 + $0x17c] sm:$0x1] }
 0x100   :  { %12595 = vmatprep.mubr.msk.bf16.mxu1 %vm273_vm0, %v10975_v23  ;;  %v1474_v35 = vshll.u32 %v804_v0, 16  ;;  %v1453_v51 = vor.u32 %v1452_v16, %v1449_v57  ;;  %v1463_v36 = vor.u32 %v1462_v22, %v1458_v21  ;;  %12913 = vmatprep.mubr.msk.bf16.mxu0 %vm273_vm0, %v13872_v56  ;;  %v1480_v10 = vshll.u32 %v805_v19, 16  ;;  %v814_v57 = vld [vmem:[%s18253_s0 + $0x184] sm:$0xf] }
 0x101   :  { %v1473_v37 = vrot.slane %v1471_v24, 4  ;;  %v1445_v6 = vsel %vm14081_vm3, %v1440_v29, %v1444_v5  ;;  %v1484_v28 = vshrl.u32 %v805_v19, 16  ;;  %v1490_v1 = vshll.u32 %v806_v26, 16 }
 0x102   :  { %v1476_v42 = vrot.slane %v1474_v35, 5  ;;  %v10976_v53 = vcombine.low %v1435_v39, %v1445_v6  ;;  %v1454_v45 = vrot.slane %v1453_v51, 4  ;;  %v1464_v15 = vrot.slane %v1463_v36, 4  ;;  %v13875_v39 = vld [vmem:[%s18253_s0 + $0x9c] sm:$0xff]  }
 0x103   :  { %v1482_v41 = vrot.slane %v1480_v10, 5  ;;  %v1486_v44 = vrot.slane %v1484_v28, 4  ;;  %v1492_v46 = vrot.slane %v1490_v1, 5  ;;  %v1495_v47 = vshrl.u32 %v807_v40, 16  ;;  %v817_v10 = vld [vmem:[%s18253_s0 + $0x190] sm:$0xf] }
 0x104   :  { %v1477_v20 = vor.u32 %v1476_v42, %v1473_v37  ;;  %12596 = vmatmul.mubr.msk.bf16.gmra.mrb[48].mxu1 %vm273_vm0, %v10976_v53  ;;  %v1459_v7 = vsel %vm14081_vm3, %v1454_v45, %v1458_v21  ;;  %v1469_v25 = vsel %vm14081_vm3, %v1464_v15, %v1468_v32  ;;  %v1498_v33 = vshll.u32 %v807_v40, 16  ;;  %v815_v21 = vld [vmem:[%s18253_s0 + $0x188] sm:$0x1]  ;;  %v816_v32 = vld [vmem:[%s18253_s0 + $0x18c] sm:$0xf] }
 0x105   :  { %v1504_v50 = vshll.u32 %v808_v38, 16  ;;  %v10977_v54 = vcombine.low %v1459_v7, %v1469_v25  ;;  %v1487_v62 = vor.u32 %v1486_v44, %v1482_v41  ;;  %v1497_v9 = vrot.slane %v1495_v47, 4  ;;  %v13877_v37 = vld [vmem:[%s18253_s0 + $0xa8] sm:$0xff]   ;;  %v2289_v47 = vld [vmem:[%s18253_s0 + $0x4] sm:$0xf] }
 0x106   :  { %v1478_v34 = vrot.slane %v1477_v20, 4  ;;  %v1500_v58 = vrot.slane %v1498_v33, 5  ;;  %v1508_v52 = vshrl.u32 %v808_v38, 16  ;;  %v1514_v60 = vshll.u32 %v809_v17, 16  ;;  %v2290_v33 = vld [vmem:[%s18253_s0 + $0x8] sm:$0x1] }
 0x107   :  { %v1506_v18 = vrot.slane %v1504_v50, 5  ;;  %12599 = vmatprep.mubr.msk.bf16.mxu1 %vm273_vm0, %v10977_v54  ;;  %v1488_v3 = vrot.slane %v1487_v62, 4  ;;  %12914 = vmatmul.mubr.msk.bf16.gmra.mrb[16].mxu0 %vm273_vm0, %v13873_v43  ;;  %v1519_v5 = vshrl.u32 %v810_v49, 16  ;;  %v1522_v8 = vshll.u32 %v810_v49, 16 }
 0x108   :  { %v1483_v2 = vsel %vm14081_vm3, %v1478_v34, %v1482_v41  ;;  %v1501_v0 = vor.u32 %v1500_v58, %v1497_v9  ;;  %v1510_v11 = vrot.slane %v1508_v52, 4  ;;  %v1516_v12 = vrot.slane %v1514_v60, 5  ;;  %12917 = vmatprep.mubr.msk.bf16.mxu0 %vm273_vm0, %v13874_v48  ;;  %v818_v41 = vld [vmem:[%s18253_s0 + $0x194] sm:$0x1] }
 0x109   :  { %v1528_v13 = vshll.u32 %v811_v55, 16  ;;  %v1493_v31 = vsel %vm14081_vm3, %v1488_v3, %v1492_v46  ;;  %v1521_v56 = vrot.slane %v1519_v5, 4  ;;  %v1524_v23 = vrot.slane %v1522_v8, 5  ;;  %v2288_v46 = vld [vmem:[%s18253_s0] sm:$0xe]  ;;  %v13878_v9 = vld [vmem:[%s18253_s0 + $0xb4] sm:$0xff]  }
 0x10a   :  { %v1532_v4 = vshrl.u32 %v811_v55, 16  ;;  %v10978_v63 = vcombine.low %v1483_v2, %v1493_v31  ;;  %v1502_v27 = vrot.slane %v1501_v0, 4  ;;  %v1511_v19 = vor.u32 %v1510_v11, %v1506_v18  ;;  %v2291_v55 = vld [vmem:[%s18253_s0 + $0xc] sm:$0xe]  ;;  %v2293_v8 = vld [vmem:[%s18253_s0 + $0x14] sm:$0x1] }
 0x10b   :  { %v1530_v16 = vrot.slane %v1528_v13, 5  ;;  %v1525_v22 = vor.u32 %v1524_v23, %v1521_v56  ;;  %v1538_v24 = vshll.u32 %v812_v59, 16  ;;  %v1543_v29 = vshrl.u32 %v813_v61, 16  ;;  %v2292_v59 = vld [vmem:[%s18253_s0 + $0x10] sm:$0xf]  ;;  %v13879_v31 = vld [vmem:[%s18253_s0 + $0xc0] sm:$0xff]  }
 0x10c   :  { %v1534_v26 = vrot.slane %v1532_v4, 4  ;;  %12600 = vmatmul.mubr.msk.bf16.gmra.mrb[52].mxu1 %vm273_vm0, %v10978_v63  ;;  %v1507_v35 = vsel %vm14081_vm3, %v1502_v27, %v1506_v18  ;;  %v1512_v40 = vrot.slane %v1511_v19, 4  ;;  %v1546_v51 = vshll.u32 %v813_v61, 16  ;;  %v2295_v56 = vld [vmem:[%s18253_s0 + $0x1c] sm:$0xf] }
 0x10d   :  { %v1552_v36 = vshll.u32 %v814_v57, 16  ;;  %v1526_v6 = vrot.slane %v1525_v22, 4  ;;  %v1540_v28 = vrot.slane %v1538_v24, 5  ;;  %v1545_v1 = vrot.slane %v1543_v29, 4  ;;  %v2298_v24 = vld [vmem:[%s18253_s0 + $0x28] sm:$0xf] }
 0x10e   :  { %v1535_v42 = vor.u32 %v1534_v26, %v1530_v16  ;;  %v1517_v38 = vsel %vm14081_vm3, %v1512_v40, %v1516_v12  ;;  %v1548_v53 = vrot.slane %v1546_v51, 5  ;;  %v1556_v15 = vshrl.u32 %v814_v57, 16  ;;  %v2294_v57 = vld [vmem:[%s18253_s0 + $0x18] sm:$0xe]  ;;  %v2296_v26 = vld [vmem:[%s18253_s0 + $0x20] sm:$0x1] }
 0x10f   :  { %v1554_v45 = vrot.slane %v1552_v36, 5  ;;  %v10979_v43 = vcombine.low %v1507_v35, %v1517_v38  ;;  %v1531_v17 = vsel %vm14081_vm3, %v1526_v6, %v1530_v16  ;;  %12918 = vmatmul.mubr.msk.bf16.gmra.mrb[20].mxu0 %vm273_vm0, %v13875_v39  ;;  %v1562_v44 = vshll.u32 %v815_v21, 16  ;;  %v2297_v40 = vld [vmem:[%s18253_s0 + $0x24] sm:$0xe]  ;;  %v2301_v51 = vld [vmem:[%s18253_s0 + $0x34] sm:$0xf] }
 0x110   :  { %v1536_v20 = vrot.slane %v1535_v42, 4  ;;  %v1549_v48 = vor.u32 %v1548_v53, %v1545_v1  ;;  %v1558_v49 = vrot.slane %v1556_v15, 4  ;;  %12921 = vmatprep.mubr.msk.bf16.mxu0 %vm273_vm0, %v13877_v37  ;;  %v1567_v7 = vshrl.u32 %v816_v32, 16  ;;  %v13880_v38 = vld [vmem:[%s18253_s0 + $0xcc] sm:$0xff]  }
 0x111   :  { %v1570_v25 = vshll.u32 %v816_v32, 16  ;;  %12603 = vmatprep.mubr.msk.bf16.mxu1 %vm273_vm0, %v10979_v43  ;;  %v1564_v54 = vrot.slane %v1562_v44, 5  ;;  %v1576_v34 = vshll.u32 %v817_v10, 16  ;;  %v1580_v62 = vshrl.u32 %v817_v10, 16  ;;  %v2299_v43 = vld [vmem:[%s18253_s0 + $0x2c] sm:$0x1] }
 0x112   :  { %v1541_v50 = vsel %vm14081_vm3, %v1536_v20, %v1540_v28  ;;  %v1550_v18 = vrot.slane %v1549_v48, 4  ;;  %v1559_v52 = vor.u32 %v1558_v49, %v1554_v45  ;;  %v1569_v60 = vrot.slane %v1567_v7, 4 }
 0x113   :  { %v10980_v58 = vcombine.low %v1531_v17, %v1541_v50  ;;  %v1572_v61 = vrot.slane %v1570_v25, 5  ;;  %v1578_v2 = vrot.slane %v1576_v34, 5  ;;  %v1582_v3 = vrot.slane %v1580_v62, 4  ;;  %v2300_v17 = vld [vmem:[%s18253_s0 + $0x30] sm:$0xe] }
 0x114   :  { %v1586_v5 = vshll.u32 %v818_v41, 16  ;;  %v1555_v0 = vsel %vm14081_vm3, %v1550_v18, %v1554_v45  ;;  %v1560_v11 = vrot.slane %v1559_v52, 4  ;;  %v11018_v12 = vrot.slane %v2288_v46, 9  ;;  %v13881_v41 = vld [vmem:[%s18253_s0 + $0xf0] sm:$0xff]   ;;  %v2302_v46 = vld [vmem:[%s18253_s0 + $0x38] sm:$0x1] }
 0x115   :  { %12604 = vmatmul.mubr.msk.bf16.gmra.mrb[56].mxu1 %vm273_vm0, %v10980_v58  ;;  %v2485_v13 = vrot.slane %v2289_v47, 5  ;;  %v1573_v23 = vor.u32 %v1572_v61, %v1569_v60  ;;  %v1583_v4 = vor.u32 %v1582_v3, %v1578_v2  ;;  %v2488_v27 = vrot.slane %v2290_v33, 5  ;;  %v15656_v47 = vld [vmem:[%s18253_s0 + $0x40] sm:$0xf]  ;;  %v15664_v25 = vld [vmem:[%s18253_s0 + $0x3c] sm:$0xe] }
 0x116   :  { %v1588_v63 = vrot.slane %v1586_v5, 5  ;;  %v1565_v19 = vsel %vm14081_vm3, %v1560_v11, %v1564_v54  ;;  %v11019_v22 = vrot.slane %v2291_v55, 9  ;;  %v2492_v35 = vrot.slane %v2292_v59, 5  ;;  %v15669_v33 = vld [vmem:[%s18253_s0 + $0x44] sm:$0x1] }
 0x117   :  { %v2486_v16 = vsel %vm14426_vm6, %v11018_v12, %v2485_v13  ;;  %v2487_v21 = vrot.slane %v2485_v13, 4  ;;  %v10981_v39 = vcombine.low %v1555_v0, %v1565_v19  ;;  %v1574_v29 = vrot.slane %v1573_v23, 4  ;;  %12922 = vmatmul.mubr.msk.bf16.gmra.mrb[24].mxu0 %vm273_vm0, %v13878_v9  ;;  %v15674_v50 = vld [vmem:[%s18253_s0 + $0x48] sm:$0xe]  ;;  %v15679_v54 = vld [vmem:[%s18253_s0 + $0x4c] sm:$0xf] }
 0x118   :  { %v1584_v32 = vrot.slane %v1583_v4, 4  ;;  %12925 = vmatprep.mubr.msk.bf16.mxu0 %vm273_vm0, %v13879_v31  ;;  %v2495_v37 = vrot.slane %v2293_v8, 5  ;;  %v11020_v10 = vrot.slane %v2294_v57, 9  ;;  %v2499_v6 = vrot.slane %v2295_v56, 5  ;;  %v15691_v58 = vld [vmem:[%s18253_s0 + $0x50] sm:$0x1] }
 0x119   :  { %v2489_v36 = vsel %vm14426_vm6, %v2487_v21, %v2488_v27  ;;  %12607 = vmatprep.mubr.msk.bf16.mxu1 %vm273_vm0, %v10981_v39  ;;  %v1579_v42 = vsel %vm14081_vm3, %v1574_v29, %v1578_v2  ;;  %v2494_v45 = vrot.slane %v2492_v35, 4  ;;  %v2502_v20 = vrot.slane %v2296_v26, 5  ;;  %v15696_v18 = vld [vmem:[%s18253_s0 + $0x54] sm:$0xe]  ;;  %v15701_v60 = vld [vmem:[%s18253_s0 + $0x58] sm:$0xf] }
 0x11a   :  { %v1589_v28 = vsel %vm14081_vm3, %v1584_v32, %v1588_v63  ;;  %v11056_v1 = vcombine.low %v2486_v16, %v2489_v36  ;;  %v2501_v15 = vrot.slane %v2499_v6, 4  ;;  %v2506_v44 = vrot.slane %v2298_v24, 5  ;;  %v15706_v59 = vld [vmem:[%s18253_s0 + $0x64] sm:$0xf]  ;;  %v15713_v8 = vld [vmem:[%s18253_s0 + $0x5c] sm:$0x1] }
 0x11b   :  { %v10982_v53 = vcombine.low %v1579_v42, %v1589_v28  ;;  %v2493_v48 = vsel %vm14426_vm6, %v11019_v22, %v2492_v35  ;;  %v11021_v49 = vrot.slane %v2297_v40, 9  ;;  %v2513_v7 = vrot.slane %v2301_v51, 5  ;;  %v15718_v57 = vld [vmem:[%s18253_s0 + $0x60] sm:$0xe]  ;;  %v15729_v31 = vld [vmem:[%s18253_s0 + $0x68] sm:$0x1] }
 0x11c   :  { %v2496_v34 = vsel %vm14426_vm6, %v2494_v45, %v2495_v37  ;;  %v2500_v62 = vsel %vm14426_vm6, %v11020_v10, %v2499_v6  ;;  %v2503_v9 = vsel %vm14426_vm6, %v2501_v15, %v2502_v20  ;;  %v11022_v55 = vrot.slane %v2300_v17, 9  ;;  %v13883_v56 = vld [vmem:[%s18253_s0 + $0xfc] sm:$0xff]   ;;  %v15744_v19 = vld [vmem:[%s18253_s0 + $0x70] sm:$0xf]  ;;  %v13884_v21 = vld [vmem:[%s18253_s0 + $0x108] sm:$0xff]  }
 0x11d   :  { %12608 = vmatmul.mubr.msk.bf16.gmra.mrb[60].mxu1 %vm273_vm0, %v10982_v53  ;;  %v2509_v52 = vrot.slane %v2299_v43, 5  ;;  %v2508_v61 = vrot.slane %v2506_v44, 4  ;;  %v2515_v2 = vrot.slane %v2513_v7, 4  ;;  %v2516_v3 = vrot.slane %v2302_v46, 5  ;;  %v13895_v16 = vld [vmem:[%s18254_s1 + $0x50] sm:$0xff]   ;;  %v13901_v53 = vld [vmem:[%s18254_s1 + $0x58] sm:$0xff]  }
 0x11e   :  { %12617 = vmatprep.mubr.msk.bf16.mxu1 %vm273_vm0, %v11056_v1  ;;  %v2520_v5 = vrot.slane %v15656_v47, 5  ;;  %v11057_v0 = vcombine.low %v2493_v48, %v2496_v34  ;;  %v11058_v11 = vcombine.low %v2500_v62, %v2503_v9  ;;  %v15723_v12 = vsel %vm14426_vm6, %v11021_v49, %v2506_v44  ;;  %v15758_v29 = vld [vmem:[%s18253_s0 + $0x6c] sm:$0xe]  ;;  %v2317_v36 = vld [vmem:[%s18253_s0 + $0x74] sm:$0x1] }
 0x11f   :  { %12926 = vmatmul.mubr.msk.bf16.gmra.mrb[28].mxu0 %vm273_vm0, %v13880_v38  ;;  %v2527_v13 = vrot.slane %v15679_v54, 5  ;;  %v15736_v23 = vsel %vm14426_vm6, %v11022_v55, %v2513_v7  ;;  %v11023_v4 = vrot.slane %v15664_v25, 9  ;;  %v2523_v63 = vrot.slane %v15669_v33, 5  ;;  %v15771_v37 = vld [vmem:[%s18253_s0 + $0x78] sm:$0xe]  ;;  %v13937_v45 = vld [vmem:[%s18254_s1 + $0x48] sm:$0xff]  }
 0x120   :  { %12929 = vmatprep.mubr.msk.bf16.mxu0 %vm273_vm0, %v13881_v41  ;;  %v11024_v27 = vrot.slane %v15674_v50, 9  ;;  %v2522_v22 = vrot.slane %v2520_v5, 4  ;;  %v2530_v26 = vrot.slane %v15691_v58, 5  ;;  %v11025_v24 = vrot.slane %v15696_v18, 9  ;;  %v15776_v10 = vld [vmem:[%s18253_s0 + $0x7c] sm:$0xf] }
 0x121   :  { %v2534_v39 = vrot.slane %v15701_v60, 5  ;;  %v2510_v32 = vsel %vm14426_vm6, %v2508_v61, %v2509_v52  ;;  %v2517_v35 = vsel %vm14426_vm6, %v2515_v2, %v2516_v3  ;;  %v2529_v40 = vrot.slane %v2527_v13, 4  ;;  %v15785_v38 = vld [vmem:[%s18253_s0 + $0x80] sm:$0x1]  ;;  %v15797_v15 = vld [vmem:[%s18253_s0 + $0x84] sm:$0xe] }
 0x122   :  { %v2541_v51 = vrot.slane %v15706_v59, 5  ;;  %v2537_v42 = vrot.slane %v15713_v8, 5  ;;  %v11026_v28 = vrot.slane %v15718_v57, 9  ;;  %v2544_v1 = vrot.slane %v15729_v31, 5  ;;  %v15802_v41 = vld [vmem:[%s18253_s0 + $0x88] sm:$0xf] }
 0x123   :  { %v2536_v6 = vrot.slane %v2534_v39, 4  ;;  %v11059_v43 = vcombine.low %v15723_v12, %v2510_v32  ;;  %v11060_v17 = vcombine.low %v15736_v23, %v2517_v35  ;;  %v2548_v44 = vrot.slane %v15744_v19, 5  ;;  %v15810_v46 = vld [vmem:[%s18253_s0 + $0x8c] sm:$0x1]  ;;  %v2324_v25 = vld [vmem:[%s18253_s0 + $0x90] sm:$0xe] }
 0x124   :  { %v2543_v20 = vrot.slane %v2541_v51, 4  ;;  %v15815_v47 = vsel %vm14426_vm6, %v11023_v4, %v2520_v5  ;;  %v15819_v48 = vsel %vm14426_vm6, %v11024_v27, %v2527_v13  ;;  %v11027_v49 = vrot.slane %v15758_v29, 9  ;;  %v2325_v33 = vld [vmem:[%s18253_s0 + $0x94] sm:$0xf]  ;;  %v2326_v9 = vld [vmem:[%s18253_s0 + $0x98] sm:$0x1] }
 0x125   :  { %12618 = vmatmul.mubr.msk.bf16.vlgmr.msra.gmra.mrb[0].mxu1 %vm273_vm0, %v11057_v0  ;;  %v2555_v7 = vrot.slane %v15776_v10, 5  ;;  %v15832_v50 = vsel %vm14426_vm6, %v2522_v22, %v2523_v63  ;;  %v15836_v54 = vsel %vm14426_vm6, %v2529_v40, %v2530_v26  ;;  %v2551_v34 = vrot.slane %v2317_v36, 5  ;;  %v13885_v55 = vld [vmem:[%s18253_s0 + $0x114] sm:$0xff]   ;;  %v13886_v59 = vld [vmem:[%s18253_s0 + $0x120] sm:$0xff]   ;;  %v2327_v8 = vld [vmem:[%s18253_s0 + $0x9c] sm:$0xe] }
 0x126   :  { %12621 = vmatprep.mubr.msk.bf16.mxu1 %vm273_vm0, %v11058_v11  ;;  %12682 = vmatpush3.bf16.msra.mxu1 %v13937_v45  ;;  %v11028_v62 = vrot.slane %v15771_v37, 9  ;;  %v2550_v58 = vrot.slane %v2548_v44, 4  ;;  %v2558_v18 = vrot.slane %v15785_v38, 5  ;;  %v11029_v52 = vrot.slane %v15797_v15, 9  ;;  %v2328_v13 = vld [vmem:[%s18253_s0 + $0xa0] sm:$0xf] }
 0x127   :  { %12683 = vmatprep.subr.bf16.mxu1 %v13895_v16  ;;  %12930 = vmatmul.mubr.msk.bf16.gmra.mrb[32].mxu0 %vm273_vm0, %v13883_v56  ;;  %v2562_v60 = vrot.slane %v15802_v41, 5  ;;  %v2557_v61 = vrot.slane %v2555_v7, 4  ;;  %v2565_v2 = vrot.slane %v15810_v46, 5  ;;  %v11030_v3 = vrot.slane %v2324_v25, 9  ;;  %v2329_v31 = vld [vmem:[%s18253_s0 + $0xa4] sm:$0x1] }
 0x128   :  { %12933 = vmatprep.mubr.msk.bf16.mxu0 %vm273_vm0, %v13884_v21  ;;  %v2569_v5 = vrot.slane %v2325_v33, 5  ;;  %v15857_v57 = vsel %vm14426_vm6, %v11025_v24, %v2534_v39  ;;  %v15861_v0 = vsel %vm14426_vm6, %v2536_v6, %v2537_v42  ;;  %v2572_v12 = vrot.slane %v2326_v9, 5  ;;  %v2330_v39 = vld [vmem:[%s18253_s0 + $0xa8] sm:$0xe]  ;;  %v2331_v29 = vld [vmem:[%s18253_s0 + $0xac] sm:$0xf] }
 0x129   :  { %v2564_v11 = vrot.slane %v2562_v60, 4  ;;  %v15872_v56 = vsel %vm14426_vm6, %v11026_v28, %v2541_v51  ;;  %v15876_v23 = vsel %vm14426_vm6, %v2543_v20, %v2544_v1  ;;  %v11031_v63 = vrot.slane %v2327_v8, 9  ;;  %v2332_v32 = vld [vmem:[%s18253_s0 + $0xb0] sm:$0x1]  ;;  %v13938_v35 = vld [vmem:[%s18254_s1 + $0x60] sm:$0xff]   ;;  %v13889_v20 = vld [vmem:[%s18253_s0 + $0x138] sm:$0xff]  }
 0x12a   :  { %12684 = vmatpush3.bf16.msra.mxu1 %v13895_v16  ;;  %v2571_v4 = vrot.slane %v2569_v5, 4  ;;  %v15881_v27 = vsel %vm14426_vm6, %v11027_v49, %v2548_v44  ;;  %v15885_v19 = vsel %vm14426_vm6, %v2550_v58, %v2551_v34  ;;  %v2576_v16 = vrot.slane %v2328_v13, 5  ;;  %v2333_v1 = vld [vmem:[%s18253_s0 + $0xb4] sm:$0xe]  ;;  %v2334_v38 = vld [vmem:[%s18253_s0 + $0xb8] sm:$0xf] }
 0x12b   :  { %12685 = vmatprep.subr.bf16.mxu1 %v13901_v53  ;;  %v2579_v21 = vrot.slane %v2329_v31, 5  ;;  %v11061_v22 = vcombine.low %v15815_v47, %v15832_v50  ;;  %v11062_v26 = vcombine.low %v15819_v48, %v15836_v54  ;;  %v11063_v24 = vcombine.low %v15857_v57, %v15861_v0  ;;  %v2335_v41 = vld [vmem:[%s18253_s0 + $0xbc] sm:$0x1]  ;;  %v2336_v49 = vld [vmem:[%s18253_s0 + $0xd8] sm:$0xe] }
 0x12c   :  { %v11064_v40 = vcombine.low %v15872_v56, %v15876_v23  ;;  %v15910_v51 = vsel %vm14426_vm6, %v11028_v62, %v2555_v7  ;;  %v2578_v36 = vrot.slane %v2576_v16, 4  ;;  %v11032_v37 = vrot.slane %v2330_v39, 9  ;;  %v2337_v50 = vld [vmem:[%s18253_s0 + $0xdc] sm:$0xf]  ;;  %v2338_v54 = vld [vmem:[%s18253_s0 + $0xe0] sm:$0x1] }
 0x12d   :  { %12622 = vmatmul.mubr.msk.bf16.gmra.mrb[4].mxu1 %vm273_vm0, %v11059_v43  ;;  %v11065_v10 = vcombine.low %v15881_v27, %v15885_v19  ;;  %v15917_v6 = vsel %vm14426_vm6, %v2557_v61, %v2558_v18  ;;  %v2583_v42 = vrot.slane %v2331_v29, 5  ;;  %v2586_v28 = vrot.slane %v2332_v32, 5  ;;  %v2339_v61 = vld [vmem:[%s18253_s0 + $0xe4] sm:$0xe]  ;;  %v2344_v39 = vld [vmem:[%s18253_s0 + $0xf8] sm:$0x1] }
 0x12e   :  { %12625 = vmatprep.mubr.msk.bf16.mxu1 %vm273_vm0, %v11060_v17  ;;  %12686 = vmatpush3.bf16.msra.mxu1 %v13901_v53  ;;  %v13887_v53 = vld [vmem:[%s18253_s0 + $0x12c] sm:$0xff]   ;;  %v15930_v45 = vsel %vm14426_vm6, %v11029_v52, %v2562_v60  ;;  %v15934_v15 = vsel %vm14426_vm6, %v11030_v3, %v2569_v5  ;;  %v11033_v43 = vrot.slane %v2333_v1, 9  ;;  %v2590_v17 = vrot.slane %v2334_v38, 5  ;;  %v11768_v1 = vld [vmem:[%s18253_s0 + $0x1c] sm:$0xf] }
 0x12f   :  { %13160 = vmatprep.subr.bf16.mxu1 %v13938_v35  ;;  %12934 = vmatmul.mubr.msk.bf16.gmra.mrb[36].mxu0 %vm273_vm0, %v13885_v55  ;;  %v15944_v44 = vsel %vm14426_vm6, %v2564_v11, %v2565_v2  ;;  %v15948_v46 = vsel %vm14426_vm6, %v2571_v4, %v2572_v12  ;;  %v2585_v47 = vrot.slane %v2583_v42, 4  ;;  %v2593_v48 = vrot.slane %v2335_v41, 5  ;;  %v2340_v2 = vld [vmem:[%s18253_s0 + $0xe8] sm:$0xf]  ;;  %v2341_v3 = vld [vmem:[%s18253_s0 + $0xec] sm:$0x1] }
 0x130   :  { %12937 = vmatprep.mubr.msk.bf16.mxu0 %vm273_vm0, %v13886_v59  ;;  %v15955_v7 = vsel %vm14426_vm6, %v11031_v63, %v2576_v16  ;;  %v15959_v25 = vsel %vm14426_vm6, %v2578_v36, %v2579_v21  ;;  %v2592_v33 = vrot.slane %v2590_v17, 4  ;;  %v11034_v34 = vrot.slane %v2336_v49, 9  ;;  %v2342_v16 = vld [vmem:[%s18253_s0 + $0xf0] sm:$0xe]  ;;  %v2343_v21 = vld [vmem:[%s18253_s0 + $0xf4] sm:$0xf] }
 0x131   :  { %v15970_v62 = vsel %vm14426_vm6, %v11032_v37, %v2583_v42  ;;  %v15974_v9 = vsel %vm14426_vm6, %v2585_v47, %v2586_v28  ;;  %v2597_v55 = vrot.slane %v2337_v50, 5  ;;  %v2600_v58 = vrot.slane %v2338_v54, 5  ;;  %v11767_v35 = vld [vmem:[%s18253_s0 + $0x18] sm:$0xf]  ;;  %v11769_v38 = vld [vmem:[%s18253_s0 + $0x20] sm:$0x1] }
 0x132   :  { %v11066_v18 = vcombine.low %v15910_v51, %v15917_v6  ;;  %v11067_v52 = vcombine.low %v15930_v45, %v15944_v44  ;;  %v15983_v60 = vsel %vm14426_vm6, %v11033_v43, %v2590_v17  ;;  %v15987_v59 = vsel %vm14426_vm6, %v2592_v33, %v2593_v48  ;;  %v2345_v47 = vld [vmem:[%s18253_s0 + $0xfc] sm:$0xe]  ;;  %v13891_v48 = vld [vmem:[%s18253_s0 + $0x150] sm:$0xff]   ;;  %v11772_v56 = vld [vmem:[%s18253_s0 + $0x2c] sm:$0x1] }
 0x133   :  { %v11068_v5 = vcombine.low %v15934_v15, %v15948_v46  ;;  %v16002_v8 = vsel %vm14426_vm6, %v11034_v34, %v2597_v55  ;;  %v2599_v11 = vrot.slane %v2597_v55, 4  ;;  %v11035_v12 = vrot.slane %v2339_v61, 9  ;;  %v2346_v34 = vld [vmem:[%s18253_s0 + $0x100] sm:$0xf]  ;;  %v2352_v51 = vld [vmem:[%s18253_s0 + $0x118] sm:$0xf] }
 0x134   :  { %v11069_v13 = vcombine.low %v15955_v7, %v15959_v25  ;;  %v11070_v31 = vcombine.low %v15970_v62, %v15974_v9  ;;  %v2604_v4 = vrot.slane %v2340_v2, 5  ;;  %v2607_v63 = vrot.slane %v2341_v3, 5  ;;  %v2347_v3 = vld [vmem:[%s18253_s0 + $0x104] sm:$0x1]  ;;  %v11779_v15 = vld [vmem:[%s18253_s0 + $0x48] sm:$0xf] }
 0x135   :  { %12626 = vmatmul.mubr.msk.bf16.gmra.mrb[8].mxu1 %vm273_vm0, %v11061_v22  ;;  %v11071_v22 = vcombine.low %v15983_v60, %v15987_v59  ;;  %v11036_v29 = vrot.slane %v2342_v16, 9  ;;  %v2611_v32 = vrot.slane %v2343_v21, 5  ;;  %v2614_v28 = vrot.slane %v2344_v39, 5  ;;  %v11784_v62 = vld [vmem:[%s18253_s0 + $0x5c] sm:$0x1] }
 0x136   :  { %12629 = vmatprep.mubr.msk.bf16.mxu1 %vm273_vm0, %v11062_v26  ;;  %v16020_v26 = vsel %vm14426_vm6, %v2599_v11, %v2600_v58  ;;  %v16032_v37 = vsel %vm14426_vm6, %v11035_v12, %v2604_v4  ;;  %v2606_v42 = vrot.slane %v2604_v4, 4  ;;  %v7832_v17 = vshrl.u32 %v11767_v35, 16  ;;  %v11770_v11 = vld [vmem:[%s18253_s0 + $0x24] sm:$0xf]  ;;  %v11771_v4 = vld [vmem:[%s18253_s0 + $0x28] sm:$0xf] }
 0x137   :  { %12938 = vmatmul.mubr.msk.bf16.gmra.mrb[40].mxu0 %vm273_vm0, %v13887_v53  ;;  %v11072_v36 = vcombine.low %v16002_v8, %v16020_v26  ;;  %v13890_v53 = vld [vmem:[%s18253_s0 + $0x144] sm:$0xff]   ;;  %v16045_v41 = vsel %vm14426_vm6, %v11036_v29, %v2611_v32  ;;  %v2613_v43 = vrot.slane %v2611_v32, 4  ;;  %v7841_v33 = vshll.u32 %v11768_v1, 16 }
 0x138   :  { %12941 = vmatprep.mubr.msk.bf16.mxu0 %vm273_vm0, %v13889_v20  ;;  %v7835_v20 = vshll.u32 %v11767_v35, 16  ;;  %v16055_v49 = vsel %vm14426_vm6, %v2606_v42, %v2607_v63  ;;  %v7845_v50 = vshrl.u32 %v11768_v1, 16  ;;  %v7851_v54 = vshll.u32 %v11769_v38, 16  ;;  %v2363_v59 = vld [vmem:[%s18253_s0 + $0x144] sm:$0xe] }
 0x139   :  { %v11073_v55 = vcombine.low %v16032_v37, %v16055_v49  ;;  %v16068_v58 = vsel %vm14426_vm6, %v2613_v43, %v2614_v28  ;;  %v7834_v61 = vrot.slane %v7832_v17, 4  ;;  %v7843_v0 = vrot.slane %v7841_v33, 5  ;;  %v2364_v8 = vld [vmem:[%s18253_s0 + $0x148] sm:$0xf] }
 0x13a   :  { %v7837_v2 = vrot.slane %v7835_v20, 5  ;;  %v11074_v57 = vcombine.low %v16045_v41, %v16068_v58  ;;  %v7853_v12 = vrot.slane %v7851_v54, 5  ;;  %v11037_v16 = vrot.slane %v2345_v47, 9  ;;  %v2349_v54 = vld [vmem:[%s18253_s0 + $0x10c] sm:$0xf] }
 0x13b   :  { %v2618_v21 = vrot.slane %v2346_v34, 5  ;;  %v2621_v39 = vrot.slane %v2347_v3, 5  ;;  %v7859_v29 = vshll.u32 %v11770_v11, 16  ;;  %v7865_v32 = vshll.u32 %v11771_v4, 16  ;;  %v2350_v34 = vld [vmem:[%s18253_s0 + $0x110] sm:$0x1] }
 0x13c   :  { %v7838_v63 = vor.u32 %v7837_v2, %v7834_v61  ;;  %v7869_v1 = vshrl.u32 %v11771_v4, 16  ;;  %v13892_v61 = vld [vmem:[%s18253_s0 + $0x15c] sm:$0xff]   ;;  %v11774_v4 = vld [vmem:[%s18253_s0 + $0x34] sm:$0xf]  ;;  %v2628_v19 = vrot.slane %v2350_v34, 5 }
 0x13d   :  { %12630 = vmatmul.mubr.msk.bf16.gmra.mrb[12].mxu1 %vm273_vm0, %v11063_v24  ;;  %v7847_v24 = vrot.slane %v7845_v50, 4  ;;  %v16092_v42 = vsel %vm14426_vm6, %v11037_v16, %v2618_v21  ;;  %v2620_v28 = vrot.slane %v2618_v21, 4  ;;  %v7861_v17 = vrot.slane %v7859_v29, 5 }
 0x13e   :  { %12633 = vmatprep.mubr.msk.bf16.mxu1 %vm273_vm0, %v11064_v40  ;;  %v7856_v40 = vshrl.u32 %v11770_v11, 16  ;;  %v7839_v35 = vrot.slane %v7838_v63, 4  ;;  %v7867_v20 = vrot.slane %v7865_v32, 5  ;;  %v7871_v33 = vrot.slane %v7869_v1, 4 }
 0x13f   :  { %12942 = vmatmul.mubr.msk.bf16.gmra.mrb[44].mxu0 %vm273_vm0, %v13890_v53  ;;  %v7848_v23 = vor.u32 %v7847_v24, %v7843_v0  ;;  %v2348_v53 = vld [vmem:[%s18253_s0 + $0x108] sm:$0xe]  ;;  %v7875_v50 = vshll.u32 %v11772_v56, 16  ;;  %v11773_v24 = vld [vmem:[%s18253_s0 + $0x30] sm:$0xf] }
 0x140   :  { %12945 = vmatprep.mubr.msk.bf16.mxu0 %vm273_vm0, %v13891_v48  ;;  %v7858_v43 = vrot.slane %v7856_v40, 4  ;;  %v7844_v47 = vsel %vm14081_vm3, %v7839_v35, %v7843_v0  ;;  %v16101_v48 = vsel %vm14426_vm6, %v2620_v28, %v2621_v39  ;;  %v11038_v0 = vrot.slane %v2348_v53, 9  ;;  %v11775_v56 = vld [vmem:[%s18253_s0 + $0x38] sm:$0x1]  ;;  %v2351_v40 = vld [vmem:[%s18253_s0 + $0x114] sm:$0xe] }
 0x141   :  { %v7849_v38 = vrot.slane %v7848_v23, 4  ;;  %v11075_v3 = vcombine.low %v16092_v42, %v16101_v48  ;;  %v7872_v16 = vor.u32 %v7871_v33, %v7867_v20  ;;  %v7877_v21 = vrot.slane %v7875_v50, 5 }
 0x142   :  { %v7862_v11 = vor.u32 %v7861_v17, %v7858_v43  ;;  %v2625_v39 = vrot.slane %v2349_v54, 5  ;;  %v7883_v23 = vshll.u32 %v11773_v24, 16  ;;  %v7889_v28 = vshll.u32 %v11774_v4, 16  ;;  %v2353_v43 = vld [vmem:[%s18253_s0 + $0x11c] sm:$0x1] }
 0x143   :  { %v7854_v2 = vsel %vm14081_vm3, %v7849_v38, %v7853_v12  ;;  %v13893_v12 = vld [vmem:[%s18253_s0 + $0x168] sm:$0xff]   ;;  %v7873_v29 = vrot.slane %v7872_v16, 4  ;;  %v7893_v38 = vshrl.u32 %v11774_v4, 16  ;;  %v7899_v33 = vshll.u32 %v11775_v56, 16  ;;  %v13894_v16 = vld [vmem:[%s18253_s0 + $0x174] sm:$0xff]  }
 0x144   :  { %v16129_v63 = vcombine.low %v7844_v47, %v7854_v2  ;;  %v7863_v27 = vrot.slane %v7862_v11, 4  ;;  %v16143_v32 = vsel %vm14426_vm6, %v11038_v0, %v2625_v39  ;;  %v2627_v35 = vrot.slane %v2625_v39, 4  ;;  %v11777_v2 = vld [vmem:[%s18253_s0 + $0x40] sm:$0xf] }
 0x145   :  { %12634 = vmatmul.mubr.msk.bf16.gmra.mrb[16].mxu1 %vm273_vm0, %v11065_v10  ;;  %v7880_v10 = vshrl.u32 %v11773_v24, 16  ;;  %v7885_v1 = vrot.slane %v7883_v23, 5  ;;  %v7878_v17 = vsel %vm14081_vm3, %v7873_v29, %v7877_v21  ;;  %v7891_v47 = vrot.slane %v7889_v28, 5  ;;  %v2355_v28 = vld [vmem:[%s18253_s0 + $0x124] sm:$0xf] }
 0x146   :  { %12637 = vmatprep.mubr.msk.bf16.mxu1 %vm273_vm0, %v11066_v18  ;;  %v7868_v6 = vsel %vm14081_vm3, %v7863_v27, %v7867_v20  ;;  %v16159_v53 = vsel %vm14426_vm6, %v2627_v35, %v2628_v19  ;;  %v11776_v20 = vld [vmem:[%s18253_s0 + $0x3c] sm:$0xf]  ;;  %v7901_v11 = vrot.slane %v7899_v33, 5  ;;  %v11039_v0 = vrot.slane %v2351_v40, 9  ;;  %v2354_v19 = vld [vmem:[%s18253_s0 + $0x120] sm:$0xe] }
 0x147   :  { %12946 = vmatmul.mubr.msk.bf16.gmra.mrb[48].mxu0 %vm273_vm0, %v13892_v61  ;;  %v7882_v18 = vrot.slane %v7880_v10, 4  ;;  %v16164_v50 = vcombine.low %v7868_v6, %v7878_v17  ;;  %v11076_v54 = vcombine.low %v16143_v32, %v16159_v53  ;;  %v7895_v61 = vrot.slane %v7893_v38, 4  ;;  %v13896_v10 = vld [vmem:[%s18253_s0 + $0x180] sm:$0xff]   ;;  %v2356_v6 = vld [vmem:[%s18253_s0 + $0x128] sm:$0x1] }
 0x148   :  { %12949 = vmatprep.mubr.msk.bf16.mxu0 %vm273_vm0, %v13893_v12  ;;  %v2632_v24 = vrot.slane %v2352_v51, 5  ;;  %v2635_v4 = vrot.slane %v2353_v43, 5  ;;  %v11778_v12 = vld [vmem:[%s18253_s0 + $0x44] sm:$0x1]  ;;  %v7904_v56 = vshrl.u32 %v11776_v20, 16  ;;  %v7907_v27 = vshll.u32 %v11776_v20, 16 }
 0x149   :  { %v7886_v34 = vor.u32 %v7885_v1, %v7882_v18  ;;  %v7896_v39 = vor.u32 %v7895_v61, %v7891_v47  ;;  %v7913_v29 = vshll.u32 %v11777_v2, 16  ;;  %v7917_v35 = vshrl.u32 %v11777_v2, 16  ;;  %v11780_v33 = vld [vmem:[%s18253_s0 + $0x4c] sm:$0xf] }
 0x14a   :  { %v16189_v23 = vsel %vm14426_vm6, %v11039_v0, %v2632_v24  ;;  %v2634_v40 = vrot.slane %v2632_v24, 4  ;;  %v7909_v51 = vrot.slane %v7907_v27, 5  ;;  %v7923_v43 = vshll.u32 %v11778_v12, 16 }
 0x14b   :  { %v7887_v21 = vrot.slane %v7886_v34, 4  ;;  %v7897_v44 = vrot.slane %v7896_v39, 4  ;;  %v7915_v1 = vrot.slane %v7913_v29, 5  ;;  %v7919_v38 = vrot.slane %v7917_v35, 4  ;;  %v2359_v39 = vld [vmem:[%s18253_s0 + $0x134] sm:$0x1] }
 0x14c   :  { %v16205_v18 = vsel %vm14426_vm6, %v2634_v40, %v2635_v4  ;;  %v7925_v61 = vrot.slane %v7923_v43, 5  ;;  %v2639_v2 = vrot.slane %v2355_v28, 5  ;;  %v2642_v24 = vrot.slane %v2356_v6, 5  ;;  %v13897_v40 = vld [vmem:[%s18253_s0 + $0x18c] sm:$0xff]  }
 0x14d   :  { %12638 = vmatmul.mubr.msk.bf16.gmra.mrb[20].mxu1 %vm273_vm0, %v11067_v52  ;;  %v7892_v45 = vsel %vm14081_vm3, %v7887_v21, %v7891_v47  ;;  %v7906_v52 = vrot.slane %v7904_v56, 4  ;;  %v7902_v46 = vsel %vm14081_vm3, %v7897_v44, %v7901_v11  ;;  %v11040_v47 = vrot.slane %v2354_v19, 9  ;;  %v11781_v11 = vld [vmem:[%s18253_s0 + $0x50] sm:$0x1]  ;;  %v13898_v44 = vld [vmem:[%s18253_s0 + $0x198] sm:$0xff]  }
 0x14e   :  { %12641 = vmatprep.mubr.msk.bf16.mxu1 %vm273_vm0, %v11068_v5  ;;  %v11077_v5 = vcombine.low %v16189_v23, %v16205_v18  ;;  %v16219_v20 = vcombine.low %v7892_v45, %v7902_v46  ;;  %v7920_v34 = vor.u32 %v7919_v38, %v7915_v1  ;;  %v7928_v4 = vshrl.u32 %v11779_v15, 16  ;;  %v2358_v21 = vld [vmem:[%s18253_s0 + $0x130] sm:$0xf]  ;;  %v11782_v38 = vld [vmem:[%s18253_s0 + $0x54] sm:$0xf] }
 0x14f   :  { %12950 = vmatmul.mubr.msk.bf16.gmra.mrb[52].mxu0 %vm273_vm0, %v13894_v16  ;;  %v7910_v17 = vor.u32 %v7909_v51, %v7906_v52  ;;  %v7931_v12 = vshll.u32 %v11779_v15, 16  ;;  %v2357_v16 = vld [vmem:[%s18253_s0 + $0x12c] sm:$0xe]  ;;  %v16235_v27 = vsel %vm14426_vm6, %v11040_v47, %v2639_v2  ;;  %v2641_v19 = vrot.slane %v2639_v2, 4  ;;  %v11783_v15 = vld [vmem:[%s18253_s0 + $0x58] sm:$0xf] }
 0x150   :  { %12953 = vmatprep.mubr.msk.bf16.mxu0 %vm273_vm0, %v13896_v10  ;;  %v7921_v56 = vrot.slane %v7920_v34, 4  ;;  %v7937_v10 = vshll.u32 %v11780_v33, 16  ;;  %v7930_v35 = vrot.slane %v7928_v4, 4  ;;  %v7941_v45 = vshrl.u32 %v11780_v33, 16  ;;  %v2360_v2 = vld [vmem:[%s18253_s0 + $0x138] sm:$0xe] }
 0x151   :  { %v7911_v0 = vrot.slane %v7910_v17, 4  ;;  %v7933_v28 = vrot.slane %v7931_v12, 5  ;;  %v16253_v51 = vsel %vm14426_vm6, %v2641_v19, %v2642_v24  ;;  %v11041_v17 = vrot.slane %v2357_v16, 9  ;;  %v2361_v12 = vld [vmem:[%s18253_s0 + $0x13c] sm:$0xf] }
 0x152   :  { %v7926_v52 = vsel %vm14081_vm3, %v7921_v56, %v7925_v61  ;;  %v7939_v6 = vrot.slane %v7937_v10, 5  ;;  %v11078_v25 = vcombine.low %v16235_v27, %v16253_v51  ;;  %v7943_v43 = vrot.slane %v7941_v45, 4  ;;  %v2362_v19 = vld [vmem:[%s18253_s0 + $0x140] sm:$0x1]  ;;  %v13899_v45 = vld [vmem:[%s18253_s0 + $0x1a4] sm:$0xff]  }
 0x153   :  { %v7916_v29 = vsel %vm14081_vm3, %v7911_v0, %v7915_v1  ;;  %v7947_v1 = vshll.u32 %v11781_v11, 16  ;;  %v2646_v47 = vrot.slane %v2358_v21, 5  ;;  %v2649_v33 = vrot.slane %v2359_v39, 5  ;;  %v2375_v18 = vld [vmem:[%s18253_s0 + $0x174] sm:$0xe] }
 0x154   :  { %v16262_v7 = vcombine.low %v7916_v29, %v7926_v52  ;;  %v7952_v34 = vshrl.u32 %v11782_v38, 16  ;;  %v7955_v61 = vshll.u32 %v11782_v38, 16  ;;  %v7961_v24 = vshll.u32 %v11783_v15, 16  ;;  %v11786_v38 = vld [vmem:[%s18253_s0 + $0x64] sm:$0xf] }
 0x155   :  { %12642 = vmatmul.mubr.msk.bf16.gmra.mrb[24].mxu1 %vm273_vm0, %v11069_v13  ;;  %v7934_v13 = vor.u32 %v7933_v28, %v7930_v35  ;;  %v7949_v46 = vrot.slane %v7947_v1, 5  ;;  %v16279_v11 = vsel %vm14426_vm6, %v11041_v17, %v2646_v47  ;;  %v2648_v0 = vrot.slane %v2646_v47, 4  ;;  %v11785_v28 = vld [vmem:[%s18253_s0 + $0x60] sm:$0xf]  ;;  %v2376_v27 = vld [vmem:[%s18253_s0 + $0x178] sm:$0xf] }
 0x156   :  { %12645 = vmatprep.mubr.msk.bf16.mxu1 %vm273_vm0, %v11070_v31  ;;  %v7944_v31 = vor.u32 %v7943_v43, %v7939_v6  ;;  %v7965_v4 = vshrl.u32 %v11783_v15, 16  ;;  %v7954_v39 = vrot.slane %v7952_v34, 4  ;;  %v7957_v56 = vrot.slane %v7955_v61, 5 }
 0x157   :  { %12954 = vmatmul.mubr.msk.bf16.gmra.mrb[56].mxu0 %vm273_vm0, %v13897_v40  ;;  %v7935_v9 = vrot.slane %v7934_v13, 4  ;;  %v16291_v10 = vsel %vm14426_vm6, %v2648_v0, %v2649_v33  ;;  %v7963_v40 = vrot.slane %v7961_v24, 5  ;;  %v7971_v35 = vshll.u32 %v11784_v62, 16  ;;  %v2365_v0 = vld [vmem:[%s18253_s0 + $0x14c] sm:$0x1] }
 0x158   :  { %12957 = vmatprep.mubr.msk.bf16.mxu0 %vm273_vm0, %v13898_v44  ;;  %v7945_v21 = vrot.slane %v7944_v31, 4  ;;  %v7967_v29 = vrot.slane %v7965_v4, 4  ;;  %v11079_v52 = vcombine.low %v16279_v11, %v16291_v10  ;;  %v11042_v1 = vrot.slane %v2360_v2, 9 }
 0x159   :  { %v7940_v16 = vsel %vm14081_vm3, %v7935_v9, %v7939_v6  ;;  %v7958_v6 = vor.u32 %v7957_v56, %v7954_v39  ;;  %v7973_v15 = vrot.slane %v7971_v35, 5  ;;  %v2653_v17 = vrot.slane %v2361_v12, 5 }
 0x15a   :  { %v7950_v44 = vsel %vm14081_vm3, %v7945_v21, %v7949_v46  ;;  %v7968_v43 = vor.u32 %v7967_v29, %v7963_v40  ;;  %v11787_v46 = vld [vmem:[%s18253_s0 + $0x68] sm:$0x1]  ;;  %v2656_v33 = vrot.slane %v2362_v19, 5  ;;  %v7976_v62 = vshrl.u32 %v11785_v28, 16  ;;  %v11788_v21 = vld [vmem:[%s18253_s0 + $0x6c] sm:$0xf] }
 0x15b   :  { %v16310_v13 = vcombine.low %v7940_v16, %v7950_v44  ;;  %v7959_v47 = vrot.slane %v7958_v6, 4  ;;  %v7979_v60 = vshll.u32 %v11785_v28, 16  ;;  %v16324_v9 = vsel %vm14426_vm6, %v11042_v1, %v2653_v17  ;;  %v11790_v44 = vld [vmem:[%s18253_s0 + $0x74] sm:$0x1] }
 0x15c   :  { %v2655_v31 = vrot.slane %v2653_v17, 4  ;;  %v7985_v34 = vshll.u32 %v11786_v38, 16  ;;  %v7989_v2 = vshrl.u32 %v11786_v38, 16  ;;  %v7995_v16 = vshll.u32 %v11787_v46, 16 }
 0x15d   :  { %12646 = vmatmul.mubr.msk.bf16.gmra.mrb[28].mxu1 %vm273_vm0, %v11071_v22  ;;  %v7969_v22 = vrot.slane %v7968_v43, 4  ;;  %v7964_v26 = vsel %vm14081_vm3, %v7959_v47, %v7963_v40  ;;  %v7981_v61 = vrot.slane %v7979_v60, 5  ;;  %v11789_v40 = vld [vmem:[%s18253_s0 + $0x70] sm:$0xf]  ;;  %v11043_v35 = vrot.slane %v2363_v59, 9 }
 0x15e   :  { %12649 = vmatprep.mubr.msk.bf16.mxu1 %vm273_vm0, %v11072_v36  ;;  %v7978_v36 = vrot.slane %v7976_v62, 4  ;;  %v16341_v4 = vsel %vm14426_vm6, %v2655_v31, %v2656_v33  ;;  %v7987_v12 = vrot.slane %v7985_v34, 5  ;;  %v7997_v29 = vrot.slane %v7995_v16, 5  ;;  %v2367_v62 = vld [vmem:[%s18253_s0 + $0x154] sm:$0xf] }
 0x15f   :  { %12958 = vmatmul.mubr.msk.bf16.gmra.mrb[60].mxu0 %vm273_vm0, %v13899_v45  ;;  %v7974_v24 = vsel %vm14081_vm3, %v7969_v22, %v7973_v15  ;;  %v11080_v56 = vcombine.low %v16324_v9, %v16341_v4  ;;  %v2660_v28 = vrot.slane %v2364_v8, 5  ;;  %v2663_v45 = vrot.slane %v2365_v0, 5  ;;  %v2366_v15 = vld [vmem:[%s18253_s0 + $0x150] sm:$0xe]  ;;  %v2368_v59 = vld [vmem:[%s18253_s0 + $0x158] sm:$0x1] }
 0x160   :  { %12967 = vmatprep.mubr.msk.bf16.mxu0 %vm273_vm0, %v16129_v63  ;;  %v16346_v39 = vcombine.low %v7964_v26, %v7974_v24  ;;  %v7982_v19 = vor.u32 %v7981_v61, %v7978_v36  ;;  %v7991_v63 = vrot.slane %v7989_v2, 4  ;;  %v8000_v38 = vshrl.u32 %v11788_v21, 16  ;;  %v13902_v22 = vld [vmem:[%s18254_s1 + $0xc8] sm:$0xff]   ;;  %v11791_v34 = vld [vmem:[%s18253_s0 + $0x78] sm:$0xf]  ;;  %v13939_v0 = vld [vmem:[%s18254_s1 + $0xc0] sm:$0xff]  }
 0x161   :  { %v8003_v43 = vshll.u32 %v11788_v21, 16  ;;  %v16365_v17 = vsel %vm14426_vm6, %v11043_v35, %v2660_v28  ;;  %v2662_v46 = vrot.slane %v2660_v28, 4  ;;  %v8009_v47 = vshll.u32 %v11789_v40, 16  ;;  %v11792_v2 = vld [vmem:[%s18253_s0 + $0x7c] sm:$0xf] }
 0x162   :  { %v7983_v6 = vrot.slane %v7982_v19, 4  ;;  %v7992_v1 = vor.u32 %v7991_v63, %v7987_v12  ;;  %v8013_v33 = vshrl.u32 %v11789_v40, 16  ;;  %v11044_v61 = vrot.slane %v2366_v15, 9  ;;  %v11793_v21 = vld [vmem:[%s18253_s0 + $0x80] sm:$0x1]  ;;  %v13911_v19 = vld [vmem:[%s18254_s1 + $0xd0] sm:$0xff]  }
 0x163   :  { %v8005_v60 = vrot.slane %v8003_v43, 5  ;;  %v16384_v31 = vsel %vm14426_vm6, %v2662_v46, %v2663_v45  ;;  %v8011_v41 = vrot.slane %v8009_v47, 5  ;;  %v2667_v16 = vrot.slane %v2367_v62, 5  ;;  %v2371_v47 = vld [vmem:[%s18253_s0 + $0x164] sm:$0x1] }
 0x164   :  { %v7988_v37 = vsel %vm14081_vm3, %v7983_v6, %v7987_v12  ;;  %v7993_v49 = vrot.slane %v7992_v1, 4  ;;  %v8015_v58 = vrot.slane %v8013_v33, 4  ;;  %v11081_v26 = vcombine.low %v16365_v17, %v16384_v31  ;;  %v2370_v1 = vld [vmem:[%s18253_s0 + $0x160] sm:$0xf] }
 0x165   :  { %12650 = vmatmul.mubr.msk.bf16.gmra.mrb[32].mxu1 %vm273_vm0, %v11073_v55  ;;  %v8002_v55 = vrot.slane %v8000_v38, 4  ;;  %v2670_v40 = vrot.slane %v2368_v59, 5  ;;  %v8027_v35 = vshll.u32 %v11791_v34, 16  ;;  %v16416_v45 = vsel %vm14426_vm6, %v11044_v61, %v2667_v16  ;;  %v11795_v59 = vld [vmem:[%s18253_s0 + $0x88] sm:$0xf] }
 0x166   :  { %12653 = vmatprep.mubr.msk.bf16.mxu1 %vm273_vm0, %v11074_v57  ;;  %v8019_v57 = vshll.u32 %v11790_v44, 16  ;;  %v7998_v8 = vsel %vm14081_vm3, %v7993_v49, %v7997_v29  ;;  %v8016_v24 = vor.u32 %v8015_v58, %v8011_v41  ;;  %v8024_v29 = vshrl.u32 %v11791_v34, 16  ;;  %v2372_v58 = vld [vmem:[%s18253_s0 + $0x168] sm:$0xe] }
 0x167   :  { %12968 = vmatmul.mubr.msk.bf16.vlgmr.msra.gmra.mrb[0].mxu0 %vm273_vm0, %v16164_v50  ;;  %v8006_v36 = vor.u32 %v8005_v60, %v8002_v55  ;;  %v16403_v50 = vcombine.low %v7988_v37, %v7998_v8  ;;  %v2669_v44 = vrot.slane %v2667_v16, 4  ;;  %v8033_v6 = vshll.u32 %v11792_v2, 16  ;;  %v11794_v55 = vld [vmem:[%s18253_s0 + $0x84] sm:$0xf] }
 0x168   :  { %13032 = vmatpush3.bf16.msra.mxu0 %v13939_v0  ;;  %12971 = vmatprep.mubr.msk.bf16.mxu0 %vm273_vm0, %v16219_v20  ;;  %v8021_v12 = vrot.slane %v8019_v57, 5  ;;  %v2369_v20 = vld [vmem:[%s18253_s0 + $0x15c] sm:$0xe]  ;;  %v8017_v28 = vrot.slane %v8016_v24, 4  ;;  %v8026_v43 = vrot.slane %v8024_v29, 4  ;;  %v8029_v15 = vrot.slane %v8027_v35, 5 }
 0x169   :  { %v8007_v63 = vrot.slane %v8006_v36, 4  ;;  %13033 = vmatprep.subr.bf16.mxu0 %v13902_v22  ;;  %v8037_v46 = vshrl.u32 %v11792_v2, 16  ;;  %v16434_v62 = vsel %vm14426_vm6, %v2669_v44, %v2670_v40  ;;  %v8035_v37 = vrot.slane %v8033_v6, 5 }
 0x16a   :  { %v8022_v33 = vsel %vm14081_vm3, %v8017_v28, %v8021_v12  ;;  %v8043_v49 = vshll.u32 %v11793_v21, 16  ;;  %v11082_v48 = vcombine.low %v16416_v45, %v16434_v62  ;;  %v11045_v32 = vrot.slane %v2369_v20, 9  ;;  %v2373_v12 = vld [vmem:[%s18253_s0 + $0x16c] sm:$0xf]  ;;  %v11808_v45 = vld [vmem:[%s18253_s0 + $0xbc] sm:$0x1] }
 0x16b   :  { %v8012_v38 = vsel %vm14081_vm3, %v8007_v63, %v8011_v41  ;;  %v8039_v60 = vrot.slane %v8037_v46, 4  ;;  %v2674_v53 = vrot.slane %v2370_v1, 5  ;;  %v8048_v8 = vshrl.u32 %v11794_v55, 16 }
 0x16c   :  { %13034 = vmatpush3.bf16.msra.mxu0 %v13902_v22  ;;  %v16443_v42 = vcombine.low %v8012_v38, %v8022_v33  ;;  %v11796_v22 = vld [vmem:[%s18253_s0 + $0x8c] sm:$0x1]  ;;  %v8045_v41 = vrot.slane %v8043_v49, 5  ;;  %v8051_v36 = vshll.u32 %v11794_v55, 16  ;;  %v8057_v0 = vshll.u32 %v11795_v59, 16 }
 0x16d   :  { %12654 = vmatmul.mubr.msk.bf16.gmra.mrb[36].mxu1 %vm273_vm0, %v11075_v3  ;;  %v8030_v3 = vor.u32 %v8029_v15, %v8026_v43  ;;  %13035 = vmatprep.subr.bf16.mxu0 %v13911_v19  ;;  %v8040_v34 = vor.u32 %v8039_v60, %v8035_v37  ;;  %v16462_v61 = vsel %vm14426_vm6, %v11045_v32, %v2674_v53  ;;  %v2676_v2 = vrot.slane %v2674_v53, 4  ;;  %v11798_v38 = vld [vmem:[%s18253_s0 + $0x94] sm:$0xf]  ;;  %v11799_v33 = vld [vmem:[%s18253_s0 + $0x98] sm:$0x1] }
 0x16e   :  { %12657 = vmatprep.mubr.msk.bf16.mxu1 %vm273_vm0, %v11076_v54  ;;  %v2677_v54 = vrot.slane %v2371_v47, 5  ;;  %v8061_v24 = vshrl.u32 %v11795_v59, 16  ;;  %v8050_v21 = vrot.slane %v8048_v8, 4  ;;  %v8053_v63 = vrot.slane %v8051_v36, 5  ;;  %v2377_v32 = vld [vmem:[%s18253_s0 + $0x17c] sm:$0x1] }
 0x16f   :  { %12972 = vmatmul.mubr.msk.bf16.gmra.mrb[4].mxu0 %vm273_vm0, %v16262_v7  ;;  %v8031_v57 = vrot.slane %v8030_v3, 4  ;;  %v8041_v16 = vrot.slane %v8040_v34, 4  ;;  %v8059_v29 = vrot.slane %v8057_v0, 5  ;;  %v8067_v20 = vshll.u32 %v11796_v22, 16  ;;  %v11801_v34 = vld [vmem:[%s18253_s0 + $0xa0] sm:$0xf] }
 0x170   :  { %12975 = vmatprep.mubr.msk.bf16.mxu0 %vm273_vm0, %v16310_v13  ;;  %13036 = vmatpush3.bf16.msra.mxu0 %v13911_v19  ;;  %v2374_v13 = vld [vmem:[%s18253_s0 + $0x170] sm:$0x1]  ;;  %v16474_v40 = vsel %vm14426_vm6, %v2676_v2, %v2677_v54  ;;  %v8063_v35 = vrot.slane %v8061_v24, 4  ;;  %v8054_v6 = vor.u32 %v8053_v63, %v8050_v21  ;;  %v11046_v1 = vrot.slane %v2372_v58, 9  ;;  %v11802_v0 = vld [vmem:[%s18253_s0 + $0xa4] sm:$0x1] }
 0x171   :  { %v8036_v7 = vsel %vm14081_vm3, %v8031_v57, %v8035_v37  ;;  %v11797_v19 = vld [vmem:[%s18253_s0 + $0x90] sm:$0xf]  ;;  %v8046_v28 = vsel %vm14081_vm3, %v8041_v16, %v8045_v41  ;;  %v11083_v44 = vcombine.low %v16462_v61, %v16474_v40  ;;  %v8069_v46 = vrot.slane %v8067_v20, 5  ;;  %v11800_v57 = vld [vmem:[%s18253_s0 + $0x9c] sm:$0xf] }
 0x172   :  { %v16490_v43 = vcombine.low %v8036_v7, %v8046_v28  ;;  %v8064_v15 = vor.u32 %v8063_v35, %v8059_v29  ;;  %v2681_v47 = vrot.slane %v2373_v12, 5  ;;  %v8055_v37 = vrot.slane %v8054_v6, 4  ;;  %v2378_v21 = vld [vmem:[%s18253_s0 + $0x180] sm:$0xe]  ;;  %v2379_v20 = vld [vmem:[%s18253_s0 + $0x184] sm:$0xf] }
 0x173   :  { %v2684_v49 = vrot.slane %v2374_v13, 5  ;;  %v8072_v55 = vshrl.u32 %v11797_v19, 16  ;;  %v8075_v23 = vshll.u32 %v11797_v19, 16  ;;  %v8081_v59 = vshll.u32 %v11798_v38, 16 }
 0x174   :  { %v16504_v3 = vsel %vm14426_vm6, %v11046_v1, %v2681_v47  ;;  %v2683_v60 = vrot.slane %v2681_v47, 4  ;;  %v8060_v51 = vsel %vm14081_vm3, %v8055_v37, %v8059_v29  ;;  %v8085_v41 = vshrl.u32 %v11798_v38, 16  ;;  %v2380_v38 = vld [vmem:[%s18253_s0 + $0x188] sm:$0x1] }
 0x175   :  { %12658 = vmatmul.mubr.msk.bf16.gmra.mrb[40].mxu1 %vm273_vm0, %v11077_v5  ;;  %v8065_v5 = vrot.slane %v8064_v15, 4  ;;  %v8077_v22 = vrot.slane %v8075_v23, 5  ;;  %v8091_v58 = vshll.u32 %v11799_v33, 16  ;;  %v11047_v12 = vrot.slane %v2375_v18, 9  ;;  %v11803_v15 = vld [vmem:[%s18253_s0 + $0xa8] sm:$0xf] }
 0x176   :  { %12661 = vmatprep.mubr.msk.bf16.mxu1 %vm273_vm0, %v11078_v25  ;;  %v8074_v25 = vrot.slane %v8072_v55, 4  ;;  %v16522_v54 = vsel %vm14426_vm6, %v2683_v60, %v2684_v49  ;;  %v8087_v2 = vrot.slane %v8085_v41, 4  ;;  %v2688_v7 = vrot.slane %v2376_v27, 5  ;;  %v11804_v23 = vld [vmem:[%s18253_s0 + $0xac] sm:$0xf] }
 0x177   :  { %12976 = vmatmul.mubr.msk.bf16.gmra.mrb[8].mxu0 %vm273_vm0, %v16346_v39  ;;  %v8070_v53 = vsel %vm14081_vm3, %v8065_v5, %v8069_v46  ;;  %v8083_v39 = vrot.slane %v8081_v59, 5  ;;  %v8093_v24 = vrot.slane %v8091_v58, 5  ;;  %v2691_v16 = vrot.slane %v2377_v32, 5  ;;  %v2381_v41 = vld [vmem:[%s18253_s0 + $0x18c] sm:$0xe] }
 0x178   :  { %12979 = vmatprep.mubr.msk.bf16.mxu0 %vm273_vm0, %v16403_v50  ;;  %v16530_v8 = vcombine.low %v8060_v51, %v8070_v53  ;;  %v11084_v50 = vcombine.low %v16504_v3, %v16522_v54  ;;  %v8078_v36 = vor.u32 %v8077_v22, %v8074_v25  ;;  %v8096_v29 = vshrl.u32 %v11800_v57, 16  ;;  %v2382_v58 = vld [vmem:[%s18253_s0 + $0x190] sm:$0xf] }
 0x179   :  { %v8088_v13 = vor.u32 %v8087_v2, %v8083_v39  ;;  %v8099_v35 = vshll.u32 %v11800_v57, 16  ;;  %v16549_v19 = vsel %vm14426_vm6, %v11047_v12, %v2688_v7  ;;  %v2690_v28 = vrot.slane %v2688_v7, 4 }
 0x17a   :  { %v8079_v63 = vrot.slane %v8078_v36, 4  ;;  %v8105_v6 = vshll.u32 %v11801_v34, 16  ;;  %v8109_v1 = vshrl.u32 %v11801_v34, 16  ;;  %v8115_v49 = vshll.u32 %v11802_v0, 16  ;;  %v2383_v0 = vld [vmem:[%s18253_s0 + $0x194] sm:$0x1] }
 0x17b   :  { %v8089_v10 = vrot.slane %v8088_v13, 4  ;;  %v8101_v46 = vrot.slane %v8099_v35, 5  ;;  %v16565_v47 = vsel %vm14426_vm6, %v2690_v28, %v2691_v16  ;;  %v11048_v55 = vrot.slane %v2378_v21, 9  ;;  %v11806_v21 = vld [vmem:[%s18253_s0 + $0xb4] sm:$0xf] }
 0x17c   :  { %v8084_v11 = vsel %vm14081_vm3, %v8079_v63, %v8083_v39  ;;  %v8107_v33 = vrot.slane %v8105_v6, 5  ;;  %v8111_v37 = vrot.slane %v8109_v1, 4  ;;  %v11085_v4 = vcombine.low %v16549_v19, %v16565_v47  ;;  %v11807_v13 = vld [vmem:[%s18253_s0 + $0xb8] sm:$0xf] }
 0x17d   :  { %12662 = vmatmul.mubr.msk.bf16.gmra.mrb[44].mxu1 %vm273_vm0, %v11079_v52  ;;  %v8098_v52 = vrot.slane %v8096_v29, 4  ;;  %v8094_v9 = vsel %vm14081_vm3, %v8089_v10, %v8093_v24  ;;  %v8117_v60 = vrot.slane %v8115_v49, 5  ;;  %v2695_v59 = vrot.slane %v2379_v20, 5 }
 0x17e   :  { %12665 = vmatprep.mubr.msk.bf16.mxu1 %vm273_vm0, %v11080_v56  ;;  %v11879_v18 = vcombine.low %v8084_v11, %v8094_v9  ;;  %v8112_v5 = vor.u32 %v8111_v37, %v8107_v33  ;;  %v2698_v51 = vrot.slane %v2380_v38, 5  ;;  %v8120_v25 = vshrl.u32 %v11803_v15, 16  ;;  %v11809_v38 = vld [vmem:[%s18253_s0 + $0xc0] sm:$0xf] }
 0x17f   :  { %12980 = vmatmul.mubr.msk.bf16.gmra.mrb[12].mxu0 %vm273_vm0, %v16443_v42  ;;  %v8102_v56 = vor.u32 %v8101_v46, %v8098_v52  ;;  %v11805_v42 = vld [vmem:[%s18253_s0 + $0xb0] sm:$0x1]  ;;  %v8123_v22 = vshll.u32 %v11803_v15, 16  ;;  %v2697_v53 = vrot.slane %v2695_v59, 4  ;;  %v8129_v39 = vshll.u32 %v11804_v23, 16 }
 0x180   :  { %12983 = vmatprep.mubr.msk.bf16.mxu0 %vm273_vm0, %v16490_v43  ;;  %v8113_v32 = vrot.slane %v8112_v5, 4  ;;  %v16586_v43 = vsel %vm14426_vm6, %v11048_v55, %v2695_v59  ;;  %v8122_v34 = vrot.slane %v8120_v25, 4  ;;  %v8133_v2 = vshrl.u32 %v11804_v23, 16  ;;  %v11810_v23 = vld [vmem:[%s18253_s0 + $0xc4] sm:$0xf] }
 0x181   :  { %v8103_v27 = vrot.slane %v8102_v56, 4  ;;  %v8125_v36 = vrot.slane %v8123_v22, 5  ;;  %v16604_v12 = vsel %vm14426_vm6, %v2697_v53, %v2698_v51  ;;  %v8131_v7 = vrot.slane %v8129_v39, 5  ;;  %v11811_v59 = vld [vmem:[%s18253_s0 + $0xc8] sm:$0x1] }
 0x182   :  { %v8118_v24 = vsel %vm14081_vm3, %v8113_v32, %v8117_v60  ;;  %v8139_v16 = vshll.u32 %v11805_v42, 16  ;;  %v11086_v31 = vcombine.low %v16586_v43, %v16604_v12  ;;  %v8135_v63 = vrot.slane %v8133_v2, 4  ;;  %v11820_v43 = vld [vmem:[%s18253_s0 + $0x104] sm:$0x1]  ;;  %v13903_v12 = vld [vmem:[%s18253_s0 + $0xc] sm:$0xff]  }
 0x183   :  { %v8108_v57 = vsel %vm14081_vm3, %v8103_v27, %v8107_v33  ;;  %v11049_v35 = vrot.slane %v2381_v41, 9  ;;  %v2702_v20 = vrot.slane %v2382_v58, 5  ;;  %v2705_v28 = vrot.slane %v2383_v0, 5  ;;  %v11812_v27 = vld [vmem:[%s18253_s0 + $0xcc] sm:$0xf] }
 0x184   :  { %v11880_v17 = vcombine.low %v8108_v57, %v8118_v24  ;;  %v8141_v29 = vrot.slane %v8139_v16, 5  ;;  %v8144_v6 = vshrl.u32 %v11806_v21, 16  ;;  %v8147_v1 = vshll.u32 %v11806_v21, 16  ;;  %v11813_v57 = vld [vmem:[%s18253_s0 + $0xd0] sm:$0xf] }
 0x185   :  { %12666 = vmatmul.mubr.msk.bf16.gmra.mrb[48].mxu1 %vm273_vm0, %v11081_v26  ;;  %v8126_v26 = vor.u32 %v8125_v36, %v8122_v34  ;;  %v16629_v15 = vsel %vm14426_vm6, %v11049_v35, %v2702_v20  ;;  %v2704_v11 = vrot.slane %v2702_v20, 4  ;;  %v8153_v10 = vshll.u32 %v11807_v13, 16  ;;  %v11814_v34 = vld [vmem:[%s18253_s0 + $0xd4] sm:$0x1]  ;;  %v11815_v0 = vld [vmem:[%s18253_s0 + $0xf0] sm:$0xf] }
 0x186   :  { %12669 = vmatprep.mubr.msk.bf16.mxu1 %vm273_vm0, %v11082_v48  ;;  %v8136_v48 = vor.u32 %v8135_v63, %v8131_v7  ;;  %v8157_v52 = vshrl.u32 %v11807_v13, 16  ;;  %v8146_v33 = vrot.slane %v8144_v6, 4  ;;  %v8149_v37 = vrot.slane %v8147_v1, 5  ;;  %v11817_v35 = vld [vmem:[%s18253_s0 + $0xf8] sm:$0x1] }
 0x187   :  { %12984 = vmatmul.mubr.msk.bf16.gmra.mrb[16].mxu0 %vm273_vm0, %v16530_v8  ;;  %v8127_v62 = vrot.slane %v8126_v26, 4  ;;  %v16635_v49 = vsel %vm14426_vm6, %v2704_v11, %v2705_v28  ;;  %v8155_v9 = vrot.slane %v8153_v10, 5  ;;  %v8163_v55 = vshll.u32 %v11808_v45, 16 }
 0x188   :  { %12987 = vmatprep.mubr.msk.bf16.mxu0 %vm273_vm0, %v11879_v18  ;;  %v8137_v46 = vrot.slane %v8136_v48, 4  ;;  %v8159_v56 = vrot.slane %v8157_v52, 4  ;;  %v11087_v5 = vcombine.low %v16629_v15, %v16635_v49  ;;  %v8150_v60 = vor.u32 %v8149_v37, %v8146_v33  ;;  %v11818_v48 = vld [vmem:[%s18253_s0 + $0xfc] sm:$0xf] }
 0x189   :  { %v8132_v8 = vsel %vm14081_vm3, %v8127_v62, %v8131_v7  ;;  %v8168_v42 = vshrl.u32 %v11809_v38, 16  ;;  %v8165_v22 = vrot.slane %v8163_v55, 5  ;;  %v8171_v41 = vshll.u32 %v11809_v38, 16 }
 0x18a   :  { %v8142_v18 = vsel %vm14081_vm3, %v8137_v46, %v8141_v29  ;;  %v8160_v25 = vor.u32 %v8159_v56, %v8155_v9  ;;  %v8151_v32 = vrot.slane %v8150_v60, 4  ;;  %v8177_v39 = vshll.u32 %v11810_v23, 16  ;;  %v11816_v29 = vld [vmem:[%s18253_s0 + $0xf4] sm:$0xf] }
 0x18b   :  { %v11881_v51 = vcombine.low %v8132_v8, %v8142_v18  ;;  %v8170_v53 = vrot.slane %v8168_v42, 4  ;;  %v8181_v58 = vshrl.u32 %v11810_v23, 16  ;;  %v8173_v40 = vrot.slane %v8171_v41, 5  ;;  %v11819_v23 = vld [vmem:[%s18253_s0 + $0x100] sm:$0xf] }
 0x18c   :  { %v8161_v61 = vrot.slane %v8160_v25, 4  ;;  %v8192_v36 = vshrl.u32 %v11812_v27, 16  ;;  %v8156_v3 = vsel %vm14081_vm3, %v8151_v32, %v8155_v9  ;;  %v8179_v54 = vrot.slane %v8177_v39, 5  ;;  %v11821_v42 = vld [vmem:[%s18253_s0 + $0x108] sm:$0xf] }
 0x18d   :  { %12670 = vmatmul.mubr.msk.bf16.gmra.mrb[52].mxu1 %vm273_vm0, %v11083_v44  ;;  %v8187_v44 = vshll.u32 %v11811_v59, 16  ;;  %v8195_v2 = vshll.u32 %v11812_v27, 16  ;;  %v8174_v7 = vor.u32 %v8173_v40, %v8170_v53  ;;  %v8201_v13 = vshll.u32 %v11813_v57, 16 }
 0x18e   :  { %12673 = vmatprep.mubr.msk.bf16.mxu1 %vm273_vm0, %v11084_v50  ;;  %v8183_v50 = vrot.slane %v8181_v58, 4  ;;  %v8166_v24 = vsel %vm14081_vm3, %v8161_v61, %v8165_v22  ;;  %v8194_v21 = vrot.slane %v8192_v36, 4  ;;  %v8205_v28 = vshrl.u32 %v11813_v57, 16 }
 0x18f   :  { %12988 = vmatmul.mubr.msk.bf16.gmra.mrb[20].mxu0 %vm273_vm0, %v11880_v17  ;;  %v8189_v16 = vrot.slane %v8187_v44, 5  ;;  %v11882_v26 = vcombine.low %v8156_v3, %v8166_v24  ;;  %v8197_v63 = vrot.slane %v8195_v2, 5  ;;  %v8175_v20 = vrot.slane %v8174_v7, 4  ;;  %v11822_v44 = vld [vmem:[%s18253_s0 + $0x10c] sm:$0xf] }
 0x190   :  { %12991 = vmatprep.mubr.msk.bf16.mxu0 %vm273_vm0, %v11881_v51  ;;  %v8184_v17 = vor.u32 %v8183_v50, %v8179_v54  ;;  %v8211_v45 = vshll.u32 %v11814_v34, 16  ;;  %v8216_v62 = vshrl.u32 %v11815_v0, 16  ;;  %v8203_v38 = vrot.slane %v8201_v13, 5  ;;  %v11823_v50 = vld [vmem:[%s18253_s0 + $0x110] sm:$0x1] }
 0x191   :  { %v8198_v1 = vor.u32 %v8197_v63, %v8194_v21  ;;  %v8219_v11 = vshll.u32 %v11815_v0, 16  ;;  %v8180_v10 = vsel %vm14081_vm3, %v8175_v20, %v8179_v54  ;;  %v8207_v52 = vrot.slane %v8205_v28, 4  ;;  %v11824_v63 = vld [vmem:[%s18253_s0 + $0x114] sm:$0xf] }
 0x192   :  { %v8185_v6 = vrot.slane %v8184_v17, 4  ;;  %v8213_v8 = vrot.slane %v8211_v45, 5  ;;  %v8218_v46 = vrot.slane %v8216_v62, 4  ;;  %v8225_v56 = vshll.u32 %v11816_v29, 16 }
 0x193   :  { %v8199_v37 = vrot.slane %v8198_v1, 4  ;;  %v8221_v9 = vrot.slane %v8219_v11, 5  ;;  %v8208_v47 = vor.u32 %v8207_v52, %v8203_v38  ;;  %v8235_v55 = vshll.u32 %v11817_v35, 16  ;;  %v13904_v35 = vld [vmem:[%s18253_s0 + $0x18] sm:$0xff]  }
 0x194   :  { %v8190_v33 = vsel %vm14081_vm3, %v8185_v6, %v8189_v16  ;;  %v8227_v60 = vrot.slane %v8225_v56, 5  ;;  %v8240_v59 = vshrl.u32 %v11818_v48, 16  ;;  %v8243_v22 = vshll.u32 %v11818_v48, 16  ;;  %v11826_v48 = vld [vmem:[%s18253_s0 + $0x11c] sm:$0x1]  ;;  %v13905_v6 = vld [vmem:[%s18253_s0 + $0x24] sm:$0xff]  }
 0x195   :  { %12674 = vmatmul.mubr.msk.bf16.gmra.mrb[56].mxu1 %vm273_vm0, %v11085_v4  ;;  %v11883_v19 = vcombine.low %v8180_v10, %v8190_v33  ;;  %v8229_v4 = vshrl.u32 %v11816_v29, 16  ;;  %v8222_v18 = vor.u32 %v8221_v9, %v8218_v46  ;;  %v8209_v27 = vrot.slane %v8208_v47, 4  ;;  %v11825_v29 = vld [vmem:[%s18253_s0 + $0x118] sm:$0xf] }
 0x196   :  { %12677 = vmatprep.mubr.msk.bf16.mxu1 %vm273_vm0, %v11086_v31  ;;  %v8204_v31 = vsel %vm14081_vm3, %v8199_v37, %v8203_v38  ;;  %v8237_v25 = vrot.slane %v8235_v55, 5  ;;  %v8242_v32 = vrot.slane %v8240_v59, 4  ;;  %v8249_v53 = vshll.u32 %v11819_v23, 16  ;;  %v11827_v37 = vld [vmem:[%s18253_s0 + $0x120] sm:$0xf] }
 0x197   :  { %12992 = vmatmul.mubr.msk.bf16.gmra.mrb[24].mxu0 %vm273_vm0, %v11882_v26  ;;  %v8231_v51 = vrot.slane %v8229_v4, 4  ;;  %v8223_v41 = vrot.slane %v8222_v18, 4  ;;  %v8253_v39 = vshrl.u32 %v11819_v23, 16  ;;  %v8214_v58 = vsel %vm14081_vm3, %v8209_v27, %v8213_v8  ;;  %v11828_v4 = vld [vmem:[%s18253_s0 + $0x124] sm:$0xf] }
 0x198   :  { %12995 = vmatprep.mubr.msk.bf16.mxu0 %vm273_vm0, %v11883_v19  ;;  %v8245_v61 = vrot.slane %v8243_v22, 5  ;;  %v8259_v40 = vshll.u32 %v11820_v43, 16  ;;  %v11884_v34 = vcombine.low %v8204_v31, %v8214_v58  ;;  %v8251_v3 = vrot.slane %v8249_v53, 5  ;;  %v11829_v22 = vld [vmem:[%s18253_s0 + $0x128] sm:$0x1] }
 0x199   :  { %v8232_v57 = vor.u32 %v8231_v51, %v8227_v60  ;;  %v8228_v36 = vsel %vm14081_vm3, %v8223_v41, %v8227_v60  ;;  %v8255_v54 = vrot.slane %v8253_v39, 4  ;;  %v8264_v7 = vshrl.u32 %v11821_v42, 16 }
 0x19a   :  { %v8246_v0 = vor.u32 %v8245_v61, %v8242_v32  ;;  %v8261_v24 = vrot.slane %v8259_v40, 5  ;;  %v8267_v21 = vshll.u32 %v11821_v42, 16  ;;  %v8273_v26 = vshll.u32 %v11822_v44, 16  ;;  %v13940_v42 = vld [vmem:[%s18254_s1 + $0x60] sm:$0xff]   ;;  %v11830_v32 = vld [vmem:[%s18253_s0 + $0x12c] sm:$0xf] }
 0x19b   :  { %v8233_v2 = vrot.slane %v8232_v57, 4  ;;  %v8256_v16 = vor.u32 %v8255_v54, %v8251_v3  ;;  %v8277_v17 = vshrl.u32 %v11822_v44, 16  ;;  %v8266_v49 = vrot.slane %v8264_v7, 4  ;;  %v11831_v61 = vld [vmem:[%s18253_s0 + $0x130] sm:$0xf]  ;;  %v13941_v40 = vld [vmem:[%s18254_s1 + $0x68] sm:$0xff]  }
 0x19c   :  { %v8247_v15 = vrot.slane %v8246_v0, 4  ;;  %v8269_v45 = vrot.slane %v8267_v21, 5  ;;  %v8275_v62 = vrot.slane %v8273_v26, 5  ;;  %v8288_v10 = vshrl.u32 %v11824_v63, 16  ;;  %v13906_v54 = vld [vmem:[%s18253_s0 + $0x30] sm:$0xff]  }
 0x19d   :  { %12678 = vmatmul.mubr.msk.bf16.gmra.mrb[60].mxu1 %vm273_vm0, %v11087_v5  ;;  %v8238_v13 = vsel %vm14081_vm3, %v8233_v2, %v8237_v25  ;;  %v8283_v5 = vshll.u32 %v11823_v50, 16  ;;  %v8257_v28 = vrot.slane %v8256_v16, 4  ;;  %v8279_v38 = vrot.slane %v8277_v17, 4  ;;  %v13907_v16 = vld [vmem:[%s18253_s0 + $0x3c] sm:$0xff]  }
 0x19e   :  { %12687 = vmatprep.mubr.msk.bf16.mxu1 %vm273_vm0, %v13903_v12  ;;  %v11885_v20 = vcombine.low %v8228_v36, %v8238_v13  ;;  %v8252_v1 = vsel %vm14081_vm3, %v8247_v15, %v8251_v3  ;;  %v8270_v8 = vor.u32 %v8269_v45, %v8266_v49  ;;  %v8291_v46 = vshll.u32 %v11824_v63, 16  ;;  %v11833_v13 = vld [vmem:[%s18253_s0 + $0x138] sm:$0xf] }
 0x19f   :  { %12996 = vmatmul.mubr.msk.bf16.gmra.mrb[28].mxu0 %vm273_vm0, %v11884_v34  ;;  %v8285_v11 = vrot.slane %v8283_v5, 5  ;;  %v8262_v52 = vsel %vm14081_vm3, %v8257_v28, %v8261_v24  ;;  %v8297_v33 = vshll.u32 %v11825_v29, 16  ;;  %v8280_v56 = vor.u32 %v8279_v38, %v8275_v62  ;;  %v11832_v24 = vld [vmem:[%s18253_s0 + $0x134] sm:$0x1] }
 0x1a0   :  { %12999 = vmatprep.mubr.msk.bf16.mxu0 %vm273_vm0, %v11885_v20  ;;  %v11886_v9 = vcombine.low %v8252_v1, %v8262_v52  ;;  %v8290_v19 = vrot.slane %v8288_v10, 4  ;;  %v8301_v47 = vshrl.u32 %v11825_v29, 16  ;;  %v8271_v55 = vrot.slane %v8270_v8, 4  ;;  %v13942_v20 = vld [vmem:[%s18254_s1 + $0x70] sm:$0xff]  }
 0x1a1   :  { %v8293_v23 = vrot.slane %v8291_v46, 5  ;;  %v8299_v43 = vrot.slane %v8297_v33, 5  ;;  %v8307_v12 = vshll.u32 %v11826_v48, 16  ;;  %v8281_v31 = vrot.slane %v8280_v56, 4 }
 0x1a2   :  { %v8303_v18 = vrot.slane %v8301_v47, 4  ;;  %v8312_v60 = vshrl.u32 %v11827_v37, 16  ;;  %v8315_v59 = vshll.u32 %v11827_v37, 16  ;;  %v8276_v27 = vsel %vm14081_vm3, %v8271_v55, %v8275_v62  ;;  %v11836_v37 = vld [vmem:[%s18253_s0 + $0x144] sm:$0xf] }
 0x1a3   :  { %v8294_v51 = vor.u32 %v8293_v23, %v8290_v19  ;;  %v8309_v25 = vrot.slane %v8307_v12, 5  ;;  %v8321_v41 = vshll.u32 %v11828_v4, 16  ;;  %v8286_v53 = vsel %vm14081_vm3, %v8281_v31, %v8285_v11  ;;  %v11835_v11 = vld [vmem:[%s18253_s0 + $0x140] sm:$0x1]  ;;  %v13908_v31 = vld [vmem:[%s18253_s0 + $0x48] sm:$0xff]  }
 0x1a4   :  { %v8304_v39 = vor.u32 %v8303_v18, %v8299_v43  ;;  %v8314_v58 = vrot.slane %v8312_v60, 4  ;;  %v8317_v57 = vrot.slane %v8315_v59, 5  ;;  %v11887_v44 = vcombine.low %v8276_v27, %v8286_v53  ;;  %v13909_v18 = vld [vmem:[%s18253_s0 + $0x54] sm:$0xff]   ;;  %v11839_v53 = vld [vmem:[%s18253_s0 + $0x150] sm:$0xf] }
 0x1a5   :  { %12688 = vmatmul.mubr.msk.bf16.vlgmr.msra.gmra.mrb[0].mxu1 %vm273_vm0, %v13904_v35  ;;  %v8295_v34 = vrot.slane %v8294_v51, 4  ;;  %v8323_v36 = vrot.slane %v8321_v41, 5  ;;  %v8325_v3 = vshrl.u32 %v11828_v4, 16  ;;  %v8331_v0 = vshll.u32 %v11829_v22, 16  ;;  %v11834_v35 = vld [vmem:[%s18253_s0 + $0x13c] sm:$0xf] }
 0x1a6   :  { %12691 = vmatprep.mubr.msk.bf16.mxu1 %vm273_vm0, %v13905_v6  ;;  %13163 = vmatpush3.bf16.msra.mxu1 %v13940_v42  ;;  %v8305_v50 = vrot.slane %v8304_v39, 4  ;;  %v8318_v2 = vor.u32 %v8317_v57, %v8314_v58  ;;  %v8336_v7 = vshrl.u32 %v11830_v32, 16  ;;  %v8339_v17 = vshll.u32 %v11830_v32, 16  ;;  %v11837_v4 = vld [vmem:[%s18253_s0 + $0x148] sm:$0xf] }
 0x1a7   :  { %13161 = vmatprep.subr.bf16.mxu1 %v13941_v40  ;;  %13000 = vmatmul.mubr.msk.bf16.gmra.mrb[32].mxu0 %vm273_vm0, %v11886_v9  ;;  %v8300_v21 = vsel %vm14081_vm3, %v8295_v34, %v8299_v43  ;;  %v8327_v26 = vrot.slane %v8325_v3, 4  ;;  %v8345_v63 = vshll.u32 %v11831_v61, 16  ;;  %v8333_v5 = vrot.slane %v8331_v0, 5  ;;  %v11838_v22 = vld [vmem:[%s18253_s0 + $0x14c] sm:$0x1] }
 0x1a8   :  { %13003 = vmatprep.mubr.msk.bf16.mxu0 %vm273_vm0, %v11887_v44  ;;  %v8310_v15 = vsel %vm14081_vm3, %v8305_v50, %v8309_v25  ;;  %v8319_v49 = vrot.slane %v8318_v2, 4  ;;  %v8338_v29 = vrot.slane %v8336_v7, 4  ;;  %v8341_v62 = vrot.slane %v8339_v17, 5  ;;  %v11840_v0 = vld [vmem:[%s18253_s0 + $0x154] sm:$0xf] }
 0x1a9   :  { %v11888_v28 = vcombine.low %v8300_v21, %v8310_v15  ;;  %v8328_v45 = vor.u32 %v8327_v26, %v8323_v36  ;;  %v8347_v48 = vrot.slane %v8345_v63, 5  ;;  %v8349_v1 = vshrl.u32 %v11831_v61, 16  ;;  %v11841_v26 = vld [vmem:[%s18253_s0 + $0x158] sm:$0x1]  ;;  %v11842_v17 = vld [vmem:[%s18253_s0 + $0x15c] sm:$0xf] }
 0x1aa   :  { %13164 = vmatpush3.bf16.msra.mxu1 %v13941_v40  ;;  %v8324_v6 = vsel %vm14081_vm3, %v8319_v49, %v8323_v36  ;;  %v8355_v38 = vshll.u32 %v11832_v24, 16  ;;  %v8360_v10 = vshrl.u32 %v11833_v13, 16  ;;  %v8342_v8 = vor.u32 %v8341_v62, %v8338_v29  ;;  %v13910_v63 = vld [vmem:[%s18253_s0 + $0x60] sm:$0xff]  }
 0x1ab   :  { %13162 = vmatprep.subr.bf16.mxu1 %v13942_v20  ;;  %v8329_v52 = vrot.slane %v8328_v45, 4  ;;  %v8363_v46 = vshll.u32 %v11833_v13, 16  ;;  %v8369_v33 = vshll.u32 %v11834_v35, 16  ;;  %v8351_v9 = vrot.slane %v8349_v1, 4  ;;  %v11843_v45 = vld [vmem:[%s18253_s0 + $0x160] sm:$0xf] }
 0x1ac   :  { %v8357_v56 = vrot.slane %v8355_v38, 5  ;;  %v8362_v19 = vrot.slane %v8360_v10, 4  ;;  %v8373_v47 = vshrl.u32 %v11834_v35, 16  ;;  %v8343_v23 = vrot.slane %v8342_v8, 4  ;;  %v11844_v38 = vld [vmem:[%s18253_s0 + $0x164] sm:$0x1] }
 0x1ad   :  { %12692 = vmatmul.mubr.msk.bf16.gmra.mrb[4].mxu1 %vm273_vm0, %v13906_v54  ;;  %v8334_v55 = vsel %vm14081_vm3, %v8329_v52, %v8333_v5  ;;  %v8365_v43 = vrot.slane %v8363_v46, 5  ;;  %v8371_v12 = vrot.slane %v8369_v33, 5  ;;  %v8352_v59 = vor.u32 %v8351_v9, %v8347_v48  ;;  %v11845_v33 = vld [vmem:[%s18253_s0 + $0x168] sm:$0xf] }
 0x1ae   :  { %12695 = vmatprep.mubr.msk.bf16.mxu1 %vm273_vm0, %v13907_v16  ;;  %13165 = vmatpush3.bf16.msra.mxu1 %v13942_v20  ;;  %v11889_v60 = vcombine.low %v8324_v6, %v8334_v55  ;;  %v8375_v42 = vrot.slane %v8373_v47, 4  ;;  %v8379_v27 = vshll.u32 %v11835_v11, 16  ;;  %v8348_v51 = vsel %vm14081_vm3, %v8343_v23, %v8347_v48  ;;  %v13912_v11 = vld [vmem:[%s18253_s0 + $0x6c] sm:$0xff]  }
 0x1af   :  { %13004 = vmatmul.mubr.msk.bf16.gmra.mrb[36].mxu0 %vm273_vm0, %v11888_v28  ;;  %v8366_v25 = vor.u32 %v8365_v43, %v8362_v19  ;;  %v8384_v41 = vshrl.u32 %v11836_v37, 16  ;;  %v8387_v32 = vshll.u32 %v11836_v37, 16  ;;  %v8353_v39 = vrot.slane %v8352_v59, 4 }
 0x1b0   :  { %13007 = vmatprep.mubr.msk.bf16.mxu0 %vm273_vm0, %v11889_v60  ;;  %v8376_v58 = vor.u32 %v8375_v42, %v8371_v12  ;;  %v8381_v57 = vrot.slane %v8379_v27, 5  ;;  %v8393_v61 = vshll.u32 %v11837_v4, 16  ;;  %v8397_v36 = vshrl.u32 %v11837_v4, 16  ;;  %v11846_v60 = vld [vmem:[%s18253_s0 + $0x16c] sm:$0xf] }
 0x1b1   :  { %v8367_v40 = vrot.slane %v8366_v25, 4  ;;  %v8386_v44 = vrot.slane %v8384_v41, 4  ;;  %v8389_v34 = vrot.slane %v8387_v32, 5  ;;  %v8358_v3 = vsel %vm14081_vm3, %v8353_v39, %v8357_v56 }
 0x1b2   :  { %v8377_v54 = vrot.slane %v8376_v58, 4  ;;  %v8395_v50 = vrot.slane %v8393_v61, 5  ;;  %v8403_v2 = vshll.u32 %v11838_v22, 16  ;;  %v11890_v24 = vcombine.low %v8348_v51, %v8358_v3  ;;  %v11847_v51 = vld [vmem:[%s18253_s0 + $0x170] sm:$0x1] }
 0x1b3   :  { %v8372_v7 = vsel %vm14081_vm3, %v8367_v40, %v8371_v12  ;;  %v8390_v16 = vor.u32 %v8389_v34, %v8386_v44  ;;  %v8399_v21 = vrot.slane %v8397_v36, 4  ;;  %v8408_v49 = vshrl.u32 %v11839_v53, 16  ;;  %v11848_v40 = vld [vmem:[%s18253_s0 + $0x174] sm:$0xf]  ;;  %v13913_v44 = vld [vmem:[%s18253_s0 + $0x78] sm:$0xff]  }
 0x1b4   :  { %v8382_v13 = vsel %vm14081_vm3, %v8377_v54, %v8381_v57  ;;  %v8405_v15 = vrot.slane %v8403_v2, 5  ;;  %v8411_v5 = vshll.u32 %v11839_v53, 16  ;;  %v8417_v28 = vshll.u32 %v11840_v0, 16  ;;  %v13914_v2 = vld [vmem:[%s18253_s0 + $0x84] sm:$0xff]  }
 0x1b5   :  { %12696 = vmatmul.mubr.msk.bf16.gmra.mrb[8].mxu1 %vm273_vm0, %v13908_v31  ;;  %v11891_v29 = vcombine.low %v8372_v7, %v8382_v13  ;;  %v8391_v35 = vrot.slane %v8390_v16, 4  ;;  %v8400_v20 = vor.u32 %v8399_v21, %v8395_v50  ;;  %v8410_v62 = vrot.slane %v8408_v49, 4  ;;  %v11850_v21 = vld [vmem:[%s18253_s0 + $0x17c] sm:$0x1] }
 0x1b6   :  { %12699 = vmatprep.mubr.msk.bf16.mxu1 %vm273_vm0, %v13909_v18  ;;  %v8413_v48 = vrot.slane %v8411_v5, 5  ;;  %v8421_v6 = vshrl.u32 %v11840_v0, 16  ;;  %v8427_v1 = vshll.u32 %v11841_v26, 16  ;;  %v8419_v8 = vrot.slane %v8417_v28, 5 }
 0x1b7   :  { %13008 = vmatmul.mubr.msk.bf16.gmra.mrb[40].mxu0 %vm273_vm0, %v11890_v24  ;;  %v8396_v10 = vsel %vm14081_vm3, %v8391_v35, %v8395_v50  ;;  %v8401_v52 = vrot.slane %v8400_v20, 4  ;;  %v8432_v46 = vshrl.u32 %v11842_v17, 16  ;;  %v8435_v19 = vshll.u32 %v11842_v17, 16  ;;  %v11849_v50 = vld [vmem:[%s18253_s0 + $0x178] sm:$0xf] }
 0x1b8   :  { %13011 = vmatprep.mubr.msk.bf16.mxu0 %vm273_vm0, %v11891_v29  ;;  %v8414_v37 = vor.u32 %v8413_v48, %v8410_v62  ;;  %v8423_v9 = vrot.slane %v8421_v6, 4  ;;  %v8429_v56 = vrot.slane %v8427_v1, 5  ;;  %v8441_v55 = vshll.u32 %v11843_v45, 16  ;;  %v11851_v35 = vld [vmem:[%s18253_s0 + $0x180] sm:$0xf] }
 0x1b9   :  { %v8406_v47 = vsel %vm14081_vm3, %v8401_v52, %v8405_v15  ;;  %v8434_v4 = vrot.slane %v8432_v46, 4  ;;  %v8445_v23 = vshrl.u32 %v11843_v45, 16  ;;  %v8437_v18 = vrot.slane %v8435_v19, 5  ;;  %v11852_v48 = vld [vmem:[%s18253_s0 + $0x184] sm:$0xf] }
 0x1ba   :  { %v11892_v43 = vcombine.low %v8396_v10, %v8406_v47  ;;  %v8415_v12 = vrot.slane %v8414_v37, 4  ;;  %v8424_v31 = vor.u32 %v8423_v9, %v8419_v8  ;;  %v8443_v59 = vrot.slane %v8441_v55, 5  ;;  %v11853_v10 = vld [vmem:[%s18253_s0 + $0x188] sm:$0x1]  ;;  %v11854_v47 = vld [vmem:[%s18253_s0 + $0x18c] sm:$0xf] }
 0x1bb   :  { %v8447_v42 = vrot.slane %v8445_v23, 4  ;;  %v8451_v27 = vshll.u32 %v11844_v38, 16  ;;  %v8456_v25 = vshrl.u32 %v11845_v33, 16  ;;  %v8438_v32 = vor.u32 %v8437_v18, %v8434_v4  ;;  %v13915_v4 = vld [vmem:[%s18253_s0 + $0x90] sm:$0xff]   ;;  %v13916_v18 = vld [vmem:[%s18253_s0 + $0x9c] sm:$0xff]  }
 0x1bc   :  { %v8420_v22 = vsel %vm14081_vm3, %v8415_v12, %v8419_v8  ;;  %v8425_v41 = vrot.slane %v8424_v31, 4  ;;  %v8459_v53 = vshll.u32 %v11845_v33, 16  ;;  %v8465_v61 = vshll.u32 %v11846_v60, 16  ;;  %v11855_v31 = vld [vmem:[%s18253_s0 + $0x190] sm:$0xf] }
 0x1bd   :  { %12700 = vmatmul.mubr.msk.bf16.gmra.mrb[12].mxu1 %vm273_vm0, %v13910_v63  ;;  %v8448_v39 = vor.u32 %v8447_v42, %v8443_v59  ;;  %v8453_v58 = vrot.slane %v8451_v27, 5  ;;  %v8458_v57 = vrot.slane %v8456_v25, 4  ;;  %v8439_v36 = vrot.slane %v8438_v32, 4 }
 0x1be   :  { %12703 = vmatprep.mubr.msk.bf16.mxu1 %vm273_vm0, %v13912_v11  ;;  %v8430_v34 = vsel %vm14081_vm3, %v8425_v41, %v8429_v56  ;;  %v8461_v3 = vrot.slane %v8459_v53, 5  ;;  %v8469_v54 = vshrl.u32 %v11846_v60, 16  ;;  %v8467_v7 = vrot.slane %v8465_v61, 5 }
 0x1bf   :  { %13012 = vmatmul.mubr.msk.bf16.gmra.mrb[44].mxu0 %vm273_vm0, %v11892_v43  ;;  %v11893_v0 = vcombine.low %v8420_v22, %v8430_v34  ;;  %v8449_v24 = vrot.slane %v8448_v39, 4  ;;  %v8475_v16 = vshll.u32 %v11847_v51, 16  ;;  %v8444_v26 = vsel %vm14081_vm3, %v8439_v36, %v8443_v59  ;;  %v11856_v39 = vld [vmem:[%s18253_s0 + $0x194] sm:$0x1]  ;;  %v11857_v36 = vld [vmem:[%s18253_s0 + $0x198] sm:$0xf] }
 0x1c0   :  { %v8462_v17 = vor.u32 %v8461_v3, %v8458_v57  ;;  %v8471_v63 = vrot.slane %v8469_v54, 4  ;;  %v8480_v13 = vshrl.u32 %v11848_v40, 16  ;;  %v8483_v5 = vshll.u32 %v11848_v40, 16 }
 0x1c1   :  { %13015 = vmatprep.mubr.msk.bf16.mxu0 %vm273_vm0, %v11893_v0  ;;  %v8454_v15 = vsel %vm14081_vm3, %v8449_v24, %v8453_v58  ;;  %v8477_v49 = vrot.slane %v8475_v16, 5  ;;  %v8489_v29 = vshll.u32 %v11849_v50, 16  ;;  %v8493_v38 = vshrl.u32 %v11849_v50, 16  ;;  %v11858_v0 = vld [vmem:[%s18253_s0 + $0x19c] sm:$0xf] }
 0x1c2   :  { %v11894_v20 = vcombine.low %v8444_v26, %v8454_v15  ;;  %v8463_v28 = vrot.slane %v8462_v17, 4  ;;  %v8472_v45 = vor.u32 %v8471_v63, %v8467_v7  ;;  %v8482_v62 = vrot.slane %v8480_v13, 4  ;;  %v13917_v26 = vld [vmem:[%s18253_s0 + $0xa8] sm:$0xff]   ;;  %v11859_v13 = vld [vmem:[%s18253_s0 + $0x1a0] sm:$0x1] }
 0x1c3   :  { %v8485_v6 = vrot.slane %v8483_v5, 5  ;;  %v8491_v1 = vrot.slane %v8489_v29, 5  ;;  %v8499_v11 = vshll.u32 %v11850_v21, 16  ;;  %v8504_v46 = vshrl.u32 %v11851_v35, 16  ;;  %v13918_v5 = vld [vmem:[%s18253_s0 + $0xb4] sm:$0xff]  }
 0x1c4   :  { %v8468_v52 = vsel %vm14081_vm3, %v8463_v28, %v8467_v7  ;;  %v8473_v8 = vrot.slane %v8472_v45, 4  ;;  %v8507_v33 = vshll.u32 %v11851_v35, 16  ;;  %v8495_v9 = vrot.slane %v8493_v38, 4  ;;  %v11860_v45 = vld [vmem:[%s18253_s0 + $0x1a4] sm:$0xf] }
 0x1c5   :  { %12704 = vmatmul.mubr.msk.bf16.gmra.mrb[16].mxu1 %vm273_vm0, %v13913_v44  ;;  %v8486_v37 = vor.u32 %v8485_v6, %v8482_v62  ;;  %v8501_v56 = vrot.slane %v8499_v11, 5  ;;  %v8513_v19 = vshll.u32 %v11852_v48, 16  ;;  %v8506_v23 = vrot.slane %v8504_v46, 4  ;;  %v11861_v38 = vld [vmem:[%s18253_s0 + $0x1a8] sm:$0xf] }
 0x1c6   :  { %12707 = vmatprep.mubr.msk.bf16.mxu1 %vm273_vm0, %v13914_v2  ;;  %v8478_v55 = vsel %vm14081_vm3, %v8473_v8, %v8477_v49  ;;  %v8509_v43 = vrot.slane %v8507_v33, 5  ;;  %v8517_v12 = vshrl.u32 %v11852_v48, 16  ;;  %v8496_v42 = vor.u32 %v8495_v9, %v8491_v1  ;;  %v11862_v46 = vld [vmem:[%s18253_s0 + $0x1ac] sm:$0x1] }
 0x1c7   :  { %13016 = vmatmul.mubr.msk.bf16.gmra.mrb[48].mxu0 %vm273_vm0, %v11894_v20  ;;  %v11895_v60 = vcombine.low %v8468_v52, %v8478_v55  ;;  %v8487_v59 = vrot.slane %v8486_v37, 4  ;;  %v8515_v27 = vrot.slane %v8513_v19, 5  ;;  %v8523_v22 = vshll.u32 %v11853_v10, 16  ;;  %v11936_v19 = vld [vmem:[%s18253_s0 + $0x18] sm:$0xe] }
 0x1c8   :  { %v8510_v51 = vor.u32 %v8509_v43, %v8506_v23  ;;  %v8519_v25 = vrot.slane %v8517_v12, 4  ;;  %v8528_v41 = vshrl.u32 %v11854_v47, 16  ;;  %v8497_v53 = vrot.slane %v8496_v42, 4  ;;  %v11937_v43 = vld [vmem:[%s18253_s0 + $0x1c] sm:$0xf] }
 0x1c9   :  { %13019 = vmatprep.mubr.msk.bf16.mxu0 %vm273_vm0, %v11895_v60  ;;  %v8492_v32 = vsel %vm14081_vm3, %v8487_v59, %v8491_v1  ;;  %v8531_v58 = vshll.u32 %v11854_v47, 16  ;;  %v8537_v57 = vshll.u32 %v11855_v31, 16  ;;  %v8525_v44 = vrot.slane %v8523_v22, 5  ;;  %v11938_v12 = vld [vmem:[%s18253_s0 + $0x20] sm:$0x1] }
 0x1ca   :  { %v8511_v61 = vrot.slane %v8510_v51, 4  ;;  %v8520_v40 = vor.u32 %v8519_v25, %v8515_v27  ;;  %v8530_v34 = vrot.slane %v8528_v41, 4  ;;  %v8502_v3 = vsel %vm14081_vm3, %v8497_v53, %v8501_v56  ;;  %v11940_v42 = vld [vmem:[%s18253_s0 + $0x28] sm:$0xf] }
 0x1cb   :  { %v8533_v54 = vrot.slane %v8531_v58, 5  ;;  %v8539_v50 = vrot.slane %v8537_v57, 5  ;;  %v8541_v2 = vshrl.u32 %v11855_v31, 16  ;;  %v11896_v24 = vcombine.low %v8492_v32, %v8502_v3  ;;  %v11939_v32 = vld [vmem:[%s18253_s0 + $0x24] sm:$0xe] }
 0x1cc   :  { %v8516_v7 = vsel %vm14081_vm3, %v8511_v61, %v8515_v27  ;;  %v8521_v16 = vrot.slane %v8520_v40, 4  ;;  %v8547_v21 = vshll.u32 %v11856_v39, 16  ;;  %v8552_v15 = vshrl.u32 %v11857_v36, 16  ;;  %v13919_v27 = vld [vmem:[%s18253_s0 + $0xc0] sm:$0xff]   ;;  %v11941_v40 = vld [vmem:[%s18253_s0 + $0x2c] sm:$0x1] }
 0x1cd   :  { %12708 = vmatmul.mubr.msk.bf16.gmra.mrb[20].mxu1 %vm273_vm0, %v13915_v4  ;;  %v8534_v17 = vor.u32 %v8533_v54, %v8530_v34  ;;  %v8543_v63 = vrot.slane %v8541_v2, 4  ;;  %v8555_v49 = vshll.u32 %v11857_v36, 16  ;;  %v8561_v20 = vshll.u32 %v11858_v0, 16  ;;  %v13920_v53 = vld [vmem:[%s18253_s0 + $0xe4] sm:$0xff]   ;;  %v11942_v54 = vld [vmem:[%s18253_s0 + $0x30] sm:$0xe] }
 0x1ce   :  { %12711 = vmatprep.mubr.msk.bf16.mxu1 %vm273_vm0, %v13916_v18  ;;  %v8526_v29 = vsel %vm14081_vm3, %v8521_v16, %v8525_v44  ;;  %v8549_v35 = vrot.slane %v8547_v21, 5  ;;  %v8565_v28 = vshrl.u32 %v11858_v0, 16  ;;  %v8554_v1 = vrot.slane %v8552_v15, 4  ;;  %v11944_v2 = vld [vmem:[%s18253_s0 + $0x38] sm:$0x1] }
 0x1cf   :  { %13020 = vmatmul.mubr.msk.bf16.gmra.mrb[52].mxu0 %vm273_vm0, %v11896_v24  ;;  %v11897_v62 = vcombine.low %v8516_v7, %v8526_v29  ;;  %v8535_v48 = vrot.slane %v8534_v17, 4  ;;  %v8544_v6 = vor.u32 %v8543_v63, %v8539_v50  ;;  %v8557_v11 = vrot.slane %v8555_v49, 5  ;;  %v11945_v63 = vld [vmem:[%s18253_s0 + $0x3c] sm:$0xe]  ;;  %v11947_v15 = vld [vmem:[%s18253_s0 + $0x44] sm:$0x1] }
 0x1d0   :  { %v8563_v10 = vrot.slane %v8561_v20, 5  ;;  %v8567_v52 = vrot.slane %v8565_v28, 4  ;;  %v8571_v8 = vshll.u32 %v11859_v13, 16  ;;  %v8576_v9 = vshrl.u32 %v11860_v45, 16  ;;  %v11946_v13 = vld [vmem:[%s18253_s0 + $0x40] sm:$0xf] }
 0x1d1   :  { %13023 = vmatprep.mubr.msk.bf16.mxu0 %vm273_vm0, %v11897_v62  ;;  %v8540_v33 = vsel %vm14081_vm3, %v8535_v48, %v8539_v50  ;;  %v8545_v37 = vrot.slane %v8544_v6, 4  ;;  %v8579_v56 = vshll.u32 %v11860_v45, 16  ;;  %v8558_v47 = vor.u32 %v8557_v11, %v8554_v1  ;;  %v11943_v50 = vld [vmem:[%s18253_s0 + $0x34] sm:$0xf]  ;;  %v11949_v20 = vld [vmem:[%s18253_s0 + $0x4c] sm:$0xf] }
 0x1d2   :  { %v8568_v4 = vor.u32 %v8567_v52, %v8563_v10  ;;  %v8573_v55 = vrot.slane %v8571_v8, 5  ;;  %v8585_v23 = vshll.u32 %v11861_v38, 16  ;;  %v8578_v18 = vrot.slane %v8576_v9, 4  ;;  %v13921_v52 = vld [vmem:[%s18253_s0 + $0xf0] sm:$0xff]   ;;  %v13922_v9 = vld [vmem:[%s18253_s0 + $0xfc] sm:$0xff]  }
 0x1d3   :  { %v8550_v31 = vsel %vm14081_vm3, %v8545_v37, %v8549_v35  ;;  %v8581_v60 = vrot.slane %v8579_v56, 5  ;;  %v8589_v59 = vshrl.u32 %v11861_v38, 16  ;;  %v8559_v25 = vrot.slane %v8558_v47, 4  ;;  %v11948_v35 = vld [vmem:[%s18253_s0 + $0x48] sm:$0xe] }
 0x1d4   :  { %v11898_v51 = vcombine.low %v8540_v33, %v8550_v31  ;;  %v8569_v22 = vrot.slane %v8568_v4, 4  ;;  %v8587_v41 = vrot.slane %v8585_v23, 5  ;;  %v8595_v57 = vshll.u32 %v11862_v46, 16  ;;  %v11951_v33 = vld [vmem:[%s18253_s0 + $0x54] sm:$0xe] }
 0x1d5   :  { %12712 = vmatmul.mubr.msk.bf16.gmra.mrb[24].mxu1 %vm273_vm0, %v13917_v26  ;;  %v8582_v39 = vor.u32 %v8581_v60, %v8578_v18  ;;  %v8591_v58 = vrot.slane %v8589_v59, 4  ;;  %v12032_v61 = vrot.slane %v11936_v19, 9  ;;  %v8564_v44 = vsel %vm14081_vm3, %v8559_v25, %v8563_v10  ;;  %v11950_v10 = vld [vmem:[%s18253_s0 + $0x50] sm:$0x1]  ;;  %v11952_v37 = vld [vmem:[%s18253_s0 + $0x58] sm:$0xf] }
 0x1d6   :  { %12715 = vmatprep.mubr.msk.bf16.mxu1 %vm273_vm0, %v13918_v5  ;;  %v8574_v34 = vsel %vm14081_vm3, %v8569_v22, %v8573_v55  ;;  %v9491_v36 = vrot.slane %v11937_v43, 5  ;;  %v9494_v3 = vrot.slane %v11938_v12, 5  ;;  %v8597_v16 = vrot.slane %v8595_v57, 5  ;;  %v11953_v4 = vld [vmem:[%s18253_s0 + $0x5c] sm:$0x1] }
 0x1d7   :  { %13024 = vmatmul.mubr.msk.bf16.gmra.mrb[56].mxu0 %vm273_vm0, %v11898_v51  ;;  %v11899_v0 = vcombine.low %v8564_v44, %v8574_v34  ;;  %v8583_v24 = vrot.slane %v8582_v39, 4  ;;  %v8592_v7 = vor.u32 %v8591_v58, %v8587_v41  ;;  %v9498_v17 = vrot.slane %v11940_v42, 5  ;;  %v11954_v31 = vld [vmem:[%s18253_s0 + $0x60] sm:$0xe]  ;;  %v11955_v18 = vld [vmem:[%s18253_s0 + $0x64] sm:$0xf] }
 0x1d8   :  { %v9492_v21 = vsel %vm14426_vm6, %v12032_v61, %v9491_v36  ;;  %v9493_v26 = vrot.slane %v9491_v36, 4  ;;  %v12033_v29 = vrot.slane %v11939_v32, 9  ;;  %v9501_v62 = vrot.slane %v11941_v40, 5  ;;  %v11956_v51 = vld [vmem:[%s18253_s0 + $0x68] sm:$0x1] }
 0x1d9   :  { %13027 = vmatprep.mubr.msk.bf16.mxu0 %vm273_vm0, %v11899_v0  ;;  %v8588_v49 = vsel %vm14081_vm3, %v8583_v24, %v8587_v41  ;;  %v8593_v5 = vrot.slane %v8592_v7, 4  ;;  %v9500_v45 = vrot.slane %v9498_v17, 4  ;;  %v9505_v48 = vrot.slane %v11943_v50, 5  ;;  %v11958_v25 = vld [vmem:[%s18253_s0 + $0x70] sm:$0xf] }
 0x1da   :  { %v9495_v28 = vsel %vm14426_vm6, %v9493_v26, %v9494_v3  ;;  %v12034_v38 = vrot.slane %v11942_v54, 9  ;;  %v9508_v11 = vrot.slane %v11944_v2, 5  ;;  %v12035_v56 = vrot.slane %v11945_v63, 9  ;;  %v11959_v39 = vld [vmem:[%s18253_s0 + $0x74] sm:$0x1] }
 0x1db   :  { %v8598_v6 = vsel %vm14081_vm3, %v8593_v5, %v8597_v16  ;;  %v12070_v1 = vcombine.low %v9492_v21, %v9495_v28  ;;  %v9507_v46 = vrot.slane %v9505_v48, 4  ;;  %v9512_v19 = vrot.slane %v11946_v13, 5  ;;  %v17088_v58 = vld [vmem:[%s18253_s0 + $0x78] sm:$0xe]  ;;  %v11961_v57 = vld [vmem:[%s18253_s0 + $0x7c] sm:$0xf] }
 0x1dc   :  { %v11900_v8 = vcombine.low %v8588_v49, %v8598_v6  ;;  %v9515_v47 = vrot.slane %v11947_v15, 5  ;;  %v9499_v55 = vsel %vm14426_vm6, %v12033_v29, %v9498_v17  ;;  %v9502_v23 = vsel %vm14426_vm6, %v9500_v45, %v9501_v62  ;;  %v17104_v34 = vld [vmem:[%s18253_s0 + $0x80] sm:$0x1]  ;;  %v11963_v2 = vld [vmem:[%s18253_s0 + $0x84] sm:$0xe]  ;;  %v13923_v17 = vld [vmem:[%s18253_s0 + $0x108] sm:$0xff]  }
 0x1dd   :  { %12716 = vmatmul.mubr.msk.bf16.gmra.mrb[28].mxu1 %vm273_vm0, %v13919_v27  ;;  %v12036_v43 = vrot.slane %v11948_v35, 9  ;;  %v9519_v12 = vrot.slane %v11949_v20, 5  ;;  %v9506_v60 = vsel %vm14426_vm6, %v12034_v38, %v9505_v48  ;;  %v9509_v59 = vsel %vm14426_vm6, %v9507_v46, %v9508_v11  ;;  %v11964_v0 = vld [vmem:[%s18253_s0 + $0x88] sm:$0xf]  ;;  %v11965_v26 = vld [vmem:[%s18253_s0 + $0x8c] sm:$0x1] }
 0x1de   :  { %12719 = vmatprep.mubr.msk.bf16.mxu1 %vm273_vm0, %v13920_v53  ;;  %v9514_v42 = vrot.slane %v9512_v19, 4  ;;  %v9526_v27 = vrot.slane %v11952_v37, 5  ;;  %v9522_v41 = vrot.slane %v11950_v10, 5  ;;  %v12037_v32 = vrot.slane %v11951_v33, 9  ;;  %v11957_v53 = vld [vmem:[%s18253_s0 + $0x6c] sm:$0xe] }
 0x1df   :  { %13028 = vmatmul.mubr.msk.bf16.gmra.mrb[60].mxu0 %vm273_vm0, %v11900_v8  ;;  %v9521_v22 = vrot.slane %v9519_v12, 4  ;;  %v17095_v61 = vsel %vm14426_vm6, %v12035_v56, %v9512_v19  ;;  %v9533_v44 = vrot.slane %v11955_v18, 5  ;;  %v12071_v36 = vcombine.low %v9499_v55, %v9502_v23  ;;  %v11966_v5 = vld [vmem:[%s18253_s0 + $0x90] sm:$0xe]  ;;  %v11967_v29 = vld [vmem:[%s18253_s0 + $0x94] sm:$0xf] }
 0x1e0   :  { %13037 = vmatprep.mubr.msk.bf16.mxu0 %vm273_vm0, %v12070_v1  ;;  %v17099_v40 = vsel %vm14426_vm6, %v9514_v42, %v9515_v47  ;;  %v12072_v3 = vcombine.low %v9506_v60, %v9509_v59  ;;  %v17109_v54 = vsel %vm14426_vm6, %v12036_v43, %v9519_v12  ;;  %v9529_v50 = vrot.slane %v11953_v4, 5  ;;  %v13924_v35 = vld [vmem:[%s18253_s0 + $0x114] sm:$0xff]   ;;  %v11969_v10 = vld [vmem:[%s18253_s0 + $0x9c] sm:$0xe]  ;;  %v11970_v37 = vld [vmem:[%s18253_s0 + $0xa0] sm:$0xf] }
 0x1e1   :  { %v9528_v24 = vrot.slane %v9526_v27, 4  ;;  %v12038_v7 = vrot.slane %v11954_v31, 9  ;;  %v9535_v16 = vrot.slane %v9533_v44, 4  ;;  %v9536_v21 = vrot.slane %v11956_v51, 5  ;;  %v11968_v48 = vld [vmem:[%s18253_s0 + $0x98] sm:$0x1] }
 0x1e2   :  { %v12073_v63 = vcombine.low %v17095_v61, %v17099_v40  ;;  %v17128_v13 = vsel %vm14426_vm6, %v9521_v22, %v9522_v41  ;;  %v17132_v15 = vsel %vm14426_vm6, %v12037_v32, %v9526_v27  ;;  %v9540_v49 = vrot.slane %v11958_v25, 5  ;;  %v11972_v31 = vld [vmem:[%s18253_s0 + $0xa8] sm:$0xe]  ;;  %v11973_v18 = vld [vmem:[%s18253_s0 + $0xac] sm:$0xf] }
 0x1e3   :  { %v12039_v20 = vrot.slane %v11957_v53, 9  ;;  %v9543_v28 = vrot.slane %v11959_v39, 5  ;;  %v12040_v45 = vrot.slane %v17088_v58, 9  ;;  %v9547_v62 = vrot.slane %v11961_v57, 5  ;;  %v11974_v32 = vld [vmem:[%s18253_s0 + $0xb0] sm:$0x1] }
 0x1e4   :  { %v9542_v6 = vrot.slane %v9540_v49, 4  ;;  %v9550_v1 = vrot.slane %v17104_v34, 5  ;;  %v12041_v38 = vrot.slane %v11963_v2, 9  ;;  %v9554_v11 = vrot.slane %v11964_v0, 5  ;;  %v17207_v53 = vld [vmem:[%s18253_s0 + $0xb4] sm:$0xe] }
 0x1e5   :  { %12720 = vmatmul.mubr.msk.bf16.gmra.mrb[32].mxu1 %vm273_vm0, %v13921_v52  ;;  %v12074_v52 = vcombine.low %v17109_v54, %v17128_v13  ;;  %v17157_v8 = vsel %vm14426_vm6, %v9528_v24, %v9529_v50  ;;  %v17161_v46 = vsel %vm14426_vm6, %v12038_v7, %v9533_v44  ;;  %v17165_v33 = vsel %vm14426_vm6, %v9535_v16, %v9536_v21  ;;  %v17222_v40 = vld [vmem:[%s18253_s0 + $0xb8] sm:$0xf]  ;;  %v17227_v44 = vld [vmem:[%s18253_s0 + $0xbc] sm:$0x1]  ;;  %v11315_v2 = vld [vmem:[%s18253_s0 + $0x100] sm:$0xf] }
 0x1e6   :  { %12723 = vmatprep.mubr.msk.bf16.mxu1 %vm273_vm0, %v13922_v9  ;;  %v11971_v9 = vld [vmem:[%s18253_s0 + $0xa4] sm:$0x1]  ;;  %v9549_v56 = vrot.slane %v9547_v62, 4  ;;  %v9556_v19 = vrot.slane %v9554_v11, 4  ;;  %v9557_v47 = vrot.slane %v11965_v26, 5  ;;  %v9561_v4 = vrot.slane %v11967_v29, 5 }
 0x1e7   :  { %13038 = vmatmul.mubr.msk.bf16.vlgmr.msra.gmra.mrb[0].mxu0 %vm273_vm0, %v12071_v36  ;;  %v17175_v55 = vsel %vm14426_vm6, %v12039_v20, %v9540_v49  ;;  %v17179_v23 = vsel %vm14426_vm6, %v9542_v6, %v9543_v28  ;;  %v12042_v43 = vrot.slane %v11966_v5, 9  ;;  %v9564_v12 = vrot.slane %v11968_v48, 5  ;;  %v11314_v50 = vld [vmem:[%s18253_s0 + $0xfc] sm:$0xf]  ;;  %v13925_v0 = vld [vmem:[%s18253_s0 + $0x120] sm:$0xff]   ;;  %v13926_v26 = vld [vmem:[%s18253_s0 + $0x12c] sm:$0xff]  }
 0x1e8   :  { %13041 = vmatprep.mubr.msk.bf16.mxu0 %vm273_vm0, %v12072_v3  ;;  %v12075_v60 = vcombine.low %v17132_v15, %v17157_v8  ;;  %v12076_v59 = vcombine.low %v17161_v46, %v17165_v33  ;;  %v9563_v42 = vrot.slane %v9561_v4, 4  ;;  %v12043_v27 = vrot.slane %v11969_v10, 9  ;;  %v11316_v28 = vld [vmem:[%s18253_s0 + $0x104] sm:$0x1]  ;;  %v11320_v46 = vld [vmem:[%s18253_s0 + $0x114] sm:$0xf] }
 0x1e9   :  { %v17195_v51 = vsel %vm14426_vm6, %v12040_v45, %v9547_v62  ;;  %v17199_v25 = vsel %vm14426_vm6, %v12041_v38, %v9554_v11  ;;  %v9568_v22 = vrot.slane %v11970_v37, 5  ;;  %v9571_v41 = vrot.slane %v11971_v9, 5  ;;  %v11979_v45 = vld [vmem:[%s18253_s0 + $0xc4] sm:$0xf]  ;;  %v11978_v38 = vld [vmem:[%s18253_s0 + $0xc0] sm:$0xe] }
 0x1ea   :  { %v12077_v39 = vcombine.low %v17175_v55, %v17179_v23  ;;  %v17213_v58 = vsel %vm14426_vm6, %v9549_v56, %v9550_v1  ;;  %v17217_v57 = vsel %vm14426_vm6, %v9556_v19, %v9557_v47  ;;  %v9575_v61 = vrot.slane %v11973_v18, 5  ;;  %v11317_v11 = vld [vmem:[%s18253_s0 + $0x108] sm:$0xf]  ;;  %v11318_v19 = vld [vmem:[%s18253_s0 + $0x10c] sm:$0xf]  ;;  %v13930_v55 = vld [vmem:[%s18253_s0 + $0x15c] sm:$0xff]  }
 0x1eb   :  { %v17231_v34 = vsel %vm14426_vm6, %v12042_v43, %v9561_v4  ;;  %v17235_v36 = vsel %vm14426_vm6, %v9563_v42, %v9564_v12  ;;  %v9570_v3 = vrot.slane %v9568_v22, 4  ;;  %v12044_v54 = vrot.slane %v11972_v31, 9  ;;  %v11980_v56 = vld [vmem:[%s18253_s0 + $0xc8] sm:$0x1]  ;;  %v13927_v31 = vld [vmem:[%s18253_s0 + $0x138] sm:$0xff]  }
 0x1ec   :  { %v17249_v24 = vsel %vm14426_vm6, %v12043_v27, %v9568_v22  ;;  %v9577_v7 = vrot.slane %v9575_v61, 4  ;;  %v9578_v16 = vrot.slane %v11974_v32, 5  ;;  %v9582_v21 = vrot.slane %v17222_v40, 5  ;;  %v11319_v27 = vld [vmem:[%s18253_s0 + $0x110] sm:$0x1] }
 0x1ed   :  { %12724 = vmatmul.mubr.msk.bf16.gmra.mrb[36].mxu1 %vm273_vm0, %v13923_v17  ;;  %v17258_v17 = vsel %vm14426_vm6, %v9570_v3, %v9571_v41  ;;  %v4761_v13 = vshrl.u32 %v11314_v50, 16  ;;  %v4770_v49 = vshll.u32 %v11315_v2, 16  ;;  %v12078_v5 = vcombine.low %v17195_v51, %v17213_v58  ;;  %v13928_v3 = vld [vmem:[%s18253_s0 + $0x144] sm:$0xff]   ;;  %v11986_v51 = vld [vmem:[%s18253_s0 + $0xf8] sm:$0x1] }
 0x1ee   :  { %12727 = vmatprep.mubr.msk.bf16.mxu1 %vm273_vm0, %v13924_v35  ;;  %v12079_v29 = vcombine.low %v17199_v25, %v17217_v57  ;;  %v12045_v35 = vrot.slane %v17207_v53, 9  ;;  %v9585_v20 = vrot.slane %v17227_v44, 5  ;;  %v12080_v62 = vcombine.low %v17231_v34, %v17235_v36  ;;  %v11981_v44 = vld [vmem:[%s18253_s0 + $0xcc] sm:$0xe] }
 0x1ef   :  { %13042 = vmatmul.mubr.msk.bf16.gmra.mrb[4].mxu0 %vm273_vm0, %v12073_v63  ;;  %v4764_v63 = vshll.u32 %v11314_v50, 16  ;;  %v17276_v48 = vsel %vm14426_vm6, %v12044_v54, %v9575_v61  ;;  %v4763_v6 = vrot.slane %v4761_v13, 4  ;;  %v12081_v10 = vcombine.low %v17249_v24, %v17258_v17  ;;  %v11991_v34 = vld [vmem:[%s18253_s0 + $0x10c] sm:$0xf] }
 0x1f0   :  { %13045 = vmatprep.mubr.msk.bf16.mxu0 %vm273_vm0, %v12074_v52  ;;  %v17289_v52 = vsel %vm14426_vm6, %v9577_v7, %v9578_v16  ;;  %v17291_v37 = vrot.slane %v4770_v49, 5  ;;  %v4774_v9 = vshrl.u32 %v11315_v2, 16  ;;  %v9584_v47 = vrot.slane %v9582_v21, 4  ;;  %v11982_v7 = vld [vmem:[%s18253_s0 + $0xd0] sm:$0xf] }
 0x1f1   :  { %v4766_v1 = vrot.slane %v4764_v63, 5  ;;  %v4780_v43 = vshll.u32 %v11316_v28, 16  ;;  %v9589_v12 = vrot.slane %v11979_v45, 5  ;;  %v12046_v42 = vrot.slane %v11978_v38, 9  ;;  %v11321_v28 = vld [vmem:[%s18253_s0 + $0x118] sm:$0xf] }
 0x1f2   :  { %v4776_v18 = vrot.slane %v4774_v9, 4  ;;  %v4785_v22 = vshrl.u32 %v11317_v11, 16  ;;  %v4788_v41 = vshll.u32 %v11317_v11, 16  ;;  %v9592_v61 = vrot.slane %v11980_v56, 5 }
 0x1f3   :  { %v4767_v4 = vor.u32 %v4766_v1, %v4763_v6  ;;  %v9591_v53 = vrot.slane %v9589_v12, 4  ;;  %v4794_v40 = vshll.u32 %v11318_v19, 16  ;;  %v17326_v15 = vsel %vm14426_vm6, %v12045_v35, %v9582_v21 }
 0x1f4   :  { %v4777_v54 = vor.u32 %v4776_v18, %v17291_v37  ;;  %v4787_v50 = vrot.slane %v4785_v22, 4  ;;  %v4790_v2 = vrot.slane %v4788_v41, 5  ;;  %v17330_v8 = vsel %vm14426_vm6, %v9584_v47, %v9585_v20  ;;  %v11323_v41 = vld [vmem:[%s18253_s0 + $0x120] sm:$0xf] }
 0x1f5   :  { %12728 = vmatmul.mubr.msk.bf16.gmra.mrb[40].mxu1 %vm273_vm0, %v13925_v0  ;;  %v4768_v32 = vrot.slane %v4767_v4, 4  ;;  %v4798_v0 = vshrl.u32 %v11318_v19, 16  ;;  %v17332_v16 = vrot.slane %v4794_v40, 5  ;;  %v17349_v49 = vsel %vm14426_vm6, %v9591_v53, %v9592_v61  ;;  %v11322_v4 = vld [vmem:[%s18253_s0 + $0x11c] sm:$0x1] }
 0x1f6   :  { %12731 = vmatprep.mubr.msk.bf16.mxu1 %vm273_vm0, %v13926_v26  ;;  %v11983_v26 = vld [vmem:[%s18253_s0 + $0xd4] sm:$0x1]  ;;  %v4778_v33 = vrot.slane %v4777_v54, 4  ;;  %v4791_v21 = vor.u32 %v4790_v2, %v4787_v50  ;;  %v4804_v35 = vshll.u32 %v11319_v27, 16  ;;  %v9596_v20 = vrot.slane %v11982_v7, 5 }
 0x1f7   :  { %13046 = vmatmul.mubr.msk.bf16.gmra.mrb[8].mxu0 %vm273_vm0, %v12075_v60  ;;  %v4782_v60 = vrot.slane %v4780_v43, 5  ;;  %v4800_v13 = vrot.slane %v4798_v0, 4  ;;  %v4773_v63 = vsel %vm14081_vm3, %v4768_v32, %v17291_v37  ;;  %v12047_v6 = vrot.slane %v11981_v44, 9  ;;  %v13929_v32 = vld [vmem:[%s18253_s0 + $0x150] sm:$0xff]  }
 0x1f8   :  { %13049 = vmatprep.mubr.msk.bf16.mxu0 %vm273_vm0, %v12076_v59  ;;  %v17342_v59 = vsel %vm14426_vm6, %v12046_v42, %v9589_v12  ;;  %v9599_v1 = vrot.slane %v11983_v26, 5  ;;  %v4809_v38 = vshrl.u32 %v11320_v46, 16  ;;  %v17359_v37 = vrot.slane %v4791_v21, 4  ;;  %v11984_v2 = vld [vmem:[%s18253_s0 + $0xf0] sm:$0xe] }
 0x1f9   :  { %v4801_v45 = vor.u32 %v4800_v13, %v17332_v16  ;;  %v4783_v11 = vsel %vm14081_vm3, %v4778_v33, %v4782_v60  ;;  %v9598_v9 = vrot.slane %v9596_v20, 4  ;;  %v4812_v56 = vshll.u32 %v11320_v46, 16  ;;  %v11325_v26 = vld [vmem:[%s18253_s0 + $0x128] sm:$0x1]  ;;  %v11987_v21 = vld [vmem:[%s18253_s0 + $0xfc] sm:$0xe] }
 0x1fa   :  { %v12082_v19 = vcombine.low %v17276_v48, %v17289_v52  ;;  %v12083_v47 = vcombine.low %v17326_v15, %v17330_v8  ;;  %v4811_v43 = vrot.slane %v4809_v38, 4  ;;  %v4818_v12 = vshll.u32 %v11321_v28, 16 }
 0x1fb   :  { %v4802_v18 = vrot.slane %v4801_v45, 4  ;;  %v4806_v42 = vrot.slane %v4804_v35, 5  ;;  %v4814_v27 = vrot.slane %v4812_v56, 5  ;;  %v4822_v22 = vshrl.u32 %v11321_v28, 16  ;;  %v11988_v28 = vld [vmem:[%s18253_s0 + $0x100] sm:$0xf] }
 0x1fc   :  { %v17381_v53 = vcombine.low %v4773_v63, %v4783_v11  ;;  %v12084_v61 = vcombine.low %v17342_v59, %v17349_v49  ;;  %v17387_v40 = vsel %vm14426_vm6, %v12047_v6, %v9596_v20  ;;  %v17389_v44 = vrot.slane %v4818_v12, 5  ;;  %v11989_v11 = vld [vmem:[%s18253_s0 + $0x104] sm:$0x1]  ;;  %v11998_v49 = vld [vmem:[%s18253_s0 + $0x128] sm:$0x1] }
 0x1fd   :  { %12732 = vmatmul.mubr.msk.bf16.gmra.mrb[44].mxu1 %vm273_vm0, %v13927_v31  ;;  %v11985_v31 = vld [vmem:[%s18253_s0 + $0xf4] sm:$0xf]  ;;  %v4797_v23 = vsel %vm14081_vm3, %v17359_v37, %v17332_v16  ;;  %v4824_v54 = vrot.slane %v4822_v22, 4  ;;  %v4828_v50 = vshll.u32 %v11322_v4, 16  ;;  %v4815_v0 = vor.u32 %v4814_v27, %v4811_v43  ;;  %v11326_v43 = vld [vmem:[%s18253_s0 + $0x12c] sm:$0xf] }
 0x1fe   :  { %12735 = vmatprep.mubr.msk.bf16.mxu1 %vm273_vm0, %v13928_v3  ;;  %v11324_v3 = vld [vmem:[%s18253_s0 + $0x124] sm:$0xf]  ;;  %v9603_v58 = vrot.slane %v11985_v31, 5  ;;  %v4836_v7 = vshll.u32 %v11323_v41, 16  ;;  %v4807_v60 = vsel %vm14081_vm3, %v4802_v18, %v4806_v42  ;;  %v12048_v63 = vrot.slane %v11984_v2, 9  ;;  %v13931_v22 = vld [vmem:[%s18253_s0 + $0x168] sm:$0xff]  }
 0x1ff   :  { %13050 = vmatmul.mubr.msk.bf16.gmra.mrb[12].mxu0 %vm273_vm0, %v12077_v39  ;;  %v17407_v39 = vsel %vm14426_vm6, %v9598_v9, %v9599_v1  ;;  %v4825_v16 = vor.u32 %v4824_v54, %v17389_v44  ;;  %v4842_v46 = vshll.u32 %v11324_v3, 16  ;;  %v4846_v33 = vshrl.u32 %v11324_v3, 16  ;;  %v11327_v27 = vld [vmem:[%s18253_s0 + $0x130] sm:$0xf] }
 0x200   :  { %13053 = vmatprep.mubr.msk.bf16.mxu0 %vm273_vm0, %v12078_v5  ;;  %v4833_v5 = vshrl.u32 %v11323_v41, 16  ;;  %v12085_v13 = vcombine.low %v17387_v40, %v17407_v39  ;;  %v4838_v20 = vrot.slane %v4836_v7, 5  ;;  %v17431_v45 = vrot.slane %v4828_v50, 5  ;;  %v13932_v41 = vld [vmem:[%s18253_s0 + $0x174] sm:$0xff]   ;;  %v11990_v7 = vld [vmem:[%s18253_s0 + $0x108] sm:$0xe] }
 0x201   :  { %v9606_v6 = vrot.slane %v11986_v51, 5  ;;  %v17433_v1 = vrot.slane %v4842_v46, 5  ;;  %v4848_v38 = vrot.slane %v4846_v33, 4  ;;  %v17438_v37 = vrot.slane %v4815_v0, 4  ;;  %v11328_v50 = vld [vmem:[%s18253_s0 + $0x134] sm:$0x1] }
 0x202   :  { %v4835_v35 = vrot.slane %v4833_v5, 4  ;;  %v9605_v9 = vrot.slane %v9603_v58, 4  ;;  %v4852_v4 = vshll.u32 %v11325_v26, 16  ;;  %v4826_v12 = vrot.slane %v4825_v16, 4 }
 0x203   :  { %v4849_v31 = vor.u32 %v4848_v38, %v17433_v1  ;;  %v12049_v18 = vrot.slane %v11987_v21, 9  ;;  %v9610_v42 = vrot.slane %v11988_v28, 5  ;;  %v17461_v3 = vsel %vm14426_vm6, %v12048_v63, %v9603_v58  ;;  %v11992_v21 = vld [vmem:[%s18253_s0 + $0x110] sm:$0x1]  ;;  %v11330_v63 = vld [vmem:[%s18253_s0 + $0x13c] sm:$0xf] }
 0x204   :  { %v4839_v56 = vor.u32 %v4838_v20, %v4835_v35  ;;  %v4854_v54 = vrot.slane %v4852_v4, 5  ;;  %v4821_v2 = vsel %vm14081_vm3, %v17438_v37, %v17389_v44  ;;  %v4860_v0 = vshll.u32 %v11326_v43, 16  ;;  %v13933_v37 = vld [vmem:[%s18253_s0 + $0x180] sm:$0xff]  }
 0x205   :  { %12736 = vmatmul.mubr.msk.bf16.gmra.mrb[48].mxu1 %vm273_vm0, %v13929_v32  ;;  %v17457_v32 = vcombine.low %v4797_v23, %v4807_v60  ;;  %v4850_v25 = vrot.slane %v4849_v31, 4  ;;  %v9612_v57 = vrot.slane %v9610_v42, 4  ;;  %v4857_v23 = vshrl.u32 %v11326_v43, 16  ;;  %v11329_v60 = vld [vmem:[%s18253_s0 + $0x138] sm:$0xf] }
 0x206   :  { %12739 = vmatprep.mubr.msk.bf16.mxu1 %vm273_vm0, %v13930_v55  ;;  %v4840_v55 = vrot.slane %v4839_v56, 4  ;;  %v4866_v51 = vshll.u32 %v11327_v27, 16  ;;  %v4870_v58 = vshrl.u32 %v11327_v27, 16  ;;  %v4831_v36 = vsel %vm14081_vm3, %v4826_v12, %v17431_v45  ;;  %v11331_v43 = vld [vmem:[%s18253_s0 + $0x140] sm:$0x1] }
 0x207   :  { %13054 = vmatmul.mubr.msk.bf16.gmra.mrb[16].mxu0 %vm273_vm0, %v12079_v29  ;;  %v9613_v29 = vrot.slane %v11989_v11, 5  ;;  %v17486_v5 = vsel %vm14426_vm6, %v12049_v18, %v9610_v42  ;;  %v4859_v44 = vrot.slane %v4857_v23, 4  ;;  %v4855_v26 = vsel %vm14081_vm3, %v4850_v25, %v4854_v54  ;;  %v11993_v54 = vld [vmem:[%s18253_s0 + $0x114] sm:$0xe]  ;;  %v11995_v25 = vld [vmem:[%s18253_s0 + $0x11c] sm:$0x1] }
 0x208   :  { %13057 = vmatprep.mubr.msk.bf16.mxu0 %vm273_vm0, %v12080_v62  ;;  %v17482_v62 = vsel %vm14426_vm6, %v9605_v9, %v9606_v6  ;;  %v4845_v16 = vsel %vm14081_vm3, %v4840_v55, %v17433_v1  ;;  %v4862_v46 = vrot.slane %v4860_v0, 5  ;;  %v17500_v33 = vrot.slane %v4866_v51, 5  ;;  %v11333_v51 = vld [vmem:[%s18253_s0 + $0x148] sm:$0xf] }
 0x209   :  { %v17511_v35 = vsel %vm14426_vm6, %v9612_v57, %v9613_v29  ;;  %v4872_v20 = vrot.slane %v4870_v58, 4  ;;  %v4876_v28 = vshll.u32 %v11328_v50, 16  ;;  %v9617_v45 = vrot.slane %v11991_v34, 5  ;;  %v11332_v29 = vld [vmem:[%s18253_s0 + $0x144] sm:$0xf] }
 0x20a   :  { %v4863_v6 = vor.u32 %v4862_v46, %v4859_v44  ;;  %v12050_v1 = vrot.slane %v11990_v7, 9  ;;  %v4881_v38 = vshrl.u32 %v11329_v60, 16  ;;  %v4884_v11 = vshll.u32 %v11329_v60, 16  ;;  %v11334_v7 = vld [vmem:[%s18253_s0 + $0x14c] sm:$0x1] }
 0x20b   :  { %v4873_v9 = vor.u32 %v4872_v20, %v17500_v33  ;;  %v9619_v56 = vrot.slane %v9617_v45, 4  ;;  %v9620_v4 = vrot.slane %v11992_v21, 5  ;;  %v4890_v12 = vshll.u32 %v11330_v63, 16  ;;  %v13935_v21 = vld [vmem:[%s18253_s0 + $0x198] sm:$0xff]  }
 0x20c   :  { %v4864_v31 = vrot.slane %v4863_v6, 4  ;;  %v4883_v18 = vrot.slane %v4881_v38, 4  ;;  %v4886_v42 = vrot.slane %v4884_v11, 5  ;;  %v4894_v27 = vshrl.u32 %v11330_v63, 16 }
 0x20d   :  { %12740 = vmatmul.mubr.msk.bf16.gmra.mrb[52].mxu1 %vm273_vm0, %v13931_v22  ;;  %v11994_v22 = vld [vmem:[%s18253_s0 + $0x118] sm:$0xf]  ;;  %v17534_v24 = vcombine.low %v4821_v2, %v4831_v36  ;;  %v12086_v17 = vcombine.low %v17461_v3, %v17482_v62  ;;  %v17540_v55 = vrot.slane %v4890_v12, 5  ;;  %v12087_v48 = vcombine.low %v17486_v5, %v17511_v35  ;;  %v11336_v12 = vld [vmem:[%s18253_s0 + $0x154] sm:$0xf] }
 0x20e   :  { %12743 = vmatprep.mubr.msk.bf16.mxu1 %vm273_vm0, %v13932_v41  ;;  %v13934_v41 = vld [vmem:[%s18253_s0 + $0x18c] sm:$0xff]   ;;  %v4874_v52 = vrot.slane %v4873_v9, 4  ;;  %v4896_v57 = vrot.slane %v4894_v27, 4  ;;  %v17555_v50 = vsel %vm14426_vm6, %v12050_v1, %v9617_v45  ;;  %v17559_v23 = vsel %vm14426_vm6, %v9619_v56, %v9620_v4  ;;  %v17583_v45 = vld [vmem:[%s18253_s0 + $0x124] sm:$0xf] }
 0x20f   :  { %13058 = vmatmul.mubr.msk.bf16.gmra.mrb[20].mxu0 %vm273_vm0, %v12081_v10  ;;  %v17538_v10 = vcombine.low %v4845_v16, %v4855_v26  ;;  %v4900_v2 = vshll.u32 %v11331_v43, 16  ;;  %v9624_v0 = vrot.slane %v11994_v22, 5  ;;  %v4869_v58 = vsel %vm14081_vm3, %v4864_v31, %v17500_v33 }
 0x210   :  { %13061 = vmatprep.mubr.msk.bf16.mxu0 %vm273_vm0, %v12082_v19  ;;  %v4878_v19 = vrot.slane %v4876_v28, 5  ;;  %v4887_v34 = vor.u32 %v4886_v42, %v4883_v18  ;;  %v4897_v36 = vor.u32 %v4896_v57, %v17540_v55  ;;  %v12051_v44 = vrot.slane %v11993_v54, 9  ;;  %v11996_v18 = vld [vmem:[%s18253_s0 + $0x120] sm:$0xe] }
 0x211   :  { %v9626_v60 = vrot.slane %v9624_v0, 4  ;;  %v9627_v16 = vrot.slane %v11995_v25, 5  ;;  %v4905_v26 = vshrl.u32 %v11332_v29, 16  ;;  %v4908_v46 = vshll.u32 %v11332_v29, 16 }
 0x212   :  { %v4879_v33 = vsel %vm14081_vm3, %v4874_v52, %v4878_v19  ;;  %v12088_v63 = vcombine.low %v17555_v50, %v17559_v23  ;;  %v4914_v20 = vshll.u32 %v11333_v51, 16  ;;  %v4918_v28 = vshrl.u32 %v11333_v51, 16  ;;  %v12000_v51 = vld [vmem:[%s18253_s0 + $0x130] sm:$0xf] }
 0x213   :  { %v17585_v6 = vrot.slane %v4900_v2, 5  ;;  %v4907_v1 = vrot.slane %v4905_v26, 4  ;;  %v4910_v38 = vrot.slane %v4908_v46, 5  ;;  %v4924_v11 = vshll.u32 %v11334_v7, 16  ;;  %v11339_v46 = vld [vmem:[%s18253_s0 + $0x160] sm:$0xf] }
 0x214   :  { %v4888_v9 = vrot.slane %v4887_v34, 4  ;;  %v4898_v56 = vrot.slane %v4897_v36, 4  ;;  %v17594_v4 = vrot.slane %v4914_v20, 5  ;;  %v4920_v43 = vrot.slane %v4918_v28, 4  ;;  %v12001_v28 = vld [vmem:[%s18253_s0 + $0x134] sm:$0x1] }
 0x215   :  { %12744 = vmatmul.mubr.msk.bf16.gmra.mrb[56].mxu1 %vm273_vm0, %v13933_v37  ;;  %v11335_v37 = vld [vmem:[%s18253_s0 + $0x150] sm:$0xf]  ;;  %v17603_v31 = vcombine.low %v4869_v58, %v4879_v33  ;;  %v17607_v15 = vsel %vm14426_vm6, %v12051_v44, %v9624_v0  ;;  %v17611_v8 = vsel %vm14426_vm6, %v9626_v60, %v9627_v16  ;;  %v4926_v59 = vrot.slane %v4924_v11, 5  ;;  %v11999_v0 = vld [vmem:[%s18253_s0 + $0x12c] sm:$0xe] }
 0x216   :  { %12747 = vmatprep.mubr.msk.bf16.mxu1 %vm273_vm0, %v13934_v41  ;;  %v4921_v42 = vor.u32 %v4920_v43, %v17594_v4  ;;  %v4929_v27 = vshrl.u32 %v11335_v37, 16  ;;  %v11337_v41 = vld [vmem:[%s18253_s0 + $0x158] sm:$0x1]  ;;  %v4932_v54 = vshll.u32 %v11335_v37, 16  ;;  %v4938_v25 = vshll.u32 %v11336_v12, 16 }
 0x217   :  { %13062 = vmatmul.mubr.msk.bf16.gmra.mrb[24].mxu0 %vm273_vm0, %v12083_v47  ;;  %v4911_v47 = vor.u32 %v4910_v38, %v4907_v1  ;;  %v4942_v52 = vshrl.u32 %v11336_v12, 16  ;;  %v4893_v19 = vsel %vm14081_vm3, %v4888_v9, %v17540_v55  ;;  %v4903_v57 = vsel %vm14081_vm3, %v4898_v56, %v17585_v6  ;;  %v11338_v44 = vld [vmem:[%s18253_s0 + $0x15c] sm:$0xf]  ;;  %v11340_v9 = vld [vmem:[%s18253_s0 + $0x164] sm:$0x1] }
 0x218   :  { %13065 = vmatprep.mubr.msk.bf16.mxu0 %vm273_vm0, %v12084_v61  ;;  %v9631_v61 = vrot.slane %v17583_v45, 5  ;;  %v4922_v29 = vrot.slane %v4921_v42, 4  ;;  %v4931_v2 = vrot.slane %v4929_v27, 4  ;;  %v12089_v55 = vcombine.low %v17607_v15, %v17611_v8  ;;  %v12003_v12 = vld [vmem:[%s18253_s0 + $0x13c] sm:$0xf] }
 0x219   :  { %v4912_v22 = vrot.slane %v4911_v47, 4  ;;  %v4934_v58 = vrot.slane %v4932_v54, 5  ;;  %v17641_v34 = vrot.slane %v4938_v25, 5  ;;  %v4944_v36 = vrot.slane %v4942_v52, 4  ;;  %v11341_v42 = vld [vmem:[%s18253_s0 + $0x168] sm:$0xf] }
 0x21a   :  { %v12052_v7 = vrot.slane %v11996_v18, 9  ;;  %v9633_v60 = vrot.slane %v9631_v61, 4  ;;  %v9634_v16 = vrot.slane %v11998_v49, 5  ;;  %v4948_v26 = vshll.u32 %v11337_v41, 16  ;;  %v12002_v18 = vld [vmem:[%s18253_s0 + $0x138] sm:$0xe] }
 0x21b   :  { %v4935_v33 = vor.u32 %v4934_v58, %v4931_v2  ;;  %v4945_v20 = vor.u32 %v4944_v36, %v17641_v34  ;;  %v12053_v6 = vrot.slane %v11999_v0, 9  ;;  %v9638_v1 = vrot.slane %v12000_v51, 5  ;;  %v11342_v52 = vld [vmem:[%s18253_s0 + $0x16c] sm:$0xf]  ;;  %v11343_v58 = vld [vmem:[%s18253_s0 + $0x170] sm:$0x1] }
 0x21c   :  { %v4950_v45 = vrot.slane %v4948_v26, 5  ;;  %v4953_v38 = vshrl.u32 %v11338_v44, 16  ;;  %v4956_v56 = vshll.u32 %v11338_v44, 16  ;;  %v9641_v39 = vrot.slane %v12001_v28, 5  ;;  %v11348_v15 = vld [vmem:[%s18253_s0 + $0x184] sm:$0xf] }
 0x21d   :  { %12748 = vmatmul.mubr.msk.bf16.gmra.mrb[60].mxu1 %vm273_vm0, %v13935_v21  ;;  %v4927_v21 = vsel %vm14081_vm3, %v4922_v29, %v4926_v59  ;;  %v4936_v11 = vrot.slane %v4935_v33, 4  ;;  %v4946_v37 = vrot.slane %v4945_v20, 4  ;;  %v9640_v40 = vrot.slane %v9638_v1, 4  ;;  %v11345_v33 = vld [vmem:[%s18253_s0 + $0x178] sm:$0xf] }
 0x21e   :  { %12793 = vmatprep.mubr.msk.bf16.mxu1 %vm273_vm0, %v17381_v53  ;;  %v4917_v53 = vsel %vm14081_vm3, %v4912_v22, %v17594_v4  ;;  %v4962_v4 = vshll.u32 %v11339_v46, 16  ;;  %v4966_v43 = vshrl.u32 %v11339_v46, 16  ;;  %v17672_v47 = vcombine.low %v4893_v19, %v4903_v57  ;;  %v12004_v22 = vld [vmem:[%s18253_s0 + $0x140] sm:$0x1]  ;;  %v12006_v46 = vld [vmem:[%s18253_s0 + $0x148] sm:$0xf] }
 0x21f   :  { %13066 = vmatmul.mubr.msk.bf16.gmra.mrb[28].mxu0 %vm273_vm0, %v12085_v13  ;;  %v4955_v13 = vrot.slane %v4953_v38, 4  ;;  %v17676_v3 = vsel %vm14426_vm6, %v12052_v7, %v9631_v61  ;;  %v4958_v62 = vrot.slane %v4956_v56, 5  ;;  %v17688_v59 = vcombine.low %v4917_v53, %v4927_v21  ;;  %v11344_v53 = vld [vmem:[%s18253_s0 + $0x174] sm:$0xf] }
 0x220   :  { %13069 = vmatprep.mubr.msk.bf16.mxu0 %vm273_vm0, %v12086_v17  ;;  %v17678_v17 = vrot.slane %v4962_v4, 5  ;;  %v17692_v49 = vsel %vm14426_vm6, %v9633_v60, %v9634_v16  ;;  %v17696_v61 = vsel %vm14426_vm6, %v12053_v6, %v9638_v1  ;;  %v4968_v27 = vrot.slane %v4966_v43, 4  ;;  %v12005_v16 = vld [vmem:[%s18253_s0 + $0x144] sm:$0xe]  ;;  %v12007_v1 = vld [vmem:[%s18253_s0 + $0x14c] sm:$0x1] }
 0x221   :  { %v4951_v41 = vsel %vm14081_vm3, %v4946_v37, %v4950_v45  ;;  %v4972_v54 = vshll.u32 %v11340_v9, 16  ;;  %v9645_v25 = vrot.slane %v12003_v12, 5  ;;  %v17713_v19 = vsel %vm14426_vm6, %v9640_v40, %v9641_v39  ;;  %v11346_v9 = vld [vmem:[%s18253_s0 + $0x17c] sm:$0x1]  ;;  %v12009_v43 = vld [vmem:[%s18253_s0 + $0x154] sm:$0xf] }
 0x222   :  { %v4959_v57 = vor.u32 %v4958_v62, %v4955_v13  ;;  %v12054_v29 = vrot.slane %v12002_v18, 9  ;;  %v4969_v2 = vor.u32 %v4968_v27, %v17678_v17  ;;  %v9648_v51 = vrot.slane %v12004_v22, 5 }
 0x223   :  { %v9647_v0 = vrot.slane %v9645_v25, 4  ;;  %v12090_v36 = vcombine.low %v17676_v3, %v17692_v49  ;;  %v4986_v7 = vshll.u32 %v11342_v52, 16  ;;  %v4990_v60 = vshrl.u32 %v11342_v52, 16 }
 0x224   :  { %v12091_v5 = vcombine.low %v17696_v61, %v17713_v19  ;;  %v17736_v35 = vrot.slane %v4972_v54, 5  ;;  %v17744_v21 = vrot.slane %v4959_v57, 4  ;;  %v17751_v20 = vrot.slane %v4969_v2, 4 }
 0x225   :  { %12794 = vmatmul.mubr.msk.bf16.vlgmr.msra.gmra.mrb[36].mxu1 %vm273_vm0, %v17457_v32  ;;  %v4941_v32 = vsel %vm14081_vm3, %v4936_v11, %v17641_v34  ;;  %v4980_v34 = vshll.u32 %v11341_v42, 16  ;;  %v17746_v50 = vrot.slane %v4986_v7, 5  ;;  %v4992_v23 = vrot.slane %v4990_v60, 4 }
 0x226   :  { %12797 = vmatprep.mubr.msk.bf16.mxu1 %vm273_vm0, %v17534_v24  ;;  %v4977_v24 = vshrl.u32 %v11341_v42, 16  ;;  %v17732_v26 = vcombine.low %v4941_v32, %v4951_v41  ;;  %v17755_v28 = vsel %vm14426_vm6, %v12054_v29, %v9645_v25  ;;  %v17759_v45 = vsel %vm14426_vm6, %v9647_v0, %v9648_v51  ;;  %v11347_v32 = vld [vmem:[%s18253_s0 + $0x180] sm:$0xf] }
 0x227   :  { %13070 = vmatmul.mubr.msk.bf16.gmra.mrb[32].mxu0 %vm273_vm0, %v12087_v48  ;;  %v4982_v48 = vrot.slane %v4980_v34, 5  ;;  %v4993_v38 = vor.u32 %v4992_v23, %v17746_v50  ;;  %v12055_v11 = vrot.slane %v12005_v16, 9  ;;  %v9652_v37 = vrot.slane %v12006_v46, 5 }
 0x228   :  { %v4979_v44 = vrot.slane %v4977_v24, 4  ;;  %13073 = vmatprep.mubr.msk.bf16.mxu0 %vm273_vm0, %v12088_v63  ;;  %v4996_v63 = vshll.u32 %v11343_v58, 16  ;;  %v5001_v56 = vshrl.u32 %v11344_v53, 16  ;;  %v5004_v40 = vshll.u32 %v11344_v53, 16 }
 0x229   :  { %v5010_v39 = vshll.u32 %v11345_v33, 16  ;;  %v5014_v13 = vshrl.u32 %v11345_v33, 16  ;;  %v4994_v12 = vrot.slane %v4993_v38, 4  ;;  %v9655_v62 = vrot.slane %v12007_v1, 5 }
 0x22a   :  { %v4983_v6 = vor.u32 %v4982_v48, %v4979_v44  ;;  %v4998_v3 = vrot.slane %v4996_v63, 5  ;;  %v5003_v18 = vrot.slane %v5001_v56, 4  ;;  %v9654_v42 = vrot.slane %v9652_v37, 4 }
 0x22b   :  { %v5006_v49 = vrot.slane %v5004_v40, 5  ;;  %v17781_v27 = vrot.slane %v5010_v39, 5  ;;  %v5016_v22 = vrot.slane %v5014_v13, 4  ;;  %v4965_v41 = vsel %vm14081_vm3, %v17744_v21, %v17678_v17 }
 0x22c   :  { %v4984_v4 = vrot.slane %v4983_v6, 4  ;;  %v4975_v54 = vsel %vm14081_vm3, %v17751_v20, %v17736_v35  ;;  %v12092_v25 = vcombine.low %v17755_v28, %v17759_v45  ;;  %v17802_v52 = vsel %vm14426_vm6, %v12055_v11, %v9652_v37 }
 0x22d   :  { %12798 = vmatmul.mubr.msk.bf16.gmra.mrb[40].mxu1 %vm273_vm0, %v17538_v10  ;;  %v12008_v10 = vld [vmem:[%s18253_s0 + $0x150] sm:$0xe]  ;;  %v5017_v17 = vor.u32 %v5016_v22, %v17781_v27  ;;  %v5020_v57 = vshll.u32 %v11346_v9, 16 }
 0x22e   :  { %12801 = vmatprep.mubr.msk.bf16.mxu1 %vm273_vm0, %v17603_v31  ;;  %v12010_v31 = vld [vmem:[%s18253_s0 + $0x158] sm:$0x1]  ;;  %v4989_v8 = vsel %vm14081_vm3, %v4984_v4, %v17746_v50 }
 0x22f   :  { %13074 = vmatmul.mubr.msk.bf16.gmra.mrb[36].mxu0 %vm273_vm0, %v12089_v55  ;;  %v5007_v55 = vor.u32 %v5006_v49, %v5003_v18 }
 0x230   :  { %13077 = vmatprep.mubr.msk.bf16.mxu0 %vm273_vm0, %v12090_v36 }
 0x231   :  { %13 = vsyncpa [#allocation5], 0  ;;  %v12056_v29 = vrot.slane %v12008_v10, 9  ;;  %v9659_v24 = vrot.slane %v12009_v43, 5  ;;  %v9662_v2 = vrot.slane %v12010_v31, 5  ;;  %v5025_v0 = vshrl.u32 %v11347_v32, 16 }
 0x232   :  { %v4999_v51 = vsel %vm14081_vm3, %v4994_v12, %v4998_v3  ;;  %v17816_v58 = vsel %vm14426_vm6, %v9654_v42, %v9655_v62  ;;  %v11349_v34 = vld [vmem:[%s18253_s0 + $0x188] sm:$0x1]  ;;  %v5028_v36 = vshll.u32 %v11347_v32, 16  ;;  %v5034_v44 = vshll.u32 %v11348_v15, 16  ;;  %v12011_v7 = vld [vmem:[%s18253_s0 + $0x15c] sm:$0xe] }
 0x233   :  { %v17826_v60 = vrot.slane %v5007_v55, 4  ;;  %v9661_v16 = vrot.slane %v9659_v24, 4  ;;  %v5027_v35 = vrot.slane %v5025_v0, 4  ;;  %v5038_v48 = vshrl.u32 %v11348_v15, 16  ;;  %v12012_v46 = vld [vmem:[%s18253_s0 + $0x160] sm:$0xf] }
 0x234   :  { %v17833_v53 = vrot.slane %v5017_v17, 4  ;;  %v17835_v21 = vrot.slane %v5020_v57, 5  ;;  %v5030_v50 = vrot.slane %v5028_v36, 5  ;;  %v17837_v23 = vrot.slane %v5034_v44, 5  ;;  %v12013_v38 = vld [vmem:[%s18253_s0 + $0x164] sm:$0x1] }
 0x235   :  { %12802 = vmatmul.mubr.msk.bf16.gmra.mrb[44].mxu1 %vm273_vm0, %v17672_v47  ;;  %v11350_v47 = vld [vmem:[%s18253_s0 + $0x18c] sm:$0xf]  ;;  %v9660_v63 = vsel %vm14426_vm6, %v12056_v29, %v9659_v24  ;;  %v9663_v33 = vsel %vm14426_vm6, %v9661_v16, %v9662_v2  ;;  %v5040_v20 = vrot.slane %v5038_v48, 4  ;;  %v5044_v28 = vshll.u32 %v11349_v34, 16  ;;  %v11351_v11 = vld [vmem:[%s18253_s0 + $0x190] sm:$0xf] }
 0x236   :  { %12805 = vmatprep.mubr.msk.bf16.mxu1 %vm273_vm0, %v17688_v59  ;;  %v11388_v59 = vcombine.low %v4965_v41, %v4975_v54  ;;  %v17846_v45 = vcombine.low %v4989_v8, %v4999_v51  ;;  %v12093_v6 = vcombine.low %v17802_v52, %v17816_v58  ;;  %v5031_v1 = vor.u32 %v5030_v50, %v5027_v35  ;;  %v11352_v4 = vld [vmem:[%s18253_s0 + $0x194] sm:$0x1]  ;;  %v12014_v13 = vld [vmem:[%s18253_s0 + $0x168] sm:$0xe]  ;;  %v12015_v10 = vld [vmem:[%s18253_s0 + $0x16c] sm:$0xf] }
 0x237   :  { %13078 = vmatmul.mubr.msk.bf16.gmra.mrb[40].mxu0 %vm273_vm0, %v12091_v5  ;;  %v5013_v37 = vsel %vm14081_vm3, %v17826_v60, %v17781_v27  ;;  %v12057_v9 = vrot.slane %v12011_v7, 9  ;;  %v9666_v56 = vrot.slane %v12012_v46, 5  ;;  %v5049_v40 = vshrl.u32 %v11350_v47, 16  ;;  %v12016_v18 = vld [vmem:[%s18253_s0 + $0x170] sm:$0x1] }
 0x238   :  { %13081 = vmatprep.mubr.msk.bf16.mxu0 %vm273_vm0, %v12092_v25  ;;  %v5023_v61 = vsel %vm14081_vm3, %v17833_v53, %v17835_v21  ;;  %v12094_v19 = vcombine.low %v9660_v63, %v9663_v33  ;;  %v5041_v5 = vor.u32 %v5040_v20, %v17837_v23  ;;  %v5052_v39 = vshll.u32 %v11350_v47, 16  ;;  %v11353_v22 = vld [vmem:[%s18253_s0 + $0x198] sm:$0xf]  ;;  %v11354_v52 = vld [vmem:[%s18253_s0 + $0x19c] sm:$0xf] }
 0x239   :  { %v17879_v43 = vrot.slane %v5044_v28, 5  ;;  %v5051_v12 = vrot.slane %v5049_v40, 4  ;;  %v5058_v3 = vshll.u32 %v11351_v11, 16  ;;  %v5062_v62 = vshrl.u32 %v11351_v11, 16  ;;  %v11355_v0 = vld [vmem:[%s18253_s0 + $0x1a0] sm:$0x1] }
 0x23a   :  { %v17884_v31 = vrot.slane %v5031_v1, 4  ;;  %v9669_v42 = vrot.slane %v12013_v38, 5  ;;  %v5054_v49 = vrot.slane %v5052_v39, 5  ;;  %v5068_v27 = vshll.u32 %v11352_v4, 16  ;;  %v12017_v16 = vld [vmem:[%s18253_s0 + $0x174] sm:$0xe] }
 0x23b   :  { %v9667_v32 = vsel %vm14426_vm6, %v12057_v9, %v9666_v56  ;;  %v9668_v41 = vrot.slane %v9666_v56, 4  ;;  %v5060_v54 = vrot.slane %v5058_v3, 5  ;;  %v5064_v25 = vrot.slane %v5062_v62, 4  ;;  %v12018_v21 = vld [vmem:[%s18253_s0 + $0x178] sm:$0xf] }
 0x23c   :  { %v5042_v15 = vrot.slane %v5041_v5, 4  ;;  %v5055_v8 = vor.u32 %v5054_v49, %v5051_v12  ;;  %v5070_v55 = vrot.slane %v5068_v27, 5  ;;  %v12058_v17 = vrot.slane %v12014_v13, 9  ;;  %v12019_v33 = vld [vmem:[%s18253_s0 + $0x17c] sm:$0x1] }
 0x23d   :  { %12806 = vmatmul.mubr.msk.bf16.gmra.mrb[48].mxu1 %vm273_vm0, %v17732_v26  ;;  %v5065_v57 = vor.u32 %v5064_v25, %v5060_v54  ;;  %v9673_v29 = vrot.slane %v12015_v10, 5  ;;  %v9676_v24 = vrot.slane %v12016_v18, 5  ;;  %v5073_v26 = vshrl.u32 %v11353_v22, 16  ;;  %v12021_v20 = vld [vmem:[%s18253_s0 + $0x184] sm:$0xf] }
 0x23e   :  { %12809 = vmatprep.mubr.msk.bf16.mxu1 %vm273_vm0, %v11388_v59  ;;  %v5056_v2 = vrot.slane %v5055_v8, 4  ;;  %v5076_v51 = vshll.u32 %v11353_v22, 16  ;;  %v5082_v58 = vshll.u32 %v11354_v52, 16  ;;  %v5086_v34 = vshrl.u32 %v11354_v52, 16  ;;  %v12020_v1 = vld [vmem:[%s18253_s0 + $0x180] sm:$0xe] }
 0x23f   :  { %13082 = vmatmul.mubr.msk.bf16.gmra.mrb[44].mxu0 %vm273_vm0, %v12093_v6  ;;  %v9670_v36 = vsel %vm14426_vm6, %v9668_v41, %v9669_v42  ;;  %v5066_v44 = vrot.slane %v5065_v57, 4  ;;  %v9675_v7 = vrot.slane %v9673_v29, 4  ;;  %v5075_v60 = vrot.slane %v5073_v26, 4  ;;  %v12022_v38 = vld [vmem:[%s18253_s0 + $0x188] sm:$0x1] }
 0x240   :  { %v11390_v35 = vcombine.low %v5013_v37, %v5023_v61  ;;  %13085 = vmatprep.mubr.msk.bf16.mxu0 %vm273_vm0, %v12094_v19  ;;  %v5078_v48 = vrot.slane %v5076_v51, 5  ;;  %v5084_v46 = vrot.slane %v5082_v58, 5  ;;  %v5088_v53 = vrot.slane %v5086_v34, 4  ;;  %v12024_v10 = vld [vmem:[%s18253_s0 + $0x190] sm:$0xf] }
 0x241   :  { %v5037_v50 = vsel %vm14081_vm3, %v17884_v31, %v17837_v23  ;;  %v9674_v47 = vsel %vm14426_vm6, %v12058_v17, %v9673_v29  ;;  %v9677_v63 = vsel %vm14426_vm6, %v9675_v7, %v9676_v24  ;;  %v5047_v28 = vsel %vm14081_vm3, %v5042_v15, %v17879_v43  ;;  %v12023_v27 = vld [vmem:[%s18253_s0 + $0x18c] sm:$0xe]  ;;  %v12026_v52 = vld [vmem:[%s18253_s0 + $0x198] sm:$0xe]  ;;  %v12028_v15 = vld [vmem:[%s18253_s0 + $0x1a0] sm:$0x1] }
 0x242   :  { %v12095_v59 = vcombine.low %v9667_v32, %v9670_v36  ;;  %v5061_v23 = vsel %vm14081_vm3, %v5056_v2, %v5060_v54  ;;  %v5071_v6 = vsel %vm14081_vm3, %v5066_v44, %v5070_v55  ;;  %v5079_v11 = vor.u32 %v5078_v48, %v5075_v60  ;;  %v12025_v54 = vld [vmem:[%s18253_s0 + $0x194] sm:$0x1]  ;;  %v12030_v58 = vld [vmem:[%s18253_s0 + $0x1a8] sm:$0xf] }
 0x243   :  { %v5092_v37 = vshll.u32 %v11355_v0, 16  ;;  %v12059_v9 = vrot.slane %v12017_v16, 9  ;;  %v9680_v56 = vrot.slane %v12018_v21, 5  ;;  %v12096_v4 = vcombine.low %v9674_v47, %v9677_v63  ;;  %v12029_v16 = vld [vmem:[%s18253_s0 + $0x1a4] sm:$0xe] }
 0x244   :  { %v5089_v40 = vor.u32 %v5088_v53, %v5084_v46  ;;  %v9683_v61 = vrot.slane %v12019_v33, 5  ;;  %v9687_v19 = vrot.slane %v12021_v20, 5  ;;  %v12060_v39 = vrot.slane %v12020_v1, 9 }
 0x245   :  { %12810 = vmatmul.mubr.msk.bf16.gmra.mrb[52].mxu1 %vm273_vm0, %v17846_v45  ;;  %v9682_v5 = vrot.slane %v9680_v56, 4  ;;  %v9690_v13 = vrot.slane %v12022_v38, 5  ;;  %v12027_v45 = vld [vmem:[%s18253_s0 + $0x19c] sm:$0xf]  ;;  %v11391_v12 = vcombine.low %v5037_v50, %v5047_v28  ;;  %v11392_v3 = vcombine.low %v5061_v23, %v5071_v6 }
 0x246   :  { %12813 = vmatprep.mubr.msk.bf16.mxu1 %vm273_vm0, %v11390_v35  ;;  %v9689_v43 = vrot.slane %v9687_v19, 4  ;;  %v5080_v62 = vrot.slane %v5079_v11, 4  ;;  %v5094_v18 = vrot.slane %v5092_v37, 5  ;;  %v5090_v31 = vrot.slane %v5089_v40, 4  ;;  %v12031_v35 = vld [vmem:[%s18253_s0 + $0x1ac] sm:$0x1] }
 0x247   :  { %13086 = vmatmul.mubr.msk.bf16.gmra.mrb[48].mxu0 %vm273_vm0, %v12095_v59  ;;  %v9681_v42 = vsel %vm14426_vm6, %v12059_v9, %v9680_v56  ;;  %v9684_v49 = vsel %vm14426_vm6, %v9682_v5, %v9683_v61  ;;  %v9694_v22 = vrot.slane %v12024_v10, 5  ;;  %v9688_v32 = vsel %vm14426_vm6, %v12060_v39, %v9687_v19 }
 0x248   :  { %13089 = vmatprep.mubr.msk.bf16.mxu0 %vm273_vm0, %v12096_v4  ;;  %v9691_v41 = vsel %vm14426_vm6, %v9689_v43, %v9690_v13  ;;  %v9701_v25 = vrot.slane %v12027_v45, 5  ;;  %v5085_v8 = vsel %vm14081_vm3, %v5080_v62, %v5084_v46  ;;  %v12097_v55 = vcombine.low %v9681_v42, %v9684_v49 }
 0x249   :  { %v12061_v17 = vrot.slane %v12023_v27, 9  ;;  %v5095_v57 = vsel %vm14081_vm3, %v5090_v31, %v5094_v18  ;;  %v12098_v29 = vcombine.low %v9688_v32, %v9691_v41  ;;  %v9696_v24 = vrot.slane %v9694_v22, 4  ;;  %v10748_v18 = vld [vmem:[%s18256_s3] sm:$0xff]  ;;  %v10749_v31 = vld [vmem:[%s18256_s3 + $0x8] sm:$0xff] }
 0x24a   :  { %v9697_v26 = vrot.slane %v12025_v54, 5  ;;  %v12062_v2 = vrot.slane %v12026_v52, 9  ;;  %v9703_v0 = vrot.slane %v9701_v25, 4  ;;  %v9704_v51 = vrot.slane %v12028_v15, 5  ;;  %v10750_v54 = vld [vmem:[%s18256_s3 + $0x10] sm:$0xff] }
 0x24b   :  { %v11393_v34 = vcombine.low %v5085_v8, %v5095_v57  ;;  %v9695_v36 = vsel %vm14426_vm6, %v12061_v17, %v9694_v22  ;;  %v9708_v44 = vrot.slane %v12030_v58, 5  ;;  %v12063_v53 = vrot.slane %v12029_v16, 9  ;;  %v10752_v57 = vld [vmem:[%s18256_s3 + $0x20] sm:$0xff] }
 0x24c   :  { %v9698_v30 = vsel %vm14426_vm6, %v9696_v24, %v9697_v26  ;;  %v9702_v7 = vsel %vm14426_vm6, %v12062_v2, %v9701_v25  ;;  %v9705_v60 = vsel %vm14426_vm6, %v9703_v0, %v9704_v51  ;;  %v9711_v50 = vrot.slane %v12031_v35, 5  ;;  %v10751_v25 = vld [vmem:[%s18256_s3 + $0x18] sm:$0xff]  ;;  %v18089_v58 = vld [vmem:[%s18255_s2] ss:$0 sm:$0xff]  ;;  %v10754_v35 = vld [vmem:[%s18256_s3 + $0x30] sm:$0xff] }
 0x24d   :  { %12814 = vmatmul.mubr.msk.bf16.gmra.mrb[56].mxu1 %vm273_vm0, %v11391_v12  ;;  %v12099_v48 = vcombine.low %v9695_v36, %v9698_v30  ;;  %v12100_v46 = vcombine.low %v9702_v7, %v9705_v60  ;;  %v9710_v21 = vrot.slane %v9708_v44, 4  ;;  %v9709_v47 = vsel %vm14426_vm6, %v12063_v53, %v9708_v44 }
 0x24e   :  { %12817 = vmatprep.mubr.msk.bf16.mxu1 %vm273_vm0, %v11392_v3  ;;  %v13991_v49 = vmov 0.0|0.0   ;;  %v13137_v27 = vpack.c.bf16 %v10749_v31, %v10748_v18  ;;  %v13140_v15 = vpack.c.bf16 %v10751_v25, %v10750_v54  ;;  %v10758_v18 = vld [vmem:[%s18256_s3 + $0x50] sm:$0xff]  ;;  %v10759_v31 = vld [vmem:[%s18256_s3 + $0x58] sm:$0xff]  ;;  %vm13992_vm7 = vmmov 0  }
 0x24f   :  { %13090 = vmatmul.mubr.msk.bf16.gmra.mrb[52].mxu0 %vm273_vm0, %v12097_v55  ;;  %v9712_v63 = vsel %vm14426_vm6, %v9710_v21, %v9711_v50  ;;  %13136 = vmatprep.subr.bf16.mxu1 %v13991_v49  ;;  %vm10773_vm8 = vcmask 1041409  }
 0x250   :  { %13093 = vmatprep.mubr.msk.bf16.mxu0 %vm273_vm0, %v12098_v29  ;;  %v12101_v33 = vcombine.low %v9709_v47, %v9712_v63  ;;  %13138 = vmatpush3.bf16.msra.mxu1 %v13137_v27  ;;  %v10753_v29 = vld [vmem:[%s18256_s3 + $0x28] sm:$0xff]  ;;  %v13993_v27 = vmov 0.0  }
 0x251   :  { %13139 = vmatprep.subr.bf16.mxu1 %v13991_v49  ;;  %v13143_v26 = vpack.c.bf16 %v10753_v29, %v10752_v57 }
 0x254   :  { %13141 = vmatpush3.bf16.msra.mxu1 %v13140_v15 }
 0x255   :  { %12818 = vmatmul.mubr.msk.bf16.gmra.mrb[60].mxu1 %vm273_vm0, %v11393_v34  ;;  %13142 = vmatprep.subr.bf16.mxu1 %v13991_v49 }
 0x256   :  { %13133 = vmatprep.mubr.msk.f32.mxu1 %vm13992_vm7, %v13993_v27 }
 0x257   :  { %13094 = vmatmul.mubr.msk.bf16.gmra.mrb[56].mxu0 %vm273_vm0, %v12099_v48  ;;  %v10755_v48 = vld [vmem:[%s18256_s3 + $0x38] sm:$0xff] }
 0x258   :  { %13097 = vmatprep.mubr.msk.bf16.mxu0 %vm273_vm0, %v12100_v46  ;;  %13144 = vmatpush3.bf16.msra.mxu1 %v13143_v26  ;;  %v13146_v21 = vpack.c.bf16 %v10755_v48, %v10754_v35 }
 0x259   :  { %13145 = vmatprep.subr.bf16.mxu1 %v13991_v49 }
 0x25c   :  { %13147 = vmatpush3.bf16.msra.mxu1 %v13146_v21 }
 0x25d   :  { %13148 = vmatprep.subr.bf16.mxu1 %v13991_v49 }
 0x25f   :  { %13098 = vmatmul.mubr.msk.bf16.gmra.mrb[60].mxu0 %vm273_vm0, %v12101_v33 }
 0x278   :  { %v12689_v20 = vpop.f32.mrb[0].mxu1 }
 0x279   :  { %v3785_v28 = vpop.f32.mrb[1].mxu1 }
 0x27a   :  { %v12690_v59 = vpop.f32.mrb[2].mxu1 }
 0x27b   :  { %v3788_v23 = vpop.f32.mrb[3].mxu1 }
 0x280   :  { %v18001_v6 = vpop.f32.mrb[4].mxu1 }
 0x281   :  { %v18003_v1 = vpop.f32.mrb[5].mxu1 }
 0x282   :  { %v18005_v38 = vpop.f32.mrb[6].mxu1 }
 0x283   :  { %v18007_v11 = vpop.f32.mrb[7].mxu1 }
 0x288   :  { %v18009_v37 = vpop.f32.mrb[8].mxu1 }
 0x289   :  { %v18011_v9 = vpop.f32.mrb[9].mxu1 }
 0x28a   :  { %v18013_v14 = vpop.f32.mrb[10].mxu1 }
 0x28b   :  { %v18015_v56 = vpop.f32.mrb[11].mxu1 }
 0x290   :  { %v18017_v4 = vpop.f32.mrb[12].mxu1 }
 0x291   :  { %v18019_v40 = vpop.f32.mrb[13].mxu1 }
 0x292   :  { %v18021_v61 = vpop.f32.mrb[14].mxu1 }
 0x293   :  { %v18023_v19 = vpop.f32.mrb[15].mxu1 }
 0x298   :  { %v18025_v5 = vpop.f32.mrb[16].mxu1 }
 0x299   :  { %v18027_v39 = vpop.f32.mrb[17].mxu1 }
 0x29a   :  { %v18029_v13 = vpop.f32.mrb[18].mxu1 }
 0x29b   :  { %v18031_v10 = vpop.f32.mrb[19].mxu1 }
 0x2a0   :  { %v18033_v43 = vpop.f32.mrb[20].mxu1 }
 0x2a1   :  { %v18035_v45 = vpop.f32.mrb[21].mxu1 }
 0x2a2   :  { %v18037_v12 = vpop.f32.mrb[22].mxu1 }
 0x2a3   :  { %v18039_v3 = vpop.f32.mrb[23].mxu1 }
 0x2a8   :  { %v18041_v62 = vpop.f32.mrb[24].mxu1 }
 0x2a9   :  { %v18049_v42 = vpop.f32.mrb[25].mxu1 }
 0x2aa   :  { %v18052_v22 = vpop.f32.mrb[26].mxu1 }
 0x2ab   :  { %v18054_v32 = vpop.f32.mrb[27].mxu1 }
 0x2b0   :  { %v18057_v41 = vpop.f32.mrb[28].mxu1 }
 0x2b1   :  { %v18065_v52 = vpop.f32.mrb[29].mxu1 }
 0x2b2   :  { %v18067_v8 = vpop.f32.mrb[30].mxu1 }
 0x2b3   :  { %v18069_v55 = vpop.f32.mrb[31].mxu1 }
 0x2b8   :  { %v18072_v17 = vpop.f32.mrb[32].mxu1 }
 0x2b9   :  { %v18080_v24 = vpop.f32.mrb[33].mxu1 }
 0x2ba   :  { %v18082_v2 = vpop.f32.mrb[34].mxu1  ;;  %v13039_v51 = vpop.f32.mrb[0].mxu0 }
 0x2bb   :  { %v18084_v0 = vpop.f32.mrb[35].mxu1  ;;  %v13168_v34 = vadd.f32 %v13039_v51, %v12689_v20  ;;  %v9964_v36 = vpop.f32.mrb[1].mxu0  ;;  %v10756_v20 = vld [vmem:[%s18256_s3 + $0x40] sm:$0xff] }
 0x2bc   :  { %v13171_v30 = vadd.f32 %v9964_v36, %v3785_v28  ;;  %v13040_v44 = vpop.f32.mrb[2].mxu0  ;;  %v10757_v28 = vld [vmem:[%s18256_s3 + $0x48] sm:$0xff] }
 0x2bd   :  { %v10484_v7 = vadd.f32 %v13168_v34, %v18089_v58  ;;  %v13174_v60 = vadd.f32 %v13040_v44, %v12690_v59  ;;  %v9967_v16 = vpop.f32.mrb[3].mxu0  ;;  %v13152_v34 = vpack.c.bf16 %v10759_v31, %v10758_v18 }
 0x2be   :  { %v10482_v46 = vadd.f32 %v13171_v30, %v18089_v58  ;;  %v13177_v53 = vadd.f32 %v9967_v16, %v3788_v23  ;;  %v13149_v23 = vpack.c.bf16 %v10757_v28, %v10756_v20 }
 0x2bf   :  { %v10548_v50 = vmax.f32 %v10484_v7, 0.0  ;;  %v10485_v47 = vadd.f32 %v13174_v60, %v18089_v58  ;;  %v10760_v7 = vld [vmem:[%s18256_s3 + $0x60] sm:$0xff] }
 0x2c0   :  { %v10546_v63 = vmax.f32 %v10482_v46, 0.0  ;;  %v10483_v33 = vadd.f32 %v13177_v53, %v18089_v58  ;;  %13150 = vmatpush3.bf16.msra.mxu1 %v13149_v23 }
 0x2c1   :  { %10612 = vst [vmem:[#allocation2 + $0x10] sm:$0xff] %v10548_v50  ;;  %v10549_v59 = vmax.f32 %v10485_v47, 0.0  ;;  %13151 = vmatprep.subr.bf16.mxu1 %v13991_v49 }
 0x2c2   :  { %10610 = vst [vmem:[#allocation2] sm:$0xff] %v10546_v63  ;;  %v10547_v54 = vmax.f32 %v10483_v33, 0.0  ;;  %v13043_v25 = vpop.f32.mrb[4].mxu0 }
 0x2c3   :  { %10613 = vst [vmem:[#allocation2 + $0x18] sm:$0xff] %v10549_v59  ;;  %v13180_v15 = vadd.f32 %v13043_v25, %v18001_v6  ;;  %v9980_v57 = vpop.f32.mrb[5].mxu0  ;;  %v10761_v6 = vld [vmem:[%s18256_s3 + $0x68] sm:$0xff] }
 0x2c4   :  { %10611 = vst [vmem:[#allocation2 + $0x8] sm:$0xff] %v10547_v54  ;;  %v10674_v29 = vadd.f32 %v10547_v54, %v10546_v63  ;;  %v13183_v26 = vadd.f32 %v9980_v57, %v18003_v1  ;;  %v13044_v51 = vpop.f32.mrb[6].mxu0  ;;  %13153 = vmatpush3.bf16.msra.mxu1 %v13152_v34  ;;  %v13155_v21 = vpack.c.bf16 %v10761_v6, %v10760_v7 }
 0x2c5   :  { %v10488_v36 = vadd.f32 %v13180_v15, %v18089_v58  ;;  %v13186_v30 = vadd.f32 %v13044_v51, %v18005_v38  ;;  %v9983_v44 = vpop.f32.mrb[7].mxu0  ;;  %13154 = vmatprep.subr.bf16.mxu1 %v13991_v49 }
 0x2c6   :  { %v10675_v60 = vadd.f32 %v10674_v29, %v10548_v50  ;;  %v10486_v1 = vadd.f32 %v13183_v26, %v18089_v58  ;;  %v13189_v16 = vadd.f32 %v9983_v44, %v18007_v11  ;;  %v10762_v50 = vld [vmem:[%s18256_s3 + $0x70] sm:$0xff]  ;;  %v10763_v11 = vld [vmem:[%s18256_s3 + $0x78] sm:$0xff]  ;;  %s13994_s3 = smov [#allocation2]  }
 0x2c7   :  { %v10552_v35 = vmax.f32 %v10488_v36, 0.0  ;;  %v10489_v48 = vadd.f32 %v13186_v30, %v18089_v58  ;;  %v13158_v27 = vpack.c.bf16 %v10763_v11, %v10762_v50  ;;  %s10853_s7 = sshll.u32 %s13994_s3, 4  ;;  %s10854_s7 = int_to_ptr.vmem [resolvable:$true] %s10853_s7 }
 0x2c8   :  { %v10550_v38 = vmax.f32 %v10486_v1, 0.0  ;;  %v10676_v46 = vadd.f32 %v10675_v60, %v10549_v59  ;;  %v10487_v53 = vadd.f32 %v13189_v16, %v18089_v58  ;;  %13156 = vmatpush3.bf16.msra.mxu1 %v13155_v21  ;;  %s13943_s8 = scalar_lea.vmem %s10854_s7, 8192  ;;  %p13948_p1 = scmp.lt.s32.totalorder %s10854_s7, %s10854_s7 }
 0x2c9   :  { %10616 = vst [vmem:[#allocation2 + $0x30] sm:$0xff] %v10552_v35  ;;  %v10553_v47 = vmax.f32 %v10489_v48, 0.0  ;;  %13157 = vmatprep.subr.bf16.mxu1 %v13991_v49  ;;  %p13944_p0 = scmp.ne.s32.totalorder %s10854_s7, %s13943_s8  ;;  %p13949_p2 = scmp.lt.s32.totalorder %s13943_s8, %s13943_s8 }
 0x2ca   :  { %10614 = vst [vmem:[#allocation2 + $0x20] sm:$0xff] %v10550_v38  ;;  %v10677_v63 = vadd.f32 %v10676_v46, %v10550_v38  ;;  %v10551_v33 = vmax.f32 %v10487_v53, 0.0  ;;  %v13047_v20 = vpop.f32.mrb[8].mxu0 }
 0x2cb   :  { %10617 = vst [vmem:[#allocation2 + $0x38] sm:$0xff] %v10553_v47  ;;  %v13192_v28 = vadd.f32 %v13047_v20, %v18009_v37  ;;  %v9996_v59 = vpop.f32.mrb[9].mxu0  ;;  %p13950_p3 = por %p13949_p2, %p13948_p1 }
 0x2cc   :  { %10615 = vst [vmem:[#allocation2 + $0x28] sm:$0xff] %v10551_v33  ;;  %v10678_v23 = vadd.f32 %v10677_v63, %v10551_v33  ;;  %v13195_v18 = vadd.f32 %v9996_v59, %v18011_v9  ;;  %v13048_v31 = vpop.f32.mrb[10].mxu0  ;;  %13159 = vmatpush3.bf16.msra.mxu1 %v13158_v27 }
 0x2cd   :  { %v10492_v54 = vadd.f32 %v13192_v28, %v18089_v58  ;;  %v13198_v25 = vadd.f32 %v13048_v31, %v18013_v14  ;;  %v9999_v15 = vpop.f32.mrb[11].mxu0  ;;  %p13951_p4 = pnand %p13950_p3, %p13944_p0 }
 0x2ce   :  { %v10679_v57 = vadd.f32 %v10678_v23, %v10552_v35  ;;  %v10490_v29 = vadd.f32 %v13195_v18, %v18089_v58  ;;  %v13201_v37 = vadd.f32 %v9999_v15, %v18015_v56 }
 0x2cf   :  { %v10556_v26 = vmax.f32 %v10492_v54, 0.0  ;;  %v10493_v51 = vadd.f32 %v13198_v25, %v18089_v58 }
 0x2d0   :  { %v10554_v34 = vmax.f32 %v10490_v29, 0.0  ;;  %v10680_v9 = vadd.f32 %v10679_v57, %v10553_v47  ;;  %v10491_v36 = vadd.f32 %v13201_v37, %v18089_v58 }
 0x2d1   :  { %10620 = vst [vmem:[#allocation2 + $0x50] sm:$0xff] %v10556_v26  ;;  %v10557_v30 = vmax.f32 %v10493_v51, 0.0 }
 0x2d2   :  { %10618 = vst [vmem:[#allocation2 + $0x40] sm:$0xff] %v10554_v34  ;;  %v10681_v14 = vadd.f32 %v10680_v9, %v10554_v34  ;;  %v10555_v44 = vmax.f32 %v10491_v36, 0.0  ;;  %v13051_v7 = vpop.f32.mrb[12].mxu0 }
 0x2d3   :  { %10621 = vst [vmem:[#allocation2 + $0x58] sm:$0xff] %v10557_v30  ;;  %v13204_v49 = vadd.f32 %v13051_v7, %v18017_v4  ;;  %v10012_v6 = vpop.f32.mrb[13].mxu0 }
 0x2d4   :  { %10619 = vst [vmem:[#allocation2 + $0x48] sm:$0xff] %v10555_v44  ;;  %v10682_v56 = vadd.f32 %v10681_v14, %v10555_v44  ;;  %v13207_v60 = vadd.f32 %v10012_v6, %v18019_v40  ;;  %v13052_v1 = vpop.f32.mrb[14].mxu0 }
 0x2d5   :  { %v10496_v16 = vadd.f32 %v13204_v49, %v18089_v58  ;;  %v13210_v35 = vadd.f32 %v13052_v1, %v18021_v61  ;;  %v10015_v48 = vpop.f32.mrb[15].mxu0 }
 0x2d6   :  { %v10683_v38 = vadd.f32 %v10682_v56, %v10556_v26  ;;  %v10494_v46 = vadd.f32 %v13207_v60, %v18089_v58  ;;  %v13213_v53 = vadd.f32 %v10015_v48, %v18023_v19 }
 0x2d7   :  { %v10560_v21 = vmax.f32 %v10496_v16, 0.0  ;;  %v10497_v47 = vadd.f32 %v13210_v35, %v18089_v58 }
 0x2d8   :  { %v10558_v4 = vmax.f32 %v10494_v46, 0.0  ;;  %v10684_v50 = vadd.f32 %v10683_v38, %v10557_v30  ;;  %v10495_v11 = vadd.f32 %v13213_v53, %v18089_v58 }
 0x2d9   :  { %10624 = vst [vmem:[#allocation2 + $0x70] sm:$0xff] %v10560_v21  ;;  %v10561_v40 = vmax.f32 %v10497_v47, 0.0 }
 0x2da   :  { %10622 = vst [vmem:[#allocation2 + $0x60] sm:$0xff] %v10558_v4  ;;  %v10685_v63 = vadd.f32 %v10684_v50, %v10558_v4  ;;  %v10559_v33 = vmax.f32 %v10495_v11, 0.0  ;;  %v13055_v20 = vpop.f32.mrb[16].mxu0 }
 0x2db   :  { %10625 = vst [vmem:[#allocation2 + $0x78] sm:$0xff] %v10561_v40  ;;  %v13216_v61 = vadd.f32 %v13055_v20, %v18025_v5  ;;  %v10028_v28 = vpop.f32.mrb[17].mxu0 }
 0x2dc   :  { %10623 = vst [vmem:[#allocation2 + $0x68] sm:$0xff] %v10559_v33  ;;  %v10686_v59 = vadd.f32 %v10685_v63, %v10559_v33  ;;  %v13219_v19 = vadd.f32 %v10028_v28, %v18027_v39  ;;  %v13056_v23 = vpop.f32.mrb[18].mxu0 }
 0x2dd   :  { %v10500_v18 = vadd.f32 %v13216_v61, %v18089_v58  ;;  %v13222_v31 = vadd.f32 %v13056_v23, %v18029_v13  ;;  %v10031_v27 = vpop.f32.mrb[19].mxu0 }
 0x2de   :  { %v10687_v54 = vadd.f32 %v10686_v59, %v10560_v21  ;;  %v10498_v25 = vadd.f32 %v13219_v19, %v18089_v58  ;;  %v13225_v15 = vadd.f32 %v10031_v27, %v18031_v10 }
 0x2df   :  { %v10564_v57 = vmax.f32 %v10500_v18, 0.0  ;;  %v10501_v29 = vadd.f32 %v13222_v31, %v18089_v58 }
 0x2e0   :  { %v10562_v5 = vmax.f32 %v10498_v25, 0.0  ;;  %v10688_v37 = vadd.f32 %v10687_v54, %v10561_v40  ;;  %v10499_v26 = vadd.f32 %v13225_v15, %v18089_v58 }
 0x2e1   :  { %10628 = vst [vmem:[#allocation2 + $0x90] sm:$0xff] %v10564_v57  ;;  %v10565_v39 = vmax.f32 %v10501_v29, 0.0 }
 0x2e2   :  { %10626 = vst [vmem:[#allocation2 + $0x80] sm:$0xff] %v10562_v5  ;;  %v10689_v51 = vadd.f32 %v10688_v37, %v10562_v5  ;;  %v10563_v34 = vmax.f32 %v10499_v26, 0.0  ;;  %v13059_v9 = vpop.f32.mrb[20].mxu0 }
 0x2e3   :  { %10629 = vst [vmem:[#allocation2 + $0x98] sm:$0xff] %v10565_v39  ;;  %v13228_v13 = vadd.f32 %v13059_v9, %v18033_v43  ;;  %v10044_v36 = vpop.f32.mrb[21].mxu0 }
 0x2e4   :  { %10627 = vst [vmem:[#allocation2 + $0x88] sm:$0xff] %v10563_v34  ;;  %v10690_v30 = vadd.f32 %v10689_v51, %v10563_v34  ;;  %v13231_v10 = vadd.f32 %v10044_v36, %v18035_v45  ;;  %v13060_v14 = vpop.f32.mrb[22].mxu0 }
 0x2e5   :  { %v10504_v44 = vadd.f32 %v13228_v13, %v18089_v58  ;;  %v13234_v7 = vadd.f32 %v13060_v14, %v18037_v12  ;;  %v10047_v49 = vpop.f32.mrb[23].mxu0 }
 0x2e6   :  { %v10691_v6 = vadd.f32 %v10690_v30, %v10564_v57  ;;  %v10502_v56 = vadd.f32 %v13231_v10, %v18089_v58  ;;  %v13237_v60 = vadd.f32 %v10047_v49, %v18039_v3 }
 0x2e7   :  { %v10568_v1 = vmax.f32 %v10504_v44, 0.0  ;;  %v10505_v16 = vadd.f32 %v13234_v7, %v18089_v58 }
 0x2e8   :  { %v10566_v43 = vmax.f32 %v10502_v56, 0.0  ;;  %v10692_v35 = vadd.f32 %v10691_v6, %v10565_v39  ;;  %v10503_v48 = vadd.f32 %v13237_v60, %v18089_v58 }
 0x2e9   :  { %10632 = vst [vmem:[#allocation2 + $0xb0] sm:$0xff] %v10568_v1  ;;  %v10569_v45 = vmax.f32 %v10505_v16, 0.0 }
 0x2ea   :  { %10630 = vst [vmem:[#allocation2 + $0xa0] sm:$0xff] %v10566_v43  ;;  %v10693_v38 = vadd.f32 %v10692_v35, %v10566_v43  ;;  %v10567_v46 = vmax.f32 %v10503_v48, 0.0  ;;  %v13063_v53 = vpop.f32.mrb[24].mxu0 }
 0x2eb   :  { %10633 = vst [vmem:[#allocation2 + $0xb8] sm:$0xff] %v10569_v45  ;;  %v13240_v12 = vadd.f32 %v13063_v53, %v18041_v62  ;;  %v10060_v21 = vpop.f32.mrb[25].mxu0 }
 0x2ec   :  { %10631 = vst [vmem:[#allocation2 + $0xa8] sm:$0xff] %v10567_v46  ;;  %v10694_v47 = vadd.f32 %v10693_v38, %v10567_v46  ;;  %v13243_v3 = vadd.f32 %v10060_v21, %v18049_v42  ;;  %v13064_v4 = vpop.f32.mrb[26].mxu0 }
 0x2ed   :  { %v10508_v50 = vadd.f32 %v13240_v12, %v18089_v58  ;;  %v13246_v11 = vadd.f32 %v13064_v4, %v18052_v22  ;;  %v10063_v40 = vpop.f32.mrb[27].mxu0 }
 0x2ee   :  { %v10695_v63 = vadd.f32 %v10694_v47, %v10568_v1  ;;  %v10506_v33 = vadd.f32 %v13243_v3, %v18089_v58  ;;  %v13249_v20 = vadd.f32 %v10063_v40, %v18054_v32 }
 0x2ef   :  { %v10572_v61 = vmax.f32 %v10508_v50, 0.0  ;;  %v10509_v28 = vadd.f32 %v13246_v11, %v18089_v58 }
 0x2f0   :  { %v10570_v62 = vmax.f32 %v10506_v33, 0.0  ;;  %v10696_v59 = vadd.f32 %v10695_v63, %v10569_v45  ;;  %v10507_v19 = vadd.f32 %v13249_v20, %v18089_v58 }
 0x2f1   :  { %10636 = vst [vmem:[#allocation2 + $0xd0] sm:$0xff] %v10572_v61  ;;  %v10573_v42 = vmax.f32 %v10509_v28, 0.0 }
 0x2f2   :  { %10634 = vst [vmem:[#allocation2 + $0xc0] sm:$0xff] %v10570_v62  ;;  %v10697_v23 = vadd.f32 %v10696_v59, %v10570_v62  ;;  %v10571_v18 = vmax.f32 %v10507_v19, 0.0  ;;  %v13067_v31 = vpop.f32.mrb[28].mxu0 }
 0x2f3   :  { %10637 = vst [vmem:[#allocation2 + $0xd8] sm:$0xff] %v10573_v42  ;;  %v13252_v22 = vadd.f32 %v13067_v31, %v18057_v41  ;;  %v10076_v27 = vpop.f32.mrb[29].mxu0 }
 0x2f4   :  { %10635 = vst [vmem:[#allocation2 + $0xc8] sm:$0xff] %v10571_v18  ;;  %v10698_v54 = vadd.f32 %v10697_v23, %v10571_v18  ;;  %v13255_v32 = vadd.f32 %v10076_v27, %v18065_v52  ;;  %v13068_v25 = vpop.f32.mrb[30].mxu0 }
 0x2f5   :  { %v10512_v15 = vadd.f32 %v13252_v22, %v18089_v58  ;;  %v13258_v57 = vadd.f32 %v13068_v25, %v18067_v8  ;;  %v10079_v29 = vpop.f32.mrb[31].mxu0 }
 0x2f6   :  { %v10699_v5 = vadd.f32 %v10698_v54, %v10572_v61  ;;  %v10510_v26 = vadd.f32 %v13255_v32, %v18089_v58  ;;  %v13261_v39 = vadd.f32 %v10079_v29, %v18069_v55 }
 0x2f7   :  { %v10576_v51 = vmax.f32 %v10512_v15, 0.0  ;;  %v10513_v41 = vadd.f32 %v13258_v57, %v18089_v58 }
 0x2f8   :  { %v12795_v37 = vpop.f32.mrb[36].mxu1  ;;  %v10574_v9 = vmax.f32 %v10510_v26, 0.0  ;;  %v10700_v13 = vadd.f32 %v10699_v5, %v10573_v42  ;;  %v10511_v52 = vadd.f32 %v13261_v39, %v18089_v58 }
 0x2f9   :  { %v5491_v34 = vpop.f32.mrb[37].mxu1  ;;  %10640 = vst [vmem:[#allocation2 + $0xf0] sm:$0xff] %v10576_v51  ;;  %v10577_v30 = vmax.f32 %v10513_v41, 0.0 }
 0x2fa   :  { %v12796_v36 = vpop.f32.mrb[38].mxu1  ;;  %10638 = vst [vmem:[#allocation2 + $0xe0] sm:$0xff] %v10574_v9  ;;  %v10701_v8 = vadd.f32 %v10700_v13, %v10574_v9  ;;  %v10575_v14 = vmax.f32 %v10511_v52, 0.0  ;;  %v13071_v44 = vpop.f32.mrb[32].mxu0 }
 0x2fb   :  { %v5494_v10 = vpop.f32.mrb[39].mxu1  ;;  %10641 = vst [vmem:[#allocation2 + $0xf8] sm:$0xff] %v10577_v30  ;;  %v13264_v7 = vadd.f32 %v13071_v44, %v18072_v17  ;;  %v10092_v55 = vpop.f32.mrb[33].mxu0 }
 0x2fc   :  { %10639 = vst [vmem:[#allocation2 + $0xe8] sm:$0xff] %v10575_v14  ;;  %v10702_v49 = vadd.f32 %v10701_v8, %v10575_v14  ;;  %v13267_v6 = vadd.f32 %v10092_v55, %v18080_v24  ;;  %v13072_v56 = vpop.f32.mrb[34].mxu0 }
 0x2fd   :  { %v10516_v60 = vadd.f32 %v13264_v7, %v18089_v58  ;;  %v13270_v1 = vadd.f32 %v13072_v56, %v18082_v2  ;;  %v10095_v16 = vpop.f32.mrb[35].mxu0 }
 0x2fe   :  { %v10703_v43 = vadd.f32 %v10702_v49, %v10576_v51  ;;  %v10514_v48 = vadd.f32 %v13267_v6, %v18089_v58  ;;  %v13273_v45 = vadd.f32 %v10095_v16, %v18084_v0 }
 0x2ff   :  { %v10580_v38 = vmax.f32 %v10516_v60, 0.0  ;;  %v10517_v17 = vadd.f32 %v13270_v1, %v18089_v58 }
 0x300   :  { %v12799_v35 = vpop.f32.mrb[40].mxu1  ;;  %v18193_v53 = vadd.f32 %v10703_v43, %v10577_v30  ;;  %v10578_v12 = vmax.f32 %v10514_v48, 0.0  ;;  %v10515_v21 = vadd.f32 %v13273_v45, %v18089_v58 }
 0x301   :  { %v5507_v46 = vpop.f32.mrb[41].mxu1  ;;  %10644 = vst [vmem:[#allocation2 + $0x110] sm:$0xff] %v10580_v38  ;;  %v10581_v47 = vmax.f32 %v10517_v17, 0.0 }
 0x302   :  { %v12800_v24 = vpop.f32.mrb[42].mxu1  ;;  %10642 = vst [vmem:[#allocation2 + $0x100] sm:$0xff] %v10578_v12  ;;  %v10579_v3 = vmax.f32 %v10515_v21, 0.0  ;;  %v13075_v4 = vpop.f32.mrb[36].mxu0 }
 0x303   :  { %v5510_v2 = vpop.f32.mrb[43].mxu1  ;;  %10645 = vst [vmem:[#allocation2 + $0x118] sm:$0xff] %v10581_v47  ;;  %v13276_v50 = vadd.f32 %v13075_v4, %v12795_v37  ;;  %v10108_v11 = vpop.f32.mrb[37].mxu0 }
 0x304   :  { %10643 = vst [vmem:[#allocation2 + $0x108] sm:$0xff] %v10579_v3  ;;  %v10711_v0 = vadd.f32 %v10579_v3, %v10578_v12  ;;  %v13279_v40 = vadd.f32 %v10108_v11, %v5491_v34  ;;  %v13076_v63 = vpop.f32.mrb[38].mxu0 }
 0x305   :  { %v10520_v33 = vadd.f32 %v13276_v50, %v18089_v58  ;;  %v13282_v20 = vadd.f32 %v13076_v63, %v12796_v36  ;;  %v10111_v61 = vpop.f32.mrb[39].mxu0 }
 0x306   :  { %v10712_v28 = vadd.f32 %v10711_v0, %v10580_v38  ;;  %v10518_v59 = vadd.f32 %v13279_v40, %v18089_v58  ;;  %v13285_v19 = vadd.f32 %v10111_v61, %v5494_v10 }
 0x307   :  { %v10584_v42 = vmax.f32 %v10520_v33, 0.0  ;;  %v10521_v18 = vadd.f32 %v13282_v20, %v18089_v58 }
 0x308   :  { %v12803_v62 = vpop.f32.mrb[44].mxu1  ;;  %v10582_v31 = vmax.f32 %v10518_v59, 0.0  ;;  %v10713_v22 = vadd.f32 %v10712_v28, %v10581_v47  ;;  %v10519_v54 = vadd.f32 %v13285_v19, %v18089_v58 }
 0x309   :  { %v5523_v23 = vpop.f32.mrb[45].mxu1  ;;  %10648 = vst [vmem:[#allocation2 + $0x130] sm:$0xff] %v10584_v42  ;;  %v10585_v32 = vmax.f32 %v10521_v18, 0.0 }
 0x30a   :  { %v12804_v27 = vpop.f32.mrb[46].mxu1  ;;  %10646 = vst [vmem:[#allocation2 + $0x120] sm:$0xff] %v10582_v31  ;;  %v10714_v15 = vadd.f32 %v10713_v22, %v10582_v31  ;;  %v10583_v57 = vmax.f32 %v10519_v54, 0.0  ;;  %v13079_v29 = vpop.f32.mrb[40].mxu0 }
 0x30b   :  { %v5526_v25 = vpop.f32.mrb[47].mxu1  ;;  %10649 = vst [vmem:[#allocation2 + $0x138] sm:$0xff] %v10585_v32  ;;  %v13288_v5 = vadd.f32 %v13079_v29, %v12799_v35  ;;  %v10124_v37 = vpop.f32.mrb[41].mxu0 }
 0x30c   :  { %10647 = vst [vmem:[#allocation2 + $0x128] sm:$0xff] %v10583_v57  ;;  %v10715_v26 = vadd.f32 %v10714_v15, %v10583_v57  ;;  %v13291_v39 = vadd.f32 %v10124_v37, %v5507_v46  ;;  %v13080_v51 = vpop.f32.mrb[42].mxu0 }
 0x30d   :  { %v10524_v34 = vadd.f32 %v13288_v5, %v18089_v58  ;;  %v13294_v41 = vadd.f32 %v13080_v51, %v12800_v24  ;;  %v10127_v9 = vpop.f32.mrb[43].mxu0 }
 0x30e   :  { %v10716_v13 = vadd.f32 %v10715_v26, %v10584_v42  ;;  %v10522_v52 = vadd.f32 %v13291_v39, %v18089_v58  ;;  %v13297_v30 = vadd.f32 %v10127_v9, %v5510_v2 }
 0x30f   :  { %v10588_v10 = vmax.f32 %v10524_v34, 0.0  ;;  %v10525_v14 = vadd.f32 %v13294_v41, %v18089_v58 }
 0x310   :  { %v12807_v36 = vpop.f32.mrb[48].mxu1  ;;  %v10586_v44 = vmax.f32 %v10522_v52, 0.0  ;;  %v10717_v7 = vadd.f32 %v10716_v13, %v10585_v32  ;;  %v10523_v49 = vadd.f32 %v13297_v30, %v18089_v58 }
 0x311   :  { %v5539_v8 = vpop.f32.mrb[49].mxu1  ;;  %10652 = vst [vmem:[#allocation2 + $0x150] sm:$0xff] %v10588_v10  ;;  %v10589_v6 = vmax.f32 %v10525_v14, 0.0 }
 0x312   :  { %v12808_v55 = vpop.f32.mrb[50].mxu1  ;;  %10650 = vst [vmem:[#allocation2 + $0x140] sm:$0xff] %v10586_v44  ;;  %v10718_v60 = vadd.f32 %v10717_v7, %v10586_v44  ;;  %v10587_v1 = vmax.f32 %v10523_v49, 0.0  ;;  %v13083_v16 = vpop.f32.mrb[44].mxu0 }
 0x313   :  { %v5542_v56 = vpop.f32.mrb[51].mxu1  ;;  %10653 = vst [vmem:[#allocation2 + $0x158] sm:$0xff] %v10589_v6  ;;  %v13300_v43 = vadd.f32 %v13083_v16, %v12803_v62  ;;  %v10140_v35 = vpop.f32.mrb[45].mxu0 }
 0x314   :  { %10651 = vst [vmem:[#allocation2 + $0x148] sm:$0xff] %v10587_v1  ;;  %v10719_v48 = vadd.f32 %v10718_v60, %v10587_v1  ;;  %v13303_v45 = vadd.f32 %v10140_v35, %v5523_v23  ;;  %v13084_v38 = vpop.f32.mrb[46].mxu0 }
 0x315   :  { %v10528_v46 = vadd.f32 %v13300_v43, %v18089_v58  ;;  %v13306_v17 = vadd.f32 %v13084_v38, %v12804_v27  ;;  %v10143_v12 = vpop.f32.mrb[47].mxu0 }
 0x316   :  { %v10720_v24 = vadd.f32 %v10719_v48, %v10588_v10  ;;  %v10526_v47 = vadd.f32 %v13303_v45, %v18089_v58  ;;  %v13309_v2 = vadd.f32 %v10143_v12, %v5526_v25 }
 0x317   :  { %v10592_v3 = vmax.f32 %v10528_v46, 0.0  ;;  %v10529_v50 = vadd.f32 %v13306_v17, %v18089_v58 }
 0x318   :  { %v12811_v21 = vpop.f32.mrb[52].mxu1  ;;  %v10590_v11 = vmax.f32 %v10526_v47, 0.0  ;;  %v10721_v0 = vadd.f32 %v10720_v24, %v10589_v6  ;;  %v10527_v63 = vadd.f32 %v13309_v2, %v18089_v58 }
 0x319   :  { %v5555_v4 = vpop.f32.mrb[53].mxu1  ;;  %10656 = vst [vmem:[#allocation2 + $0x170] sm:$0xff] %v10592_v3  ;;  %v10593_v33 = vmax.f32 %v10529_v50, 0.0 }
 0x31a   :  { %v12812_v40 = vpop.f32.mrb[54].mxu1  ;;  %10654 = vst [vmem:[#allocation2 + $0x160] sm:$0xff] %v10590_v11  ;;  %v10722_v61 = vadd.f32 %v10721_v0, %v10590_v11  ;;  %v10591_v28 = vmax.f32 %v10527_v63, 0.0  ;;  %v13087_v62 = vpop.f32.mrb[48].mxu0 }
 0x31b   :  { %v5558_v20 = vpop.f32.mrb[55].mxu1  ;;  %10657 = vst [vmem:[#allocation2 + $0x178] sm:$0xff] %v10593_v33  ;;  %v13312_v59 = vadd.f32 %v13087_v62, %v12807_v36  ;;  %v10156_v19 = vpop.f32.mrb[49].mxu0 }
 0x31c   :  { %10655 = vst [vmem:[#allocation2 + $0x168] sm:$0xff] %v10591_v28  ;;  %v10723_v42 = vadd.f32 %v10722_v61, %v10591_v28  ;;  %v13315_v23 = vadd.f32 %v10156_v19, %v5539_v8  ;;  %v13088_v18 = vpop.f32.mrb[50].mxu0 }
 0x31d   :  { %v10532_v31 = vadd.f32 %v13312_v59, %v18089_v58  ;;  %v13318_v22 = vadd.f32 %v13088_v18, %v12808_v55  ;;  %v10159_v27 = vpop.f32.mrb[51].mxu0 }
 0x31e   :  { %v10724_v54 = vadd.f32 %v10723_v42, %v10592_v3  ;;  %v10530_v25 = vadd.f32 %v13315_v23, %v18089_v58  ;;  %v13321_v15 = vadd.f32 %v10159_v27, %v5542_v56 }
 0x31f   :  { %v10596_v57 = vmax.f32 %v10532_v31, 0.0  ;;  %v10533_v5 = vadd.f32 %v13318_v22, %v18089_v58 }
 0x320   :  { %v12815_v32 = vpop.f32.mrb[56].mxu1  ;;  %v10594_v37 = vmax.f32 %v10530_v25, 0.0  ;;  %v10725_v26 = vadd.f32 %v10724_v54, %v10593_v33  ;;  %v10531_v51 = vadd.f32 %v13321_v15, %v18089_v58 }
 0x321   :  { %v5571_v29 = vpop.f32.mrb[57].mxu1  ;;  %10660 = vst [vmem:[#allocation2 + $0x190] sm:$0xff] %v10596_v57  ;;  %v10597_v34 = vmax.f32 %v10533_v5, 0.0 }
 0x322   :  { %v12816_v39 = vpop.f32.mrb[58].mxu1  ;;  %10658 = vst [vmem:[#allocation2 + $0x180] sm:$0xff] %v10594_v37  ;;  %v10726_v9 = vadd.f32 %v10725_v26, %v10594_v37  ;;  %v10595_v13 = vmax.f32 %v10531_v51, 0.0  ;;  %v13091_v36 = vpop.f32.mrb[52].mxu0 }
 0x323   :  { %v5574_v41 = vpop.f32.mrb[59].mxu1  ;;  %10661 = vst [vmem:[#allocation2 + $0x198] sm:$0xff] %v10597_v34  ;;  %v13324_v52 = vadd.f32 %v13091_v36, %v12811_v21  ;;  %v10172_v30 = vpop.f32.mrb[53].mxu0 }
 0x324   :  { %10659 = vst [vmem:[#allocation2 + $0x188] sm:$0xff] %v10595_v13  ;;  %v10727_v10 = vadd.f32 %v10726_v9, %v10595_v13  ;;  %v13327_v8 = vadd.f32 %v10172_v30, %v5555_v4  ;;  %v13092_v14 = vpop.f32.mrb[54].mxu0  ;;  %v10705_v13 = vrot.slane %v18193_v53, 4 }
 0x325   :  { %v10536_v44 = vadd.f32 %v13324_v52, %v18089_v58  ;;  %v13330_v7 = vadd.f32 %v13092_v14, %v12812_v40  ;;  %v10175_v55 = vpop.f32.mrb[55].mxu0 }
 0x326   :  { %v10728_v49 = vadd.f32 %v10727_v10, %v10596_v57  ;;  %v10534_v56 = vadd.f32 %v13327_v8, %v18089_v58  ;;  %v13333_v60 = vadd.f32 %v10175_v55, %v5558_v20  ;;  %v10706_v8 = vadd.f32 %v10705_v13, %v18193_v53 }
 0x327   :  { %v10600_v1 = vmax.f32 %v10536_v44, 0.0  ;;  %v10537_v43 = vadd.f32 %v13330_v7, %v18089_v58 }
 0x328   :  { %v12819_v6 = vpop.f32.mrb[60].mxu1  ;;  %v10598_v35 = vmax.f32 %v10534_v56, 0.0  ;;  %v10729_v48 = vadd.f32 %v10728_v49, %v10597_v34  ;;  %v10535_v38 = vadd.f32 %v13333_v60, %v18089_v58  ;;  %v10707_v7 = vrot.slane %v10706_v8, 2 }
 0x329   :  { %v5587_v16 = vpop.f32.mrb[61].mxu1  ;;  %10664 = vst [vmem:[#allocation2 + $0x1b0] sm:$0xff] %v10600_v1  ;;  %v10601_v46 = vmax.f32 %v10537_v43, 0.0 }
 0x32a   :  { %v12820_v45 = vpop.f32.mrb[62].mxu1  ;;  %10662 = vst [vmem:[#allocation2 + $0x1a0] sm:$0xff] %v10598_v35  ;;  %v10730_v12 = vadd.f32 %v10729_v48, %v10598_v35  ;;  %v10599_v24 = vmax.f32 %v10535_v38, 0.0  ;;  %v13095_v21 = vpop.f32.mrb[56].mxu0  ;;  %v10708_v49 = vadd.f32 %v10707_v7, %v10706_v8 }
 0x32b   :  { %v5590_v17 = vpop.f32.mrb[63].mxu1  ;;  %10665 = vst [vmem:[#allocation2 + $0x1b8] sm:$0xff] %v10601_v46  ;;  %v13336_v47 = vadd.f32 %v13095_v21, %v12815_v32  ;;  %v10188_v2 = vpop.f32.mrb[57].mxu0 }
 0x32c   :  { %10663 = vst [vmem:[#allocation2 + $0x1a8] sm:$0xff] %v10599_v24  ;;  %v10731_v3 = vadd.f32 %v10730_v12, %v10599_v24  ;;  %v13339_v4 = vadd.f32 %v10188_v2, %v5571_v29  ;;  %v13096_v50 = vpop.f32.mrb[58].mxu0 }
 0x32d   :  { %v10540_v11 = vadd.f32 %v13336_v47, %v18089_v58  ;;  %v13342_v0 = vadd.f32 %v13096_v50, %v12816_v39  ;;  %v10191_v40 = vpop.f32.mrb[59].mxu0 }
 0x32e   :  { %v10732_v63 = vadd.f32 %v10731_v3, %v10600_v1  ;;  %v10538_v33 = vadd.f32 %v13339_v4, %v18089_v58  ;;  %v13345_v20 = vadd.f32 %v10191_v40, %v5574_v41 }
 0x32f   :  { %v10604_v61 = vmax.f32 %v10540_v11, 0.0  ;;  %v10541_v28 = vadd.f32 %v13342_v0, %v18089_v58 }
 0x330   :  { %v10602_v62 = vmax.f32 %v10538_v33, 0.0  ;;  %v10733_v59 = vadd.f32 %v10732_v63, %v10601_v46  ;;  %v10539_v19 = vadd.f32 %v13345_v20, %v18089_v58 }
 0x331   :  { %10668 = vst [vmem:[#allocation2 + $0x1d0] sm:$0xff] %v10604_v61  ;;  %v10605_v42 = vmax.f32 %v10541_v28, 0.0 }
 0x332   :  { %10666 = vst [vmem:[#allocation2 + $0x1c0] sm:$0xff] %v10602_v62  ;;  %v10734_v23 = vadd.f32 %v10733_v59, %v10602_v62  ;;  %v10603_v18 = vmax.f32 %v10539_v19, 0.0  ;;  %v13099_v31 = vpop.f32.mrb[60].mxu0 }
 0x333   :  { %10669 = vst [vmem:[#allocation2 + $0x1d8] sm:$0xff] %v10605_v42  ;;  %v13348_v22 = vadd.f32 %v13099_v31, %v12819_v6  ;;  %v10204_v27 = vpop.f32.mrb[61].mxu0 }
 0x334   :  { %10667 = vst [vmem:[#allocation2 + $0x1c8] sm:$0xff] %v10603_v18  ;;  %v10735_v54 = vadd.f32 %v10734_v23, %v10603_v18  ;;  %v13351_v32 = vadd.f32 %v10204_v27, %v5587_v16  ;;  %v13100_v25 = vpop.f32.mrb[62].mxu0 }
 0x335   :  { %v10544_v15 = vadd.f32 %v13348_v22, %v18089_v58  ;;  %v13354_v57 = vadd.f32 %v13100_v25, %v12820_v45  ;;  %v10207_v29 = vpop.f32.mrb[63].mxu0 }
 0x336   :  { %v10736_v5 = vadd.f32 %v10735_v54, %v10604_v61  ;;  %v10542_v37 = vadd.f32 %v13351_v32, %v18089_v58  ;;  %v13357_v26 = vadd.f32 %v10207_v29, %v5590_v17 }
 0x337   :  { %v10608_v39 = vmax.f32 %v10544_v15, 0.0  ;;  %v10545_v51 = vadd.f32 %v13354_v57, %v18089_v58 }
 0x338   :  { %v10606_v34 = vmax.f32 %v10542_v37, 0.0  ;;  %v10737_v41 = vadd.f32 %v10736_v5, %v10605_v42  ;;  %v10543_v9 = vadd.f32 %v13357_v26, %v18089_v58  ;;  %v10709_v58 = vrot.slane %v10708_v49, 1 }
 0x339   :  { %10672 = vst [vmem:[#allocation2 + $0x1f0] sm:$0xff] %v10608_v39  ;;  %v10609_v36 = vmax.f32 %v10545_v51, 0.0 }
 0x33a   :  { %10670 = vst [vmem:[#allocation2 + $0x1e0] sm:$0xff] %v10606_v34  ;;  %v10738_v52 = vadd.f32 %v10737_v41, %v10606_v34  ;;  %v10607_v30 = vmax.f32 %v10543_v9, 0.0  ;;  %v10710_v16 = vadd.f32 %v10709_v58, %v10708_v49 }
 0x33b   :  { %10673 = vst [vmem:[#allocation2 + $0x1f8] sm:$0xff] %v10609_v36 }
 0x33c   :  { %10671 = vst [vmem:[#allocation2 + $0x1e8] sm:$0xff] %v10607_v30  ;;  %v10739_v10 = vadd.f32 %v10738_v52, %v10607_v30 }
 0x33e   :  { %v10740_v14 = vadd.f32 %v10739_v10, %v10608_v39 }
 0x340   :  { %v10741_v44 = vadd.f32 %v10740_v14, %v10609_v36 }
 0x342   :  { %v10742_v55 = vrot.slane %v10741_v44, 4 }
 0x344   :  { %v10743_v6 = vadd.f32 %v10742_v55, %v10741_v44 }
 0x346   :  { %v10744_v56 = vrot.slane %v10743_v6, 2 }
 0x348   :  { %v10745_v60 = vadd.f32 %v10744_v56, %v10743_v6 }
 0x34a   :  { %v10746_v1 = vrot.slane %v10745_v60, 1 }
 0x34c   :  { %v10747_v43 = vadd.f32 %v10746_v1, %v10745_v60 }
 0x34e   :  { %v10774_v35 = vsel %vm10773_vm8, %v10747_v43, %v10710_v16 }
 0x34f   :  { %13134 = vmatmul.mubr.f32.vlgmr.msra.gmra.mrb[64].mxu1 %v10774_v35 }
 0x350   :  { %13954 = shalt.err (!%p13951_p4)
}
 0x351   :  { %s13955_s11 = scalar_lea.hbm %s18258_s5, 8192 }
 0x352   :  { %p13956_p5 = scmp.ne.s32.totalorder %s18258_s5, %s13955_s11  ;;  %p13959_p6 = scmp.lt.u32.totalorder %s13955_s11, %s18258_s5 }
 0x354   :  { %p13961_p7 = pnand %p13959_p6, %p13956_p5 }
 0x356   :  { %13964 = shalt.err (!%p13961_p7)
}
 0x357   :  { %s13995_s16 = smov 128   ;;  %s13996_s1 = smov 8   ;;  %v12138_v53 = vld [vmem:[%s18257_s4] ss:$0 sm:$0xff]  ;;  %vm10846_vm9 = vcmask 58368  }
 0x358   :  { %10859 = dma.vmem_to_hbm [thread:$0]  %s10854_s7, 8192, %s18258_s5, [#allocation3], %s13995_s16, %s13995_s16, %s13996_s1  }
 0x359   :  { %s13997_s20 = smov [#allocation4]  }
 0x35a   :  { %s10866_s21 = sshll.u32 %s13997_s20, 4  ;;  %s10867_s21 = int_to_ptr.vmem [resolvable:$true] %s10866_s21 }
 0x35b   :  { %s13965_s22 = scalar_lea.vmem %s10867_s21, 32  ;;  %p13970_p9 = scmp.lt.s32.totalorder %s10867_s21, %s10867_s21 }
 0x35c   :  { %p13966_p8 = scmp.ne.s32.totalorder %s10867_s21, %s13965_s22  ;;  %p13971_p10 = scmp.lt.s32.totalorder %s13965_s22, %s13965_s22 }
 0x35e   :  { %p13972_p11 = por %p13971_p10, %p13970_p9 }
 0x360   :  { %p13973_p12 = pnand %p13972_p11, %p13966_p8 }
 0x422   :  { %v10842_v48 = vpop.f32.mrb[64].mxu1 }
 0x423   :  { %v10843_v45 = vadd.f32 %v12138_v53, %v10842_v48  ;;  %v13135_v38 = vpop.f32.mrb[65].mxu1 }
 0x425   :  { %10847 = vst.msk [vmem:[#allocation4] sm:$0x3] %vm10846_vm9, %v10843_v45 }
 0x426   :  { %13976 = shalt.err (!%p13973_p12)
}
 0x427   :  { %s13977_s24 = scalar_lea.hbm %s18259_s6, 32 }
 0x428   :  { %p13978_p13 = scmp.ne.s32.totalorder %s18259_s6, %s13977_s24  ;;  %p13981_p0 = scmp.lt.u32.totalorder %s13977_s24, %s18259_s6 }
 0x42a   :  { %p13983_p1 = pnand %p13981_p0, %p13978_p13 }
 0x42c   :  { %13986 = shalt.err (!%p13983_p1)
}
 0x42d   :  { %10869 = dma.vmem_to_hbm [thread:$0]  %s10867_s21, 32, %s18259_s6, [#allocation5]  }
 0x42e   :  { %13987 = dma.done.wait [#allocation3], 8192  }
 0x42f   :  { %13988 = vsyncadd [#allocation3], 4294959104 }
 0x430   :  { %13989 = dma.done.wait [#allocation5], 32  }
 0x431   :  { %13990 = vsyncadd [#allocation5], 4294967264 }
 0x432   :  { %10876 = vsyncpa [#allocation3], 1 }
 0x433   :  { %10877 = vsyncpa [#allocation5], 1 }

</bundles_post_ra>
